<compile_context>
chip_gen: v5e
topology: v5e:2x2
jax: 0.10.0
libtpu: 0.0.40
codegen_flags: <defaults>
</compile_context>

<pallas_src>
import functools

import jax
import jax.numpy as jnp
from jax.experimental import pallas as pl
from jax.experimental.pallas import tpu as pltpu

_LANE = 128
_SUBLANE = 8


def _round_up(n, m):
    return ((n + m - 1) // m) * m


def _decoder_kernel(x_ref, w1_ref, b1_ref, w2_ref, b2_ref, w3_ref, b3_ref,
                    w4_ref, b4_ref, o_ref):
    """Fused 4-layer MLP: (Linear + ReLU) x3 -> Linear. All tiles in VMEM."""
    h = x_ref[...]
    h = jnp.maximum(
        jnp.dot(h, w1_ref[...], preferred_element_type=jnp.float32) + b1_ref[...],
        0.0)
    h = jnp.maximum(
        jnp.dot(h, w2_ref[...], preferred_element_type=jnp.float32) + b2_ref[...],
        0.0)
    h = jnp.maximum(
        jnp.dot(h, w3_ref[...], preferred_element_type=jnp.float32) + b3_ref[...],
        0.0)
    o = jnp.dot(h, w4_ref[...], preferred_element_type=jnp.float32) + b4_ref[...]
    o_ref[...] = o.astype(o_ref.dtype)


@functools.partial(jax.jit, static_argnames=("block_b",))
def decoder_forward(x, w1, b1, w2, b2, w3, b3, w4, b4, *, block_b=256):
    B, F = x.shape
    H1, H2, H3, O = w1.shape[1], w2.shape[1], w3.shape[1], w4.shape[1]

    # Pad all feature axes to multiples of 128 (lane-dense, unmasked stores)
    # and the batch axis to a multiple of the batch tile.
    Fp, H1p, H2p, H3p, Op = (_round_up(d, _LANE) for d in (F, H1, H2, H3, O))
    bb = min(block_b, _round_up(B, _SUBLANE))   # shrink tile for tiny batches
    Bp = _round_up(B, bb)

    f32 = jnp.float32
    xp  = jnp.zeros((Bp, Fp),   x.dtype).at[:B, :F].set(x)
    w1p = jnp.zeros((Fp, H1p),  f32).at[:F, :H1].set(w1)
    b1p = jnp.zeros((1, H1p),   f32).at[:, :H1].set(b1)
    w2p = jnp.zeros((H1p, H2p), f32).at[:H1, :H2].set(w2)
    b2p = jnp.zeros((1, H2p),   f32).at[:, :H2].set(b2)
    w3p = jnp.zeros((H2p, H3p), f32).at[:H2, :H3].set(w3)
    b3p = jnp.zeros((1, H3p),   f32).at[:, :H3].set(b3)
    w4p = jnp.zeros((H3p, Op),  f32).at[:H3, :O].set(w4)
    b4p = jnp.zeros((1, Op),    f32).at[:, :O].set(b4)

    grid = (Bp // bb,)
    out = pl.pallas_call(
        _decoder_kernel,
        out_shape=jax.ShapeDtypeStruct((Bp, Op), jnp.float32),
        grid_spec=pltpu.PrefetchScalarGridSpec(
            num_scalar_prefetch=0,
            grid=grid,
            in_specs=[
                pl.BlockSpec((bb, Fp),    lambda i: (i, 0)),   # x tile
                pl.BlockSpec((Fp, H1p),   lambda i: (0, 0)),   # W1 (resident)
                pl.BlockSpec((1, H1p),    lambda i: (0, 0)),   # b1
                pl.BlockSpec((H1p, H2p),  lambda i: (0, 0)),   # W2 (resident)
                pl.BlockSpec((1, H2p),    lambda i: (0, 0)),   # b2
                pl.BlockSpec((H2p, H3p),  lambda i: (0, 0)),   # W3 (resident)
                pl.BlockSpec((1, H3p),    lambda i: (0, 0)),   # b3
                pl.BlockSpec((H3p, Op),   lambda i: (0, 0)),   # W4 (resident)
                pl.BlockSpec((1, Op),     lambda i: (0, 0)),   # b4
            ],
            out_specs=pl.BlockSpec((bb, Op), lambda i: (i, 0)),
        ),
        compiler_params=pltpu.CompilerParams(
            dimension_semantics=("parallel",),
            # ~6.5 MiB of padded weights (x2 buffering) + batch tiles +
            # activations; comfortably under v5e/v6e/v7x VMEM.
            vmem_limit_bytes=40 * 1024 * 1024,
        ),
    )(xp, w1p, b1p, w2p, b2p, w3p, b3p, w4p, b4p)

    return out[:B, :O]


def init_params(key, input_dim, feature_dim):
    """Deterministic init mimicking PyTorch Linear default U(-1/sqrt(fan_in), +)."""
    dims = [feature_dim, 2000, 500, 500, input_dim]
    ks = jax.random.split(key, 2 * (len(dims) - 1))
    params = []
    for li in range(len(dims) - 1):
        fan_in, fan_out = dims[li], dims[li + 1]
        bound = 1.0 / jnp.sqrt(float(fan_in))
        # stored as (in, out) so the kernel does x @ W
        w = jax.random.uniform(ks[2 * li], (fan_in, fan_out), jnp.float32,
                               -bound, bound)
        b = jax.random.uniform(ks[2 * li + 1], (1, fan_out), jnp.float32,
                               -bound, bound)
        params += [w, b]
    return tuple(params)


def reference_forward(x, w1, b1, w2, b2, w3, b3, w4, b4):
    h = jnp.maximum(x @ w1 + b1, 0.0)
    h = jnp.maximum(h @ w2 + b2, 0.0)
    h = jnp.maximum(h @ w3 + b3, 0.0)
    return h @ w4 + b4


if __name__ == "__main__":
    key = jax.random.PRNGKey(0)
    k_x, k_x2, k_p = jax.random.split(key, 3)

    batch, feature_dim, input_dim = 16, 64, 128
    params = init_params(k_p, input_dim, feature_dim)

    # Small-batch check (single grid step, padded feature axes).
    x = jax.random.normal(k_x, (batch, feature_dim), jnp.float32)
    out = jax.block_until_ready(decoder_forward(x, *params))
    ref = reference_forward(x, *params)
    assert out.shape == (batch, input_dim), out.shape
    max_err = jnp.max(jnp.abs(out - ref))
    assert jnp.allclose(out, ref, atol=1e-3, rtol=1e-3), f"max abs err {max_err}"

    # Ragged / multi-tile batch check (grid > 1, padded batch rows sliced off).
    batch2 = 300
    x2 = jax.random.normal(k_x2, (batch2, feature_dim), jnp.float32)
    out2 = jax.block_until_ready(decoder_forward(x2, *params))
    ref2 = reference_forward(x2, *params)
    assert out2.shape == (batch2, input_dim), out2.shape
    max_err2 = jnp.max(jnp.abs(out2 - ref2))
    assert jnp.allclose(out2, ref2, atol=1e-3, rtol=1e-3), f"max abs err {max_err2}"

    print("KERNEL_OK")
</pallas_src>

<mosaic_0001>
module attributes {stable_mosaic.version = 11 : i64} {
  func.func @_decoder_kernel(%arg0: i32, %arg1: memref<16x128xf32, #tpu.memory_space<vmem>>, %arg2: memref<128x2048xf32, #tpu.memory_space<vmem>>, %arg3: memref<1x2048xf32, #tpu.memory_space<vmem>>, %arg4: memref<2048x512xf32, #tpu.memory_space<vmem>>, %arg5: memref<1x512xf32, #tpu.memory_space<vmem>>, %arg6: memref<512x512xf32, #tpu.memory_space<vmem>>, %arg7: memref<1x512xf32, #tpu.memory_space<vmem>>, %arg8: memref<512x128xf32, #tpu.memory_space<vmem>>, %arg9: memref<1x128xf32, #tpu.memory_space<vmem>>, %arg10: memref<16x128xf32, #tpu.memory_space<vmem>>) attributes {dimension_semantics = [#tpu.dimension_semantics<parallel>], iteration_bounds = array<i64: 1>, scalar_prefetch = 0 : i64, scratch_operands = 0 : i64, tpu.core_type = #tpu.core_type<tc>, window_params = [{transform_indices = @transform_0, window_bounds = array<i64: 16, 128>}, {pipeline_mode = #tpu.pipeline_mode<synchronous>, transform_indices = @transform_1, window_bounds = array<i64: 128, 2048>}, {pipeline_mode = #tpu.pipeline_mode<synchronous>, transform_indices = @transform_2, window_bounds = array<i64: 1, 2048>}, {pipeline_mode = #tpu.pipeline_mode<synchronous>, transform_indices = @transform_3, window_bounds = array<i64: 2048, 512>}, {pipeline_mode = #tpu.pipeline_mode<synchronous>, transform_indices = @transform_4, window_bounds = array<i64: 1, 512>}, {pipeline_mode = #tpu.pipeline_mode<synchronous>, transform_indices = @transform_5, window_bounds = array<i64: 512, 512>}, {pipeline_mode = #tpu.pipeline_mode<synchronous>, transform_indices = @transform_6, window_bounds = array<i64: 1, 512>}, {pipeline_mode = #tpu.pipeline_mode<synchronous>, transform_indices = @transform_7, window_bounds = array<i64: 512, 128>}, {pipeline_mode = #tpu.pipeline_mode<synchronous>, transform_indices = @transform_8, window_bounds = array<i64: 1, 128>}, {transform_indices = @transform_9, window_bounds = array<i64: 16, 128>}]} {
    %c0 = arith.constant 0 : index
    %c0_0 = arith.constant 0 : index
    %0 = vector.load %arg1[%c0, %c0_0] : memref<16x128xf32, #tpu.memory_space<vmem>>, vector<16x128xf32>
    %c0_1 = arith.constant 0 : index
    %c0_2 = arith.constant 0 : index
    %1 = vector.load %arg2[%c0_1, %c0_2] : memref<128x2048xf32, #tpu.memory_space<vmem>>, vector<128x2048xf32>
    %cst = arith.constant dense<0.000000e+00> : vector<16x2048xf32>
    %2 = tpu.matmul %0, %1, %cst {dimension_numbers = #tpu.dot_dimension_numbers<[1], [0], [0], [1], [0, 0, 1, 1], [], []>} : vector<16x128xf32>, vector<128x2048xf32>, vector<16x2048xf32> -> vector<16x2048xf32>
    %c0_3 = arith.constant 0 : index
    %c0_4 = arith.constant 0 : index
    %3 = vector.load %arg3[%c0_3, %c0_4] : memref<1x2048xf32, #tpu.memory_space<vmem>>, vector<1x2048xf32>
    %4 = vector.broadcast %3 : vector<1x2048xf32> to vector<16x2048xf32>
    %5 = arith.addf %2, %4 : vector<16x2048xf32>
    %cst_5 = arith.constant 0.000000e+00 : f32
    %6 = vector.broadcast %cst_5 : f32 to vector<16x2048xf32>
    %7 = arith.maximumf %5, %6 : vector<16x2048xf32>
    %c0_6 = arith.constant 0 : index
    %c0_7 = arith.constant 0 : index
    %8 = vector.load %arg4[%c0_6, %c0_7] : memref<2048x512xf32, #tpu.memory_space<vmem>>, vector<2048x512xf32>
    %cst_8 = arith.constant dense<0.000000e+00> : vector<16x512xf32>
    %9 = tpu.matmul %7, %8, %cst_8 {dimension_numbers = #tpu.dot_dimension_numbers<[1], [0], [0], [1], [0, 0, 1, 1], [], []>} : vector<16x2048xf32>, vector<2048x512xf32>, vector<16x512xf32> -> vector<16x512xf32>
    %c0_9 = arith.constant 0 : index
    %c0_10 = arith.constant 0 : index
    %10 = vector.load %arg5[%c0_9, %c0_10] : memref<1x512xf32, #tpu.memory_space<vmem>>, vector<1x512xf32>
    %11 = vector.broadcast %10 : vector<1x512xf32> to vector<16x512xf32>
    %12 = arith.addf %9, %11 : vector<16x512xf32>
    %cst_11 = arith.constant 0.000000e+00 : f32
    %13 = vector.broadcast %cst_11 : f32 to vector<16x512xf32>
    %14 = arith.maximumf %12, %13 : vector<16x512xf32>
    %c0_12 = arith.constant 0 : index
    %c0_13 = arith.constant 0 : index
    %15 = vector.load %arg6[%c0_12, %c0_13] : memref<512x512xf32, #tpu.memory_space<vmem>>, vector<512x512xf32>
    %cst_14 = arith.constant dense<0.000000e+00> : vector<16x512xf32>
    %16 = tpu.matmul %14, %15, %cst_14 {dimension_numbers = #tpu.dot_dimension_numbers<[1], [0], [0], [1], [0, 0, 1, 1], [], []>} : vector<16x512xf32>, vector<512x512xf32>, vector<16x512xf32> -> vector<16x512xf32>
    %c0_15 = arith.constant 0 : index
    %c0_16 = arith.constant 0 : index
    %17 = vector.load %arg7[%c0_15, %c0_16] : memref<1x512xf32, #tpu.memory_space<vmem>>, vector<1x512xf32>
    %18 = vector.broadcast %17 : vector<1x512xf32> to vector<16x512xf32>
    %19 = arith.addf %16, %18 : vector<16x512xf32>
    %cst_17 = arith.constant 0.000000e+00 : f32
    %20 = vector.broadcast %cst_17 : f32 to vector<16x512xf32>
    %21 = arith.maximumf %19, %20 : vector<16x512xf32>
    %c0_18 = arith.constant 0 : index
    %c0_19 = arith.constant 0 : index
    %22 = vector.load %arg8[%c0_18, %c0_19] : memref<512x128xf32, #tpu.memory_space<vmem>>, vector<512x128xf32>
    %cst_20 = arith.constant dense<0.000000e+00> : vector<16x128xf32>
    %23 = tpu.matmul %21, %22, %cst_20 {dimension_numbers = #tpu.dot_dimension_numbers<[1], [0], [0], [1], [0, 0, 1, 1], [], []>} : vector<16x512xf32>, vector<512x128xf32>, vector<16x128xf32> -> vector<16x128xf32>
    %c0_21 = arith.constant 0 : index
    %c0_22 = arith.constant 0 : index
    %24 = vector.load %arg9[%c0_21, %c0_22] : memref<1x128xf32, #tpu.memory_space<vmem>>, vector<1x128xf32>
    %25 = vector.broadcast %24 : vector<1x128xf32> to vector<16x128xf32>
    %26 = arith.addf %23, %25 : vector<16x128xf32>
    %c0_23 = arith.constant 0 : index
    %c0_24 = arith.constant 0 : index
    %27 = vector.load %arg10[%c0_23, %c0_24] : memref<16x128xf32, #tpu.memory_space<vmem>>, vector<16x128xf32>
    tpu.vector_store %arg10[%c0_23, %c0_24], %26 {strides = array<i32>} : memref<16x128xf32, #tpu.memory_space<vmem>>, vector<16x128xf32>,
    return
  }
  func.func @transform_0(%arg0: i32) -> (i32, i32) {
    %c0_i32 = arith.constant 0 : i32
    %c0_i32_0 = arith.constant 0 : i32
    return %arg0, %c0_i32 : i32, i32
  }
  func.func @transform_1(%arg0: i32) -> (i32, i32) {
    %c0_i32 = arith.constant 0 : i32
    %c0_i32_0 = arith.constant 0 : i32
    %c0_i32_1 = arith.constant 0 : i32
    return %c0_i32, %c0_i32_0 : i32, i32
  }
  func.func @transform_2(%arg0: i32) -> (i32, i32) {
    %c0_i32 = arith.constant 0 : i32
    %c0_i32_0 = arith.constant 0 : i32
    %c0_i32_1 = arith.constant 0 : i32
    return %c0_i32, %c0_i32_0 : i32, i32
  }
  func.func @transform_3(%arg0: i32) -> (i32, i32) {
    %c0_i32 = arith.constant 0 : i32
    %c0_i32_0 = arith.constant 0 : i32
    %c0_i32_1 = arith.constant 0 : i32
    return %c0_i32, %c0_i32_0 : i32, i32
  }
  func.func @transform_4(%arg0: i32) -> (i32, i32) {
    %c0_i32 = arith.constant 0 : i32
    %c0_i32_0 = arith.constant 0 : i32
    %c0_i32_1 = arith.constant 0 : i32
    return %c0_i32, %c0_i32_0 : i32, i32
  }
  func.func @transform_5(%arg0: i32) -> (i32, i32) {
    %c0_i32 = arith.constant 0 : i32
    %c0_i32_0 = arith.constant 0 : i32
    %c0_i32_1 = arith.constant 0 : i32
    return %c0_i32, %c0_i32_0 : i32, i32
  }
  func.func @transform_6(%arg0: i32) -> (i32, i32) {
    %c0_i32 = arith.constant 0 : i32
    %c0_i32_0 = arith.constant 0 : i32
    %c0_i32_1 = arith.constant 0 : i32
    return %c0_i32, %c0_i32_0 : i32, i32
  }
  func.func @transform_7(%arg0: i32) -> (i32, i32) {
    %c0_i32 = arith.constant 0 : i32
    %c0_i32_0 = arith.constant 0 : i32
    %c0_i32_1 = arith.constant 0 : i32
    return %c0_i32, %c0_i32_0 : i32, i32
  }
  func.func @transform_8(%arg0: i32) -> (i32, i32) {
    %c0_i32 = arith.constant 0 : i32
    %c0_i32_0 = arith.constant 0 : i32
    %c0_i32_1 = arith.constant 0 : i32
    return %c0_i32, %c0_i32_0 : i32, i32
  }
  func.func @transform_9(%arg0: i32) -> (i32, i32) {
    %c0_i32 = arith.constant 0 : i32
    %c0_i32_0 = arith.constant 0 : i32
    return %arg0, %c0_i32 : i32, i32
  }
}

</mosaic_0001>

<bundles_post_ra>
// kernel: decoder_forward.1
= control target key start
LH: loop header
LB: loop body
LE: loop exit
PB: predicated region body
PF: predicated region fallthrough
CT: control target
= control target key end

     0   :  { %s9642_s0 = inlined_call_operand.vmem [shape: f32[16,128], index: 0, kind: input, shape index: {}]   ;;  %s9643_s1 = inlined_call_operand.vmem [shape: f32[128,2048], index: 1, kind: input, shape index: {}]   ;;  %s9644_s2 = inlined_call_operand.vmem [shape: f32[1,2048], index: 2, kind: input, shape index: {}]   ;;  %s9645_s3 = inlined_call_operand.vmem [shape: f32[2048,512], index: 3, kind: input, shape index: {}]   ;;  %s9646_s4 = inlined_call_operand.vmem [shape: f32[1,512], index: 4, kind: input, shape index: {}]   ;;  %s9647_s5 = inlined_call_operand.vmem [shape: f32[512,512], index: 5, kind: input, shape index: {}]   ;;  %s9648_s6 = inlined_call_operand.vmem [shape: f32[1,512], index: 6, kind: input, shape index: {}]   ;;  %s9649_s7 = inlined_call_operand.vmem [shape: f32[512,128], index: 7, kind: input, shape index: {}]   ;;  %s9650_s8 = inlined_call_operand.vmem [shape: f32[1,128], index: 8, kind: input, shape index: {}]   ;;  %s9651_s9 = inlined_call_operand.hbm [shape: f32[16,128], index: 9, kind: output, shape index: {}]  }
   0x1   :  { %v275_v0 = vld [vmem:[%s9643_s1 + $0x780] sm:$0xff]  ;;  %v276_v1 = vld [vmem:[%s9643_s1 + $0x788] sm:$0xff]  ;;  %v277_v2 = vld [vmem:[%s9643_s1 + $0x790] sm:$0xff] }
   0x2   :  { %327 = vmatpush.msra.mxu0 %v275_v0  ;;  %350 = vmatpush.msra.mxu1 %v276_v1  ;;  %v278_v3 = vld [vmem:[%s9643_s1 + $0x798] sm:$0xff]  ;;  %v259_v4 = vld [vmem:[%s9643_s1 + $0x700] sm:$0xff]  ;;  %v260_v5 = vld [vmem:[%s9643_s1 + $0x708] sm:$0xff] }
   0x3   :  { %373 = vmatpush.msra.mxu2 %v277_v2  ;;  %396 = vmatpush.msra.mxu3 %v278_v3  ;;  %v261_v6 = vld [vmem:[%s9643_s1 + $0x710] sm:$0xff]  ;;  %v262_v7 = vld [vmem:[%s9643_s1 + $0x718] sm:$0xff]  ;;  %v243_v8 = vld [vmem:[%s9643_s1 + $0x680] sm:$0xff] }
   0x4   :  { %328 = vmatpush.msra.mxu0 %v259_v4  ;;  %351 = vmatpush.msra.mxu1 %v260_v5  ;;  %v244_v9 = vld [vmem:[%s9643_s1 + $0x688] sm:$0xff]  ;;  %v245_v10 = vld [vmem:[%s9643_s1 + $0x690] sm:$0xff]  ;;  %v246_v11 = vld [vmem:[%s9643_s1 + $0x698] sm:$0xff] }
   0x5   :  { %374 = vmatpush.msra.mxu2 %v261_v6  ;;  %397 = vmatpush.msra.mxu3 %v262_v7  ;;  %v227_v12 = vld [vmem:[%s9643_s1 + $0x600] sm:$0xff]  ;;  %v228_v13 = vld [vmem:[%s9643_s1 + $0x608] sm:$0xff]  ;;  %v229_v14 = vld [vmem:[%s9643_s1 + $0x610] sm:$0xff] }
   0x6   :  { %329 = vmatpush.msra.mxu0 %v243_v8  ;;  %352 = vmatpush.msra.mxu1 %v244_v9  ;;  %v230_v15 = vld [vmem:[%s9643_s1 + $0x618] sm:$0xff]  ;;  %v211_v16 = vld [vmem:[%s9643_s1 + $0x580] sm:$0xff]  ;;  %v212_v17 = vld [vmem:[%s9643_s1 + $0x588] sm:$0xff] }
   0x7   :  { %375 = vmatpush.msra.mxu2 %v245_v10  ;;  %398 = vmatpush.msra.mxu3 %v246_v11  ;;  %v213_v18 = vld [vmem:[%s9643_s1 + $0x590] sm:$0xff]  ;;  %v214_v19 = vld [vmem:[%s9643_s1 + $0x598] sm:$0xff]  ;;  %v195_v20 = vld [vmem:[%s9643_s1 + $0x500] sm:$0xff] }
   0x8   :  { %330 = vmatpush.msra.mxu0 %v227_v12  ;;  %353 = vmatpush.msra.mxu1 %v228_v13  ;;  %v196_v21 = vld [vmem:[%s9643_s1 + $0x508] sm:$0xff]  ;;  %v197_v22 = vld [vmem:[%s9643_s1 + $0x510] sm:$0xff]  ;;  %v198_v23 = vld [vmem:[%s9643_s1 + $0x518] sm:$0xff] }
   0x9   :  { %376 = vmatpush.msra.mxu2 %v229_v14  ;;  %399 = vmatpush.msra.mxu3 %v230_v15  ;;  %v179_v24 = vld [vmem:[%s9643_s1 + $0x480] sm:$0xff]  ;;  %v180_v25 = vld [vmem:[%s9643_s1 + $0x488] sm:$0xff]  ;;  %v181_v26 = vld [vmem:[%s9643_s1 + $0x490] sm:$0xff] }
   0xa   :  { %331 = vmatpush.msra.mxu0 %v211_v16  ;;  %354 = vmatpush.msra.mxu1 %v212_v17  ;;  %v182_v27 = vld [vmem:[%s9643_s1 + $0x498] sm:$0xff]  ;;  %v163_v28 = vld [vmem:[%s9643_s1 + $0x400] sm:$0xff]  ;;  %v164_v29 = vld [vmem:[%s9643_s1 + $0x408] sm:$0xff] }
   0xb   :  { %377 = vmatpush.msra.mxu2 %v213_v18  ;;  %400 = vmatpush.msra.mxu3 %v214_v19  ;;  %v165_v30 = vld [vmem:[%s9643_s1 + $0x410] sm:$0xff]  ;;  %v166_v31 = vld [vmem:[%s9643_s1 + $0x418] sm:$0xff]  ;;  %v147_v32 = vld [vmem:[%s9643_s1 + $0x380] sm:$0xff] }
   0xc   :  { %332 = vmatpush.msra.mxu0 %v195_v20  ;;  %355 = vmatpush.msra.mxu1 %v196_v21  ;;  %v148_v33 = vld [vmem:[%s9643_s1 + $0x388] sm:$0xff]  ;;  %v149_v34 = vld [vmem:[%s9643_s1 + $0x390] sm:$0xff]  ;;  %v150_v35 = vld [vmem:[%s9643_s1 + $0x398] sm:$0xff] }
   0xd   :  { %378 = vmatpush.msra.mxu2 %v197_v22  ;;  %401 = vmatpush.msra.mxu3 %v198_v23  ;;  %v131_v36 = vld [vmem:[%s9643_s1 + $0x300] sm:$0xff]  ;;  %v132_v37 = vld [vmem:[%s9643_s1 + $0x308] sm:$0xff]  ;;  %v133_v38 = vld [vmem:[%s9643_s1 + $0x310] sm:$0xff] }
   0xe   :  { %333 = vmatpush.msra.mxu0 %v179_v24  ;;  %356 = vmatpush.msra.mxu1 %v180_v25  ;;  %v134_v39 = vld [vmem:[%s9643_s1 + $0x318] sm:$0xff]  ;;  %v115_v40 = vld [vmem:[%s9643_s1 + $0x280] sm:$0xff]  ;;  %v116_v41 = vld [vmem:[%s9643_s1 + $0x288] sm:$0xff] }
   0xf   :  { %379 = vmatpush.msra.mxu2 %v181_v26  ;;  %402 = vmatpush.msra.mxu3 %v182_v27  ;;  %v117_v42 = vld [vmem:[%s9643_s1 + $0x290] sm:$0xff]  ;;  %v118_v43 = vld [vmem:[%s9643_s1 + $0x298] sm:$0xff]  ;;  %v99_v44 = vld [vmem:[%s9643_s1 + $0x200] sm:$0xff] }
  0x10   :  { %334 = vmatpush.msra.mxu0 %v163_v28  ;;  %357 = vmatpush.msra.mxu1 %v164_v29  ;;  %v100_v45 = vld [vmem:[%s9643_s1 + $0x208] sm:$0xff]  ;;  %v101_v46 = vld [vmem:[%s9643_s1 + $0x210] sm:$0xff]  ;;  %v102_v47 = vld [vmem:[%s9643_s1 + $0x218] sm:$0xff] }
  0x11   :  { %380 = vmatpush.msra.mxu2 %v165_v30  ;;  %403 = vmatpush.msra.mxu3 %v166_v31  ;;  %v83_v48 = vld [vmem:[%s9643_s1 + $0x180] sm:$0xff]  ;;  %v84_v49 = vld [vmem:[%s9643_s1 + $0x188] sm:$0xff]  ;;  %v85_v50 = vld [vmem:[%s9643_s1 + $0x190] sm:$0xff] }
  0x12   :  { %335 = vmatpush.msra.mxu0 %v147_v32  ;;  %358 = vmatpush.msra.mxu1 %v148_v33  ;;  %v86_v51 = vld [vmem:[%s9643_s1 + $0x198] sm:$0xff]  ;;  %v67_v52 = vld [vmem:[%s9643_s1 + $0x100] sm:$0xff]  ;;  %v68_v53 = vld [vmem:[%s9643_s1 + $0x108] sm:$0xff] }
  0x13   :  { %381 = vmatpush.msra.mxu2 %v149_v34  ;;  %404 = vmatpush.msra.mxu3 %v150_v35  ;;  %v69_v54 = vld [vmem:[%s9643_s1 + $0x110] sm:$0xff]  ;;  %v70_v55 = vld [vmem:[%s9643_s1 + $0x118] sm:$0xff]  ;;  %v51_v56 = vld [vmem:[%s9643_s1 + $0x80] sm:$0xff] }
  0x14   :  { %336 = vmatpush.msra.mxu0 %v131_v36  ;;  %359 = vmatpush.msra.mxu1 %v132_v37  ;;  %v52_v57 = vld [vmem:[%s9643_s1 + $0x88] sm:$0xff]  ;;  %v53_v58 = vld [vmem:[%s9643_s1 + $0x90] sm:$0xff]  ;;  %v54_v59 = vld [vmem:[%s9643_s1 + $0x98] sm:$0xff] }
  0x15   :  { %382 = vmatpush.msra.mxu2 %v133_v38  ;;  %405 = vmatpush.msra.mxu3 %v134_v39  ;;  %v35_v60 = vld [vmem:[%s9643_s1] sm:$0xff]  ;;  %v36_v61 = vld [vmem:[%s9643_s1 + $0x8] sm:$0xff]  ;;  %v37_v62 = vld [vmem:[%s9643_s1 + $0x10] sm:$0xff] }
  0x16   :  { %337 = vmatpush.msra.mxu0 %v115_v40  ;;  %360 = vmatpush.msra.mxu1 %v116_v41  ;;  %v38_v63 = vld [vmem:[%s9643_s1 + $0x18] sm:$0xff]  ;;  %v279_v0 = vld [vmem:[%s9643_s1 + $0x7a0] sm:$0xff]  ;;  %v280_v1 = vld [vmem:[%s9643_s1 + $0x7a8] sm:$0xff] }
  0x17   :  { %383 = vmatpush.msra.mxu2 %v117_v42  ;;  %406 = vmatpush.msra.mxu3 %v118_v43  ;;  %v281_v2 = vld [vmem:[%s9643_s1 + $0x7b0] sm:$0xff]  ;;  %v282_v3 = vld [vmem:[%s9643_s1 + $0x7b8] sm:$0xff]  ;;  %v263_v4 = vld [vmem:[%s9643_s1 + $0x720] sm:$0xff] }
  0x18   :  { %338 = vmatpush.msra.mxu0 %v99_v44  ;;  %361 = vmatpush.msra.mxu1 %v100_v45  ;;  %v264_v5 = vld [vmem:[%s9643_s1 + $0x728] sm:$0xff]  ;;  %v265_v6 = vld [vmem:[%s9643_s1 + $0x730] sm:$0xff]  ;;  %v266_v7 = vld [vmem:[%s9643_s1 + $0x738] sm:$0xff] }
  0x19   :  { %384 = vmatpush.msra.mxu2 %v101_v46  ;;  %407 = vmatpush.msra.mxu3 %v102_v47  ;;  %v247_v8 = vld [vmem:[%s9643_s1 + $0x6a0] sm:$0xff]  ;;  %v248_v9 = vld [vmem:[%s9643_s1 + $0x6a8] sm:$0xff]  ;;  %v249_v10 = vld [vmem:[%s9643_s1 + $0x6b0] sm:$0xff] }
  0x1a   :  { %339 = vmatpush.msra.mxu0 %v83_v48  ;;  %362 = vmatpush.msra.mxu1 %v84_v49  ;;  %v250_v11 = vld [vmem:[%s9643_s1 + $0x6b8] sm:$0xff]  ;;  %v231_v12 = vld [vmem:[%s9643_s1 + $0x620] sm:$0xff]  ;;  %v232_v13 = vld [vmem:[%s9643_s1 + $0x628] sm:$0xff] }
  0x1b   :  { %385 = vmatpush.msra.mxu2 %v85_v50  ;;  %408 = vmatpush.msra.mxu3 %v86_v51  ;;  %v233_v14 = vld [vmem:[%s9643_s1 + $0x630] sm:$0xff]  ;;  %v234_v15 = vld [vmem:[%s9643_s1 + $0x638] sm:$0xff]  ;;  %v215_v16 = vld [vmem:[%s9643_s1 + $0x5a0] sm:$0xff] }
  0x1c   :  { %340 = vmatpush.msra.mxu0 %v67_v52  ;;  %363 = vmatpush.msra.mxu1 %v68_v53  ;;  %v216_v17 = vld [vmem:[%s9643_s1 + $0x5a8] sm:$0xff]  ;;  %v217_v18 = vld [vmem:[%s9643_s1 + $0x5b0] sm:$0xff]  ;;  %v218_v19 = vld [vmem:[%s9643_s1 + $0x5b8] sm:$0xff] }
  0x1d   :  { %386 = vmatpush.msra.mxu2 %v69_v54  ;;  %409 = vmatpush.msra.mxu3 %v70_v55  ;;  %v199_v20 = vld [vmem:[%s9643_s1 + $0x520] sm:$0xff]  ;;  %v200_v21 = vld [vmem:[%s9643_s1 + $0x528] sm:$0xff]  ;;  %v201_v22 = vld [vmem:[%s9643_s1 + $0x530] sm:$0xff] }
  0x1e   :  { %341 = vmatpush.msra.mxu0 %v51_v56  ;;  %364 = vmatpush.msra.mxu1 %v52_v57  ;;  %v202_v23 = vld [vmem:[%s9643_s1 + $0x538] sm:$0xff]  ;;  %v183_v24 = vld [vmem:[%s9643_s1 + $0x4a0] sm:$0xff]  ;;  %v184_v25 = vld [vmem:[%s9643_s1 + $0x4a8] sm:$0xff] }
  0x1f   :  { %387 = vmatpush.msra.mxu2 %v53_v58  ;;  %410 = vmatpush.msra.mxu3 %v54_v59  ;;  %v185_v26 = vld [vmem:[%s9643_s1 + $0x4b0] sm:$0xff]  ;;  %v186_v27 = vld [vmem:[%s9643_s1 + $0x4b8] sm:$0xff]  ;;  %v167_v28 = vld [vmem:[%s9643_s1 + $0x420] sm:$0xff] }
  0x20   :  { %342 = vmatpush.msra.mxu0 %v35_v60  ;;  %365 = vmatpush.msra.mxu1 %v36_v61  ;;  %v168_v29 = vld [vmem:[%s9643_s1 + $0x428] sm:$0xff]  ;;  %v169_v30 = vld [vmem:[%s9643_s1 + $0x430] sm:$0xff]  ;;  %v170_v31 = vld [vmem:[%s9643_s1 + $0x438] sm:$0xff] }
  0x21   :  { %388 = vmatpush.msra.mxu2 %v37_v62  ;;  %411 = vmatpush.msra.mxu3 %v38_v63  ;;  %v4438_v32 = vld [vmem:[%s9642_s0] sm:$0xff]  ;;  %v152_v34 = vld [vmem:[%s9643_s1 + $0x3a8] sm:$0xff]  ;;  %v153_v35 = vld [vmem:[%s9643_s1 + $0x3b0] sm:$0xff] }
  0x22   :  { %419 = vmatpush.msrb.mxu0 %v279_v0  ;;  %442 = vmatpush.msrb.mxu1 %v280_v1  ;;  %v151_v33 = vld [vmem:[%s9643_s1 + $0x3a0] sm:$0xff]  ;;  %v154_v36 = vld [vmem:[%s9643_s1 + $0x3b8] sm:$0xff]  ;;  %v136_v38 = vld [vmem:[%s9643_s1 + $0x328] sm:$0xff] }
  0x23   :  { %465 = vmatpush.msrb.mxu2 %v281_v2  ;;  %488 = vmatpush.msrb.mxu3 %v282_v3  ;;  %v135_v37 = vld [vmem:[%s9643_s1 + $0x320] sm:$0xff]  ;;  %v137_v39 = vld [vmem:[%s9643_s1 + $0x330] sm:$0xff]  ;;  %v138_v40 = vld [vmem:[%s9643_s1 + $0x338] sm:$0xff] }
  0x24   :  { %420 = vmatpush.msrb.mxu0 %v263_v4  ;;  %443 = vmatpush.msrb.mxu1 %v264_v5  ;;  %v120_v41 = vld [vmem:[%s9643_s1 + $0x2a8] sm:$0xff]  ;;  %v119_v42 = vld [vmem:[%s9643_s1 + $0x2a0] sm:$0xff]  ;;  %v121_v43 = vld [vmem:[%s9643_s1 + $0x2b0] sm:$0xff] }
  0x25   :  { %466 = vmatpush.msrb.mxu2 %v265_v6  ;;  %489 = vmatpush.msrb.mxu3 %v266_v7  ;;  %v122_v44 = vld [vmem:[%s9643_s1 + $0x2b8] sm:$0xff]  ;;  %v103_v45 = vld [vmem:[%s9643_s1 + $0x220] sm:$0xff]  ;;  %v104_v46 = vld [vmem:[%s9643_s1 + $0x228] sm:$0xff] }
  0x26   :  { %421 = vmatpush.msrb.mxu0 %v247_v8  ;;  %444 = vmatpush.msrb.mxu1 %v248_v9 }
  0x27   :  { %467 = vmatpush.msrb.mxu2 %v249_v10  ;;  %490 = vmatpush.msrb.mxu3 %v250_v11 }
  0x28   :  { %422 = vmatpush.msrb.mxu0 %v231_v12  ;;  %445 = vmatpush.msrb.mxu1 %v232_v13 }
  0x29   :  { %468 = vmatpush.msrb.mxu2 %v233_v14  ;;  %491 = vmatpush.msrb.mxu3 %v234_v15 }
  0x2a   :  { %423 = vmatpush.msrb.mxu0 %v215_v16  ;;  %446 = vmatpush.msrb.mxu1 %v216_v17 }
  0x2b   :  { %469 = vmatpush.msrb.mxu2 %v217_v18  ;;  %492 = vmatpush.msrb.mxu3 %v218_v19 }
  0x2c   :  { %424 = vmatpush.msrb.mxu0 %v199_v20  ;;  %447 = vmatpush.msrb.mxu1 %v200_v21 }
  0x2d   :  { %470 = vmatpush.msrb.mxu2 %v201_v22  ;;  %493 = vmatpush.msrb.mxu3 %v202_v23 }
  0x2e   :  { %425 = vmatpush.msrb.mxu0 %v183_v24  ;;  %448 = vmatpush.msrb.mxu1 %v184_v25 }
  0x2f   :  { %471 = vmatpush.msrb.mxu2 %v185_v26  ;;  %494 = vmatpush.msrb.mxu3 %v186_v27 }
  0x30   :  { %426 = vmatpush.msrb.mxu0 %v167_v28  ;;  %449 = vmatpush.msrb.mxu1 %v168_v29 }
  0x31   :  { %472 = vmatpush.msrb.mxu2 %v169_v30  ;;  %495 = vmatpush.msrb.mxu3 %v170_v31 }
  0x32   :  { %389 = vmatmul.f32.vlgmr.msra.gmra.mxu2 %v4438_v32  ;;  %427 = vmatpush.msrb.mxu0 %v151_v33 }
  0x33   :  { %450 = vmatpush.msrb.mxu1 %v152_v34  ;;  %473 = vmatpush.msrb.mxu2 %v153_v35 }
  0x34   :  { %496 = vmatpush.msrb.mxu3 %v154_v36  ;;  %428 = vmatpush.msrb.mxu0 %v135_v37 }
  0x35   :  { %412 = vmatmul.f32.vlgmr.msra.gmra.mxu3 %v4438_v32  ;;  %451 = vmatpush.msrb.mxu1 %v136_v38 }
  0x36   :  { %474 = vmatpush.msrb.mxu2 %v137_v39  ;;  %497 = vmatpush.msrb.mxu3 %v138_v40 }
  0x37   :  { %343 = vmatmul.f32.vlgmr.msra.gmra.mxu0 %v4438_v32  ;;  %452 = vmatpush.msrb.mxu1 %v120_v41 }
  0x38   :  { %14 = vsyncpa [#allocation3], 0  ;;  %429 = vmatpush.msrb.mxu0 %v119_v42  ;;  %475 = vmatpush.msrb.mxu2 %v121_v43  ;;  %v105_v47 = vld [vmem:[%s9643_s1 + $0x230] sm:$0xff]  ;;  %v106_v48 = vld [vmem:[%s9643_s1 + $0x238] sm:$0xff]  ;;  %s4094_s12 = smov [#allocation2]   ;;  %s4096_s14 = smov 8  }
  0x39   :  { %498 = vmatpush.msrb.mxu3 %v122_v44  ;;  %366 = vmatmul.f32.vlgmr.msra.gmra.mxu1 %v4438_v32  ;;  %v4495_v49 = vld [vmem:[%s9642_s0 + $0x8] sm:$0xff]  ;;  %v87_v50 = vld [vmem:[%s9643_s1 + $0x1a0] sm:$0xff]  ;;  %v89_v52 = vld [vmem:[%s9643_s1 + $0x1b0] sm:$0xff]  ;;  %s4049_s13 = sshll.u32 %s4094_s12, 4  ;;  %s4050_s13 = int_to_ptr.vmem [resolvable:$true] %s4049_s13 }
  0x3a   :  { %430 = vmatpush.msrb.mxu0 %v103_v45  ;;  %453 = vmatpush.msrb.mxu1 %v104_v46  ;;  %v88_v51 = vld [vmem:[%s9643_s1 + $0x1a8] sm:$0xff]  ;;  %v90_v53 = vld [vmem:[%s9643_s1 + $0x1b8] sm:$0xff]  ;;  %v71_v54 = vld [vmem:[%s9643_s1 + $0x120] sm:$0xff] }
  0x3b   :  { %476 = vmatpush.msrb.mxu2 %v105_v47  ;;  %499 = vmatpush.msrb.mxu3 %v106_v48  ;;  %v72_v55 = vld [vmem:[%s9643_s1 + $0x128] sm:$0xff]  ;;  %v73_v56 = vld [vmem:[%s9643_s1 + $0x130] sm:$0xff]  ;;  %v74_v57 = vld [vmem:[%s9643_s1 + $0x138] sm:$0xff] }
  0x3c   :  { %392 = vmatmul.f32.gmra.mxu2 %v4495_v49  ;;  %431 = vmatpush.msrb.mxu0 %v87_v50  ;;  %v56_v58 = vld [vmem:[%s9643_s1 + $0xa8] sm:$0xff]  ;;  %v55_v59 = vld [vmem:[%s9643_s1 + $0xa0] sm:$0xff]  ;;  %v57_v60 = vld [vmem:[%s9643_s1 + $0xb0] sm:$0xff] }
  0x3d   :  { %454 = vmatpush.msrb.mxu1 %v88_v51  ;;  %477 = vmatpush.msrb.mxu2 %v89_v52  ;;  %v58_v61 = vld [vmem:[%s9643_s1 + $0xb8] sm:$0xff]  ;;  %v39_v62 = vld [vmem:[%s9643_s1 + $0x20] sm:$0xff]  ;;  %v40_v63 = vld [vmem:[%s9643_s1 + $0x28] sm:$0xff] }
  0x3e   :  { %500 = vmatpush.msrb.mxu3 %v90_v53  ;;  %432 = vmatpush.msrb.mxu0 %v71_v54  ;;  %v41_v0 = vld [vmem:[%s9643_s1 + $0x30] sm:$0xff]  ;;  %v42_v1 = vld [vmem:[%s9643_s1 + $0x38] sm:$0xff]  ;;  %v283_v2 = vld [vmem:[%s9643_s1 + $0x7c0] sm:$0xff] }
  0x3f   :  { %415 = vmatmul.f32.gmra.mxu3 %v4495_v49  ;;  %455 = vmatpush.msrb.mxu1 %v72_v55  ;;  %v284_v3 = vld [vmem:[%s9643_s1 + $0x7c8] sm:$0xff]  ;;  %v285_v4 = vld [vmem:[%s9643_s1 + $0x7d0] sm:$0xff]  ;;  %v286_v5 = vld [vmem:[%s9643_s1 + $0x7d8] sm:$0xff] }
  0x40   :  { %478 = vmatpush.msrb.mxu2 %v73_v56  ;;  %501 = vmatpush.msrb.mxu3 %v74_v57  ;;  %v267_v6 = vld [vmem:[%s9643_s1 + $0x740] sm:$0xff]  ;;  %v268_v7 = vld [vmem:[%s9643_s1 + $0x748] sm:$0xff]  ;;  %v269_v8 = vld [vmem:[%s9643_s1 + $0x750] sm:$0xff] }
  0x41   :  { %346 = vmatmul.f32.gmra.mxu0 %v4495_v49  ;;  %456 = vmatpush.msrb.mxu1 %v56_v58  ;;  %v270_v9 = vld [vmem:[%s9643_s1 + $0x758] sm:$0xff]  ;;  %v252_v10 = vld [vmem:[%s9643_s1 + $0x6c8] sm:$0xff]  ;;  %v251_v11 = vld [vmem:[%s9643_s1 + $0x6c0] sm:$0xff] }
  0x42   :  { %433 = vmatpush.msrb.mxu0 %v55_v59  ;;  %479 = vmatpush.msrb.mxu2 %v57_v60  ;;  %v253_v12 = vld [vmem:[%s9643_s1 + $0x6d0] sm:$0xff]  ;;  %v254_v13 = vld [vmem:[%s9643_s1 + $0x6d8] sm:$0xff]  ;;  %v235_v14 = vld [vmem:[%s9643_s1 + $0x640] sm:$0xff] }
  0x43   :  { %502 = vmatpush.msrb.mxu3 %v58_v61  ;;  %369 = vmatmul.f32.gmra.mxu1 %v4495_v49  ;;  %v236_v15 = vld [vmem:[%s9643_s1 + $0x648] sm:$0xff]  ;;  %v237_v16 = vld [vmem:[%s9643_s1 + $0x650] sm:$0xff]  ;;  %v238_v17 = vld [vmem:[%s9643_s1 + $0x658] sm:$0xff] }
  0x44   :  { %434 = vmatpush.msrb.mxu0 %v39_v62  ;;  %457 = vmatpush.msrb.mxu1 %v40_v63  ;;  %v219_v18 = vld [vmem:[%s9643_s1 + $0x5c0] sm:$0xff]  ;;  %v220_v19 = vld [vmem:[%s9643_s1 + $0x5c8] sm:$0xff]  ;;  %v221_v20 = vld [vmem:[%s9643_s1 + $0x5d0] sm:$0xff] }
  0x45   :  { %480 = vmatpush.msrb.mxu2 %v41_v0  ;;  %503 = vmatpush.msrb.mxu3 %v42_v1  ;;  %v222_v21 = vld [vmem:[%s9643_s1 + $0x5d8] sm:$0xff]  ;;  %v203_v22 = vld [vmem:[%s9643_s1 + $0x540] sm:$0xff]  ;;  %v204_v23 = vld [vmem:[%s9643_s1 + $0x548] sm:$0xff] }
  0x46   :  { %481 = vmatmul.f32.vlgmr.msrb.gmra.mxu2 %v4438_v32  ;;  %511 = vmatpush.msra.mxu0 %v283_v2  ;;  %v205_v24 = vld [vmem:[%s9643_s1 + $0x550] sm:$0xff]  ;;  %v206_v25 = vld [vmem:[%s9643_s1 + $0x558] sm:$0xff]  ;;  %v187_v26 = vld [vmem:[%s9643_s1 + $0x4c0] sm:$0xff] }
  0x47   :  { %534 = vmatpush.msra.mxu1 %v284_v3  ;;  %557 = vmatpush.msra.mxu2 %v285_v4  ;;  %v188_v27 = vld [vmem:[%s9643_s1 + $0x4c8] sm:$0xff]  ;;  %v189_v28 = vld [vmem:[%s9643_s1 + $0x4d0] sm:$0xff]  ;;  %v190_v29 = vld [vmem:[%s9643_s1 + $0x4d8] sm:$0xff] }
  0x48   :  { %580 = vmatpush.msra.mxu3 %v286_v5  ;;  %512 = vmatpush.msra.mxu0 %v267_v6  ;;  %v171_v30 = vld [vmem:[%s9643_s1 + $0x440] sm:$0xff]  ;;  %v172_v31 = vld [vmem:[%s9643_s1 + $0x448] sm:$0xff]  ;;  %v173_v33 = vld [vmem:[%s9643_s1 + $0x450] sm:$0xff] }
  0x49   :  { %504 = vmatmul.f32.vlgmr.msrb.gmra.mxu3 %v4438_v32  ;;  %535 = vmatpush.msra.mxu1 %v268_v7  ;;  %v174_v34 = vld [vmem:[%s9643_s1 + $0x458] sm:$0xff]  ;;  %v155_v35 = vld [vmem:[%s9643_s1 + $0x3c0] sm:$0xff]  ;;  %v156_v36 = vld [vmem:[%s9643_s1 + $0x3c8] sm:$0xff] }
  0x4a   :  { %558 = vmatpush.msra.mxu2 %v269_v8  ;;  %581 = vmatpush.msra.mxu3 %v270_v9  ;;  %v157_v37 = vld [vmem:[%s9643_s1 + $0x3d0] sm:$0xff]  ;;  %v158_v38 = vld [vmem:[%s9643_s1 + $0x3d8] sm:$0xff]  ;;  %v139_v39 = vld [vmem:[%s9643_s1 + $0x340] sm:$0xff] }
  0x4b   :  { %435 = vmatmul.f32.vlgmr.msrb.gmra.mxu0 %v4438_v32  ;;  %536 = vmatpush.msra.mxu1 %v252_v10  ;;  %v140_v40 = vld [vmem:[%s9643_s1 + $0x348] sm:$0xff]  ;;  %v141_v41 = vld [vmem:[%s9643_s1 + $0x350] sm:$0xff]  ;;  %v142_v42 = vld [vmem:[%s9643_s1 + $0x358] sm:$0xff] }
  0x4c   :  { %513 = vmatpush.msra.mxu0 %v251_v11  ;;  %559 = vmatpush.msra.mxu2 %v253_v12  ;;  %v123_v43 = vld [vmem:[%s9643_s1 + $0x2c0] sm:$0xff]  ;;  %v124_v44 = vld [vmem:[%s9643_s1 + $0x2c8] sm:$0xff]  ;;  %v125_v45 = vld [vmem:[%s9643_s1 + $0x2d0] sm:$0xff] }
  0x4d   :  { %582 = vmatpush.msra.mxu3 %v254_v13  ;;  %458 = vmatmul.f32.vlgmr.msrb.gmra.mxu1 %v4438_v32  ;;  %v126_v46 = vld [vmem:[%s9643_s1 + $0x2d8] sm:$0xff]  ;;  %v107_v47 = vld [vmem:[%s9643_s1 + $0x240] sm:$0xff]  ;;  %v108_v48 = vld [vmem:[%s9643_s1 + $0x248] sm:$0xff] }
  0x4e   :  { %514 = vmatpush.msra.mxu0 %v235_v14  ;;  %537 = vmatpush.msra.mxu1 %v236_v15  ;;  %v109_v50 = vld [vmem:[%s9643_s1 + $0x250] sm:$0xff]  ;;  %v110_v51 = vld [vmem:[%s9643_s1 + $0x258] sm:$0xff]  ;;  %v92_v52 = vld [vmem:[%s9643_s1 + $0x1c8] sm:$0xff] }
  0x4f   :  { %560 = vmatpush.msra.mxu2 %v237_v16  ;;  %583 = vmatpush.msra.mxu3 %v238_v17  ;;  %v91_v53 = vld [vmem:[%s9643_s1 + $0x1c0] sm:$0xff]  ;;  %v93_v54 = vld [vmem:[%s9643_s1 + $0x1d0] sm:$0xff]  ;;  %v94_v55 = vld [vmem:[%s9643_s1 + $0x1d8] sm:$0xff] }
  0x50   :  { %515 = vmatpush.msra.mxu0 %v219_v18  ;;  %538 = vmatpush.msra.mxu1 %v220_v19  ;;  %v75_v56 = vld [vmem:[%s9643_s1 + $0x140] sm:$0xff]  ;;  %v76_v57 = vld [vmem:[%s9643_s1 + $0x148] sm:$0xff]  ;;  %v77_v58 = vld [vmem:[%s9643_s1 + $0x150] sm:$0xff] }
  0x51   :  { %561 = vmatpush.msra.mxu2 %v221_v20  ;;  %584 = vmatpush.msra.mxu3 %v222_v21  ;;  %v78_v59 = vld [vmem:[%s9643_s1 + $0x158] sm:$0xff]  ;;  %v59_v60 = vld [vmem:[%s9643_s1 + $0xc0] sm:$0xff]  ;;  %v60_v61 = vld [vmem:[%s9643_s1 + $0xc8] sm:$0xff] }
  0x52   :  { %516 = vmatpush.msra.mxu0 %v203_v22  ;;  %539 = vmatpush.msra.mxu1 %v204_v23  ;;  %v61_v62 = vld [vmem:[%s9643_s1 + $0xd0] sm:$0xff]  ;;  %v62_v63 = vld [vmem:[%s9643_s1 + $0xd8] sm:$0xff]  ;;  %v43_v0 = vld [vmem:[%s9643_s1 + $0x40] sm:$0xff] }
  0x53   :  { %562 = vmatpush.msra.mxu2 %v205_v24  ;;  %585 = vmatpush.msra.mxu3 %v206_v25  ;;  %v44_v1 = vld [vmem:[%s9643_s1 + $0x48] sm:$0xff]  ;;  %v45_v2 = vld [vmem:[%s9643_s1 + $0x50] sm:$0xff]  ;;  %v46_v3 = vld [vmem:[%s9643_s1 + $0x58] sm:$0xff] }
  0x54   :  { %517 = vmatpush.msra.mxu0 %v187_v26  ;;  %540 = vmatpush.msra.mxu1 %v188_v27  ;;  %v287_v4 = vld [vmem:[%s9643_s1 + $0x7e0] sm:$0xff]  ;;  %v288_v5 = vld [vmem:[%s9643_s1 + $0x7e8] sm:$0xff]  ;;  %v289_v6 = vld [vmem:[%s9643_s1 + $0x7f0] sm:$0xff] }
  0x55   :  { %563 = vmatpush.msra.mxu2 %v189_v28  ;;  %586 = vmatpush.msra.mxu3 %v190_v29  ;;  %v290_v7 = vld [vmem:[%s9643_s1 + $0x7f8] sm:$0xff]  ;;  %v271_v8 = vld [vmem:[%s9643_s1 + $0x760] sm:$0xff]  ;;  %v272_v9 = vld [vmem:[%s9643_s1 + $0x768] sm:$0xff] }
  0x56   :  { %518 = vmatpush.msra.mxu0 %v171_v30  ;;  %541 = vmatpush.msra.mxu1 %v172_v31  ;;  %v273_v10 = vld [vmem:[%s9643_s1 + $0x770] sm:$0xff]  ;;  %v274_v11 = vld [vmem:[%s9643_s1 + $0x778] sm:$0xff]  ;;  %v255_v12 = vld [vmem:[%s9643_s1 + $0x6e0] sm:$0xff] }
  0x57   :  { %564 = vmatpush.msra.mxu2 %v173_v33  ;;  %587 = vmatpush.msra.mxu3 %v174_v34  ;;  %v256_v13 = vld [vmem:[%s9643_s1 + $0x6e8] sm:$0xff]  ;;  %v257_v14 = vld [vmem:[%s9643_s1 + $0x6f0] sm:$0xff]  ;;  %v258_v15 = vld [vmem:[%s9643_s1 + $0x6f8] sm:$0xff] }
  0x58   :  { %519 = vmatpush.msra.mxu0 %v155_v35  ;;  %542 = vmatpush.msra.mxu1 %v156_v36  ;;  %v239_v16 = vld [vmem:[%s9643_s1 + $0x660] sm:$0xff]  ;;  %v240_v17 = vld [vmem:[%s9643_s1 + $0x668] sm:$0xff]  ;;  %v241_v18 = vld [vmem:[%s9643_s1 + $0x670] sm:$0xff] }
  0x59   :  { %565 = vmatpush.msra.mxu2 %v157_v37  ;;  %588 = vmatpush.msra.mxu3 %v158_v38  ;;  %v242_v19 = vld [vmem:[%s9643_s1 + $0x678] sm:$0xff]  ;;  %v223_v20 = vld [vmem:[%s9643_s1 + $0x5e0] sm:$0xff]  ;;  %v224_v21 = vld [vmem:[%s9643_s1 + $0x5e8] sm:$0xff] }
  0x5a   :  { %520 = vmatpush.msra.mxu0 %v139_v39  ;;  %543 = vmatpush.msra.mxu1 %v140_v40  ;;  %v225_v22 = vld [vmem:[%s9643_s1 + $0x5f0] sm:$0xff]  ;;  %v226_v23 = vld [vmem:[%s9643_s1 + $0x5f8] sm:$0xff]  ;;  %v207_v24 = vld [vmem:[%s9643_s1 + $0x560] sm:$0xff] }
  0x5b   :  { %566 = vmatpush.msra.mxu2 %v141_v41  ;;  %589 = vmatpush.msra.mxu3 %v142_v42  ;;  %v208_v25 = vld [vmem:[%s9643_s1 + $0x568] sm:$0xff]  ;;  %v209_v26 = vld [vmem:[%s9643_s1 + $0x570] sm:$0xff]  ;;  %v210_v27 = vld [vmem:[%s9643_s1 + $0x578] sm:$0xff] }
  0x5c   :  { %484 = vmatmul.f32.gmra.mxu2 %v4495_v49  ;;  %521 = vmatpush.msra.mxu0 %v123_v43  ;;  %v191_v28 = vld [vmem:[%s9643_s1 + $0x4e0] sm:$0xff]  ;;  %v192_v29 = vld [vmem:[%s9643_s1 + $0x4e8] sm:$0xff]  ;;  %v193_v30 = vld [vmem:[%s9643_s1 + $0x4f0] sm:$0xff] }
  0x5d   :  { %544 = vmatpush.msra.mxu1 %v124_v44  ;;  %567 = vmatpush.msra.mxu2 %v125_v45  ;;  %v194_v31 = vld [vmem:[%s9643_s1 + $0x4f8] sm:$0xff]  ;;  %v175_v33 = vld [vmem:[%s9643_s1 + $0x460] sm:$0xff]  ;;  %v176_v34 = vld [vmem:[%s9643_s1 + $0x468] sm:$0xff] }
  0x5e   :  { %590 = vmatpush.msra.mxu3 %v126_v46  ;;  %522 = vmatpush.msra.mxu0 %v107_v47  ;;  %v177_v35 = vld [vmem:[%s9643_s1 + $0x470] sm:$0xff]  ;;  %v178_v36 = vld [vmem:[%s9643_s1 + $0x478] sm:$0xff]  ;;  %v159_v37 = vld [vmem:[%s9643_s1 + $0x3e0] sm:$0xff] }
  0x5f   :  { %507 = vmatmul.f32.gmra.mxu3 %v4495_v49  ;;  %545 = vmatpush.msra.mxu1 %v108_v48  ;;  %v160_v38 = vld [vmem:[%s9643_s1 + $0x3e8] sm:$0xff]  ;;  %v161_v39 = vld [vmem:[%s9643_s1 + $0x3f0] sm:$0xff]  ;;  %v162_v40 = vld [vmem:[%s9643_s1 + $0x3f8] sm:$0xff] }
  0x60   :  { %568 = vmatpush.msra.mxu2 %v109_v50  ;;  %591 = vmatpush.msra.mxu3 %v110_v51  ;;  %v143_v41 = vld [vmem:[%s9643_s1 + $0x360] sm:$0xff]  ;;  %v144_v42 = vld [vmem:[%s9643_s1 + $0x368] sm:$0xff]  ;;  %v145_v43 = vld [vmem:[%s9643_s1 + $0x370] sm:$0xff] }
  0x61   :  { %438 = vmatmul.f32.gmra.mxu0 %v4495_v49  ;;  %546 = vmatpush.msra.mxu1 %v92_v52  ;;  %v146_v44 = vld [vmem:[%s9643_s1 + $0x378] sm:$0xff]  ;;  %v127_v45 = vld [vmem:[%s9643_s1 + $0x2e0] sm:$0xff]  ;;  %v128_v46 = vld [vmem:[%s9643_s1 + $0x2e8] sm:$0xff] }
  0x62   :  { %523 = vmatpush.msra.mxu0 %v91_v53  ;;  %569 = vmatpush.msra.mxu2 %v93_v54  ;;  %v129_v47 = vld [vmem:[%s9643_s1 + $0x2f0] sm:$0xff]  ;;  %v130_v48 = vld [vmem:[%s9643_s1 + $0x2f8] sm:$0xff]  ;;  %v111_v50 = vld [vmem:[%s9643_s1 + $0x260] sm:$0xff] }
  0x63   :  { %592 = vmatpush.msra.mxu3 %v94_v55  ;;  %461 = vmatmul.f32.gmra.mxu1 %v4495_v49  ;;  %v112_v51 = vld [vmem:[%s9643_s1 + $0x268] sm:$0xff]  ;;  %v113_v52 = vld [vmem:[%s9643_s1 + $0x270] sm:$0xff]  ;;  %v114_v53 = vld [vmem:[%s9643_s1 + $0x278] sm:$0xff] }
  0x64   :  { %524 = vmatpush.msra.mxu0 %v75_v56  ;;  %547 = vmatpush.msra.mxu1 %v76_v57  ;;  %v95_v54 = vld [vmem:[%s9643_s1 + $0x1e0] sm:$0xff]  ;;  %v96_v55 = vld [vmem:[%s9643_s1 + $0x1e8] sm:$0xff]  ;;  %v97_v56 = vld [vmem:[%s9643_s1 + $0x1f0] sm:$0xff] }
  0x65   :  { %570 = vmatpush.msra.mxu2 %v77_v58  ;;  %593 = vmatpush.msra.mxu3 %v78_v59  ;;  %v98_v57 = vld [vmem:[%s9643_s1 + $0x1f8] sm:$0xff]  ;;  %v79_v58 = vld [vmem:[%s9643_s1 + $0x160] sm:$0xff]  ;;  %v80_v59 = vld [vmem:[%s9643_s1 + $0x168] sm:$0xff] }
  0x66   :  { %525 = vmatpush.msra.mxu0 %v59_v60  ;;  %548 = vmatpush.msra.mxu1 %v60_v61  ;;  %v81_v60 = vld [vmem:[%s9643_s1 + $0x170] sm:$0xff]  ;;  %v82_v61 = vld [vmem:[%s9643_s1 + $0x178] sm:$0xff] }
  0x67   :  { %571 = vmatpush.msra.mxu2 %v61_v62  ;;  %594 = vmatpush.msra.mxu3 %v62_v63  ;;  %v63_v62 = vld [vmem:[%s9643_s1 + $0xe0] sm:$0xff]  ;;  %v64_v63 = vld [vmem:[%s9643_s1 + $0xe8] sm:$0xff] }
  0x68   :  { %526 = vmatpush.msra.mxu0 %v43_v0  ;;  %549 = vmatpush.msra.mxu1 %v44_v1  ;;  %v65_v0 = vld [vmem:[%s9643_s1 + $0xf0] sm:$0xff]  ;;  %v66_v1 = vld [vmem:[%s9643_s1 + $0xf8] sm:$0xff] }
  0x69   :  { %572 = vmatpush.msra.mxu2 %v45_v2  ;;  %595 = vmatpush.msra.mxu3 %v46_v3  ;;  %v47_v2 = vld [vmem:[%s9643_s1 + $0x60] sm:$0xff]  ;;  %v48_v3 = vld [vmem:[%s9643_s1 + $0x68] sm:$0xff] }
  0x6a   :  { %527 = vmatmul.f32.vlgmr.msra.gmra.mxu0 %v4438_v32  ;;  %573 = vmatmul.f32.vlgmr.msra.gmra.mxu2 %v4438_v32 }
  0x6b   :  { %603 = vmatpush.msrb.mxu0 %v287_v4  ;;  %626 = vmatpush.msrb.mxu1 %v288_v5  ;;  %v49_v4 = vld [vmem:[%s9643_s1 + $0x70] sm:$0xff]  ;;  %v50_v5 = vld [vmem:[%s9643_s1 + $0x78] sm:$0xff]  ;;  %s4051_s1 = sshll.u32 %s9651_s9, 4  ;;  %s4052_s1 = int_to_ptr.hbm [resolvable:$true] %s4051_s1 }
  0x6c   :  { %649 = vmatpush.msrb.mxu2 %v289_v6  ;;  %672 = vmatpush.msrb.mxu3 %v290_v7  ;;  %v787_v6 = vld [vmem:[%s9645_s3 + $0x1e0] sm:$0xff] }
  0x6d   :  { %550 = vmatmul.f32.vlgmr.msra.gmra.mxu1 %v4438_v32  ;;  %596 = vmatmul.f32.vlgmr.msra.gmra.mxu3 %v4438_v32  ;;  %v851_v7 = vld [vmem:[%s9645_s3 + $0x3e0] sm:$0xff] }
  0x6e   :  { %604 = vmatpush.msrb.mxu0 %v271_v8  ;;  %627 = vmatpush.msrb.mxu1 %v272_v9  ;;  %v915_v8 = vld [vmem:[%s9645_s3 + $0x5e0] sm:$0xff] }
  0x6f   :  { %650 = vmatpush.msrb.mxu2 %v273_v10  ;;  %673 = vmatpush.msrb.mxu3 %v274_v11  ;;  %v979_v9 = vld [vmem:[%s9645_s3 + $0x7e0] sm:$0xff] }
  0x70   :  { %605 = vmatpush.msrb.mxu0 %v255_v12  ;;  %628 = vmatpush.msrb.mxu1 %v256_v13  ;;  %v783_v10 = vld [vmem:[%s9645_s3 + $0x1c0] sm:$0xff] }
  0x71   :  { %651 = vmatpush.msrb.mxu2 %v257_v14  ;;  %674 = vmatpush.msrb.mxu3 %v258_v15  ;;  %v847_v11 = vld [vmem:[%s9645_s3 + $0x3c0] sm:$0xff] }
  0x72   :  { %606 = vmatpush.msrb.mxu0 %v239_v16  ;;  %629 = vmatpush.msrb.mxu1 %v240_v17  ;;  %v911_v12 = vld [vmem:[%s9645_s3 + $0x5c0] sm:$0xff] }
  0x73   :  { %652 = vmatpush.msrb.mxu2 %v241_v18  ;;  %675 = vmatpush.msrb.mxu3 %v242_v19  ;;  %v975_v13 = vld [vmem:[%s9645_s3 + $0x7c0] sm:$0xff] }
  0x74   :  { %530 = vmatmul.f32.gmra.mxu0 %v4495_v49  ;;  %576 = vmatmul.f32.gmra.mxu2 %v4495_v49  ;;  %v779_v14 = vld [vmem:[%s9645_s3 + $0x1a0] sm:$0xff] }
  0x75   :  { %607 = vmatpush.msrb.mxu0 %v223_v20  ;;  %630 = vmatpush.msrb.mxu1 %v224_v21  ;;  %v843_v15 = vld [vmem:[%s9645_s3 + $0x3a0] sm:$0xff] }
  0x76   :  { %653 = vmatpush.msrb.mxu2 %v225_v22  ;;  %676 = vmatpush.msrb.mxu3 %v226_v23  ;;  %v907_v16 = vld [vmem:[%s9645_s3 + $0x5a0] sm:$0xff] }
  0x77   :  { %553 = vmatmul.f32.gmra.mxu1 %v4495_v49  ;;  %599 = vmatmul.f32.gmra.mxu3 %v4495_v49  ;;  %v971_v17 = vld [vmem:[%s9645_s3 + $0x7a0] sm:$0xff] }
  0x78   :  { %608 = vmatpush.msrb.mxu0 %v207_v24  ;;  %631 = vmatpush.msrb.mxu1 %v208_v25  ;;  %v839_v18 = vld [vmem:[%s9645_s3 + $0x380] sm:$0xff] }
  0x79   :  { %654 = vmatpush.msrb.mxu2 %v209_v26  ;;  %677 = vmatpush.msrb.mxu3 %v210_v27  ;;  %v903_v19 = vld [vmem:[%s9645_s3 + $0x580] sm:$0xff] }
  0x7a   :  { %609 = vmatpush.msrb.mxu0 %v191_v28  ;;  %632 = vmatpush.msrb.mxu1 %v192_v29  ;;  %v967_v20 = vld [vmem:[%s9645_s3 + $0x780] sm:$0xff] }
  0x7b   :  { %655 = vmatpush.msrb.mxu2 %v193_v30  ;;  %678 = vmatpush.msrb.mxu3 %v194_v31  ;;  %v771_v21 = vld [vmem:[%s9645_s3 + $0x160] sm:$0xff] }
  0x7c   :  { %610 = vmatpush.msrb.mxu0 %v175_v33  ;;  %633 = vmatpush.msrb.mxu1 %v176_v34  ;;  %v835_v22 = vld [vmem:[%s9645_s3 + $0x360] sm:$0xff] }
  0x7d   :  { %656 = vmatpush.msrb.mxu2 %v177_v35  ;;  %679 = vmatpush.msrb.mxu3 %v178_v36  ;;  %v899_v23 = vld [vmem:[%s9645_s3 + $0x560] sm:$0xff] }
  0x7e   :  { %611 = vmatpush.msrb.mxu0 %v159_v37  ;;  %634 = vmatpush.msrb.mxu1 %v160_v38  ;;  %v963_v24 = vld [vmem:[%s9645_s3 + $0x760] sm:$0xff] }
  0x7f   :  { %657 = vmatpush.msrb.mxu2 %v161_v39  ;;  %680 = vmatpush.msrb.mxu3 %v162_v40  ;;  %v767_v25 = vld [vmem:[%s9645_s3 + $0x140] sm:$0xff] }
  0x80   :  { %612 = vmatpush.msrb.mxu0 %v143_v41  ;;  %635 = vmatpush.msrb.mxu1 %v144_v42  ;;  %v831_v26 = vld [vmem:[%s9645_s3 + $0x340] sm:$0xff] }
  0x81   :  { %658 = vmatpush.msrb.mxu2 %v145_v43  ;;  %681 = vmatpush.msrb.mxu3 %v146_v44  ;;  %v895_v27 = vld [vmem:[%s9645_s3 + $0x540] sm:$0xff] }
  0x82   :  { %613 = vmatpush.msrb.mxu0 %v127_v45  ;;  %636 = vmatpush.msrb.mxu1 %v128_v46  ;;  %v959_v28 = vld [vmem:[%s9645_s3 + $0x740] sm:$0xff] }
  0x83   :  { %659 = vmatpush.msrb.mxu2 %v129_v47  ;;  %682 = vmatpush.msrb.mxu3 %v130_v48  ;;  %v763_v29 = vld [vmem:[%s9645_s3 + $0x120] sm:$0xff] }
  0x84   :  { %614 = vmatpush.msrb.mxu0 %v111_v50  ;;  %637 = vmatpush.msrb.mxu1 %v112_v51  ;;  %v827_v30 = vld [vmem:[%s9645_s3 + $0x320] sm:$0xff] }
  0x85   :  { %660 = vmatpush.msrb.mxu2 %v113_v52  ;;  %683 = vmatpush.msrb.mxu3 %v114_v53  ;;  %v891_v31 = vld [vmem:[%s9645_s3 + $0x520] sm:$0xff] }
  0x86   :  { %615 = vmatpush.msrb.mxu0 %v95_v54  ;;  %638 = vmatpush.msrb.mxu1 %v96_v55  ;;  %v955_v33 = vld [vmem:[%s9645_s3 + $0x720] sm:$0xff] }
  0x87   :  { %661 = vmatpush.msrb.mxu2 %v97_v56  ;;  %684 = vmatpush.msrb.mxu3 %v98_v57  ;;  %v823_v34 = vld [vmem:[%s9645_s3 + $0x300] sm:$0xff] }
  0x88   :  { %616 = vmatpush.msrb.mxu0 %v79_v58  ;;  %639 = vmatpush.msrb.mxu1 %v80_v59  ;;  %v887_v35 = vld [vmem:[%s9645_s3 + $0x500] sm:$0xff] }
  0x89   :  { %662 = vmatpush.msrb.mxu2 %v81_v60  ;;  %685 = vmatpush.msrb.mxu3 %v82_v61  ;;  %v951_v36 = vld [vmem:[%s9645_s3 + $0x700] sm:$0xff] }
  0x8a   :  { %617 = vmatpush.msrb.mxu0 %v63_v62  ;;  %640 = vmatpush.msrb.mxu1 %v64_v63  ;;  %v755_v37 = vld [vmem:[%s9645_s3 + $0xe0] sm:$0xff] }
  0x8b   :  { %663 = vmatpush.msrb.mxu2 %v65_v0  ;;  %686 = vmatpush.msrb.mxu3 %v66_v1  ;;  %v819_v38 = vld [vmem:[%s9645_s3 + $0x2e0] sm:$0xff] }
  0x8c   :  { %618 = vmatpush.msrb.mxu0 %v47_v2  ;;  %641 = vmatpush.msrb.mxu1 %v48_v3  ;;  %v883_v39 = vld [vmem:[%s9645_s3 + $0x4e0] sm:$0xff] }
  0x8d   :  { %664 = vmatpush.msrb.mxu2 %v49_v4  ;;  %687 = vmatpush.msrb.mxu3 %v50_v5  ;;  %v947_v40 = vld [vmem:[%s9645_s3 + $0x6e0] sm:$0xff] }
  0x8e   :  { %619 = vmatmul.f32.vlgmr.msrb.gmra.mxu0 %v4438_v32  ;;  %665 = vmatmul.f32.vlgmr.msrb.gmra.mxu2 %v4438_v32  ;;  %v751_v41 = vld [vmem:[%s9645_s3 + $0xc0] sm:$0xff] }
  0x8f   :  { %1761 = vmatpush.msra.mxu0 %v787_v6  ;;  %1784 = vmatpush.msra.mxu1 %v851_v7  ;;  %v815_v42 = vld [vmem:[%s9645_s3 + $0x2c0] sm:$0xff] }
  0x90   :  { %1807 = vmatpush.msra.mxu2 %v915_v8  ;;  %1830 = vmatpush.msra.mxu3 %v979_v9  ;;  %v879_v43 = vld [vmem:[%s9645_s3 + $0x4c0] sm:$0xff] }
  0x91   :  { %642 = vmatmul.f32.vlgmr.msrb.gmra.mxu1 %v4438_v32  ;;  %688 = vmatmul.f32.vlgmr.msrb.gmra.mxu3 %v4438_v32  ;;  %v775_v32 = vld [vmem:[%s9645_s3 + $0x180] sm:$0xff] }
  0x92   :  { %1762 = vmatpush.msra.mxu0 %v783_v10  ;;  %1785 = vmatpush.msra.mxu1 %v847_v11  ;;  %v943_v44 = vld [vmem:[%s9645_s3 + $0x6c0] sm:$0xff] }
  0x93   :  { %1808 = vmatpush.msra.mxu2 %v911_v12  ;;  %1831 = vmatpush.msra.mxu3 %v975_v13  ;;  %v747_v45 = vld [vmem:[%s9645_s3 + $0xa0] sm:$0xff] }
  0x94   :  { %1763 = vmatpush.msra.mxu0 %v779_v14  ;;  %1786 = vmatpush.msra.mxu1 %v843_v15  ;;  %v811_v46 = vld [vmem:[%s9645_s3 + $0x2a0] sm:$0xff] }
  0x95   :  { %1809 = vmatpush.msra.mxu2 %v907_v16  ;;  %1832 = vmatpush.msra.mxu3 %v971_v17  ;;  %v875_v47 = vld [vmem:[%s9645_s3 + $0x4a0] sm:$0xff] }
  0x96   :  { %1764 = vmatpush.msra.mxu0 %v775_v32  ;;  %1787 = vmatpush.msra.mxu1 %v839_v18  ;;  %v939_v48 = vld [vmem:[%s9645_s3 + $0x6a0] sm:$0xff] }
  0x97   :  { %1810 = vmatpush.msra.mxu2 %v903_v19  ;;  %1833 = vmatpush.msra.mxu3 %v967_v20  ;;  %v743_v50 = vld [vmem:[%s9645_s3 + $0x80] sm:$0xff] }
  0x98   :  { %622 = vmatmul.f32.gmra.mxu0 %v4495_v49  ;;  %668 = vmatmul.f32.gmra.mxu2 %v4495_v49  ;;  %v807_v51 = vld [vmem:[%s9645_s3 + $0x280] sm:$0xff] }
  0x99   :  { %1765 = vmatpush.msra.mxu0 %v771_v21  ;;  %1788 = vmatpush.msra.mxu1 %v835_v22  ;;  %v871_v52 = vld [vmem:[%s9645_s3 + $0x480] sm:$0xff] }
  0x9a   :  { %1811 = vmatpush.msra.mxu2 %v899_v23  ;;  %1834 = vmatpush.msra.mxu3 %v963_v24  ;;  %v935_v53 = vld [vmem:[%s9645_s3 + $0x680] sm:$0xff] }
  0x9b   :  { %645 = vmatmul.f32.gmra.mxu1 %v4495_v49  ;;  %691 = vmatmul.f32.gmra.mxu3 %v4495_v49  ;;  %v759_v49 = vld [vmem:[%s9645_s3 + $0x100] sm:$0xff] }
  0x9c   :  { %1766 = vmatpush.msra.mxu0 %v767_v25  ;;  %1789 = vmatpush.msra.mxu1 %v831_v26  ;;  %v739_v54 = vld [vmem:[%s9645_s3 + $0x60] sm:$0xff] }
  0x9d   :  { %1812 = vmatpush.msra.mxu2 %v895_v27  ;;  %1835 = vmatpush.msra.mxu3 %v959_v28  ;;  %v803_v55 = vld [vmem:[%s9645_s3 + $0x260] sm:$0xff] }
  0x9e   :  { %1767 = vmatpush.msra.mxu0 %v763_v29  ;;  %1790 = vmatpush.msra.mxu1 %v827_v30  ;;  %v867_v56 = vld [vmem:[%s9645_s3 + $0x460] sm:$0xff] }
  0x9f   :  { %1813 = vmatpush.msra.mxu2 %v891_v31  ;;  %1836 = vmatpush.msra.mxu3 %v955_v33  ;;  %v931_v57 = vld [vmem:[%s9645_s3 + $0x660] sm:$0xff] }
  0xa0   :  { %1768 = vmatpush.msra.mxu0 %v759_v49  ;;  %1791 = vmatpush.msra.mxu1 %v823_v34  ;;  %v735_v58 = vld [vmem:[%s9645_s3 + $0x40] sm:$0xff] }
  0xa1   :  { %1814 = vmatpush.msra.mxu2 %v887_v35  ;;  %1837 = vmatpush.msra.mxu3 %v951_v36  ;;  %v799_v59 = vld [vmem:[%s9645_s3 + $0x240] sm:$0xff] }
  0xa2   :  { %1769 = vmatpush.msra.mxu0 %v755_v37  ;;  %1792 = vmatpush.msra.mxu1 %v819_v38  ;;  %v863_v60 = vld [vmem:[%s9645_s3 + $0x440] sm:$0xff] }
  0xa3   :  { %1815 = vmatpush.msra.mxu2 %v883_v39  ;;  %1838 = vmatpush.msra.mxu3 %v947_v40  ;;  %v927_v61 = vld [vmem:[%s9645_s3 + $0x640] sm:$0xff] }
  0xa4   :  { %1770 = vmatpush.msra.mxu0 %v751_v41  ;;  %1793 = vmatpush.msra.mxu1 %v815_v42  ;;  %v731_v62 = vld [vmem:[%s9645_s3 + $0x20] sm:$0xff] }
  0xa5   :  { %1816 = vmatpush.msra.mxu2 %v879_v43  ;;  %1839 = vmatpush.msra.mxu3 %v943_v44  ;;  %v795_v63 = vld [vmem:[%s9645_s3 + $0x220] sm:$0xff] }
  0xa6   :  { %1771 = vmatpush.msra.mxu0 %v747_v45  ;;  %1794 = vmatpush.msra.mxu1 %v811_v46  ;;  %v859_v0 = vld [vmem:[%s9645_s3 + $0x420] sm:$0xff] }
  0xa7   :  { %1817 = vmatpush.msra.mxu2 %v875_v47  ;;  %1840 = vmatpush.msra.mxu3 %v939_v48  ;;  %v923_v1 = vld [vmem:[%s9645_s3 + $0x620] sm:$0xff] }
  0xa8   :  { %1772 = vmatpush.msra.mxu0 %v743_v50  ;;  %1795 = vmatpush.msra.mxu1 %v807_v51  ;;  %v727_v2 = vld [vmem:[%s9645_s3] sm:$0xff] }
  0xa9   :  { %1818 = vmatpush.msra.mxu2 %v871_v52  ;;  %1841 = vmatpush.msra.mxu3 %v935_v53  ;;  %v791_v3 = vld [vmem:[%s9645_s3 + $0x200] sm:$0xff] }
  0xaa   :  { %1773 = vmatpush.msra.mxu0 %v739_v54  ;;  %1796 = vmatpush.msra.mxu1 %v803_v55  ;;  %v855_v4 = vld [vmem:[%s9645_s3 + $0x400] sm:$0xff] }
  0xab   :  { %1819 = vmatpush.msra.mxu2 %v867_v56  ;;  %1842 = vmatpush.msra.mxu3 %v931_v57  ;;  %v919_v5 = vld [vmem:[%s9645_s3 + $0x600] sm:$0xff] }
  0xac   :  { %1774 = vmatpush.msra.mxu0 %v735_v58  ;;  %1797 = vmatpush.msra.mxu1 %v799_v59  ;;  %v1043_v6 = vld [vmem:[%s9645_s3 + $0x9e0] sm:$0xff] }
  0xad   :  { %1820 = vmatpush.msra.mxu2 %v863_v60  ;;  %1843 = vmatpush.msra.mxu3 %v927_v61  ;;  %v1107_v7 = vld [vmem:[%s9645_s3 + $0xbe0] sm:$0xff] }
  0xae   :  { %1775 = vmatpush.msra.mxu0 %v731_v62  ;;  %1798 = vmatpush.msra.mxu1 %v795_v63  ;;  %v1171_v8 = vld [vmem:[%s9645_s3 + $0xde0] sm:$0xff] }
  0xaf   :  { %1821 = vmatpush.msra.mxu2 %v859_v0  ;;  %1844 = vmatpush.msra.mxu3 %v923_v1  ;;  %v1235_v9 = vld [vmem:[%s9645_s3 + $0xfe0] sm:$0xff] }
  0xb0   :  { %1776 = vmatpush.msra.mxu0 %v727_v2  ;;  %1799 = vmatpush.msra.mxu1 %v791_v3  ;;  %v1039_v10 = vld [vmem:[%s9645_s3 + $0x9c0] sm:$0xff] }
  0xb1   :  { %1822 = vmatpush.msra.mxu2 %v855_v4  ;;  %1845 = vmatpush.msra.mxu3 %v919_v5  ;;  %v1103_v11 = vld [vmem:[%s9645_s3 + $0xbc0] sm:$0xff] }
  0xb2   :  { %1853 = vmatpush.msrb.mxu0 %v1043_v6  ;;  %1876 = vmatpush.msrb.mxu1 %v1107_v7  ;;  %v1167_v12 = vld [vmem:[%s9645_s3 + $0xdc0] sm:$0xff] }
  0xb3   :  { %v1231_v13 = vld [vmem:[%s9645_s3 + $0xfc0] sm:$0xff]  ;;  %1899 = vmatpush.msrb.mxu2 %v1171_v8  ;;  %1922 = vmatpush.msrb.mxu3 %v1235_v9 }
  0xb4   :  { %v1035_v14 = vld [vmem:[%s9645_s3 + $0x9a0] sm:$0xff]  ;;  %1854 = vmatpush.msrb.mxu0 %v1039_v10  ;;  %1877 = vmatpush.msrb.mxu1 %v1103_v11  ;;  %v344_v45 = vpop.f32.mrf.mxu0 }
  0xb5   :  { %v1099_v15 = vld [vmem:[%s9645_s3 + $0xba0] sm:$0xff]  ;;  %1900 = vmatpush.msrb.mxu2 %v1167_v12  ;;  %1923 = vmatpush.msrb.mxu3 %v1231_v13  ;;  %v390_v57 = vpop.f32.mrf.mxu2 }
  0xb6   :  { %v1163_v16 = vld [vmem:[%s9645_s3 + $0xda0] sm:$0xff]  ;;  %1855 = vmatpush.msrb.mxu0 %v1035_v14  ;;  %1878 = vmatpush.msrb.mxu1 %v1099_v15  ;;  %v367_v52 = vpop.f32.mrf.mxu1 }
  0xb7   :  { %v1227_v17 = vld [vmem:[%s9645_s3 + $0xfa0] sm:$0xff]  ;;  %1901 = vmatpush.msrb.mxu2 %v1163_v16 }
  0xb8   :  { %v1031_v32 = vld [vmem:[%s9645_s3 + $0x980] sm:$0xff]  ;;  %1924 = vmatpush.msrb.mxu3 %v1227_v17  ;;  %v413_v1 = vpop.f32.mrf.mxu3 }
  0xb9   :  { %v1095_v18 = vld [vmem:[%s9645_s3 + $0xb80] sm:$0xff]  ;;  %1856 = vmatpush.msrb.mxu0 %v1031_v32 }
  0xba   :  { %v1159_v19 = vld [vmem:[%s9645_s3 + $0xd80] sm:$0xff]  ;;  %1879 = vmatpush.msrb.mxu1 %v1095_v18 }
  0xbb   :  { %v1223_v20 = vld [vmem:[%s9645_s3 + $0xf80] sm:$0xff]  ;;  %1902 = vmatpush.msrb.mxu2 %v1159_v19 }
  0xbc   :  { %v1027_v21 = vld [vmem:[%s9645_s3 + $0x960] sm:$0xff]  ;;  %1925 = vmatpush.msrb.mxu3 %v1223_v20 }
  0xbd   :  { %v1091_v22 = vld [vmem:[%s9645_s3 + $0xb60] sm:$0xff]  ;;  %1857 = vmatpush.msrb.mxu0 %v1027_v21 }
  0xbe   :  { %v1155_v23 = vld [vmem:[%s9645_s3 + $0xd60] sm:$0xff]  ;;  %1880 = vmatpush.msrb.mxu1 %v1091_v22  ;;  %v347_v14 = vpop.f32.mrf.mxu0 }
  0xbf   :  { %v1219_v24 = vld [vmem:[%s9645_s3 + $0xf60] sm:$0xff]  ;;  %1903 = vmatpush.msrb.mxu2 %v1155_v23  ;;  %v393_v21 = vpop.f32.mrf.mxu2 }
  0xc0   :  { %v1023_v25 = vld [vmem:[%s9645_s3 + $0x940] sm:$0xff]  ;;  %1926 = vmatpush.msrb.mxu3 %v1219_v24  ;;  %v370_v32 = vpop.f32.mrf.mxu1 }
  0xc1   :  { %v1087_v26 = vld [vmem:[%s9645_s3 + $0xb40] sm:$0xff]  ;;  %1858 = vmatpush.msrb.mxu0 %v1023_v25 }
  0xc2   :  { %v1151_v27 = vld [vmem:[%s9645_s3 + $0xd40] sm:$0xff]  ;;  %1881 = vmatpush.msrb.mxu1 %v1087_v26 }
  0xc3   :  { %v1215_v28 = vld [vmem:[%s9645_s3 + $0xf40] sm:$0xff]  ;;  %1904 = vmatpush.msrb.mxu2 %v1151_v27 }
  0xc4   :  { %v1019_v29 = vld [vmem:[%s9645_s3 + $0x920] sm:$0xff]  ;;  %1927 = vmatpush.msrb.mxu3 %v1215_v28 }
  0xc5   :  { %v1083_v30 = vld [vmem:[%s9645_s3 + $0xb20] sm:$0xff]  ;;  %1859 = vmatpush.msrb.mxu0 %v1019_v29 }
  0xc6   :  { %v1147_v31 = vld [vmem:[%s9645_s3 + $0xd20] sm:$0xff]  ;;  %1882 = vmatpush.msrb.mxu1 %v1083_v30  ;;  %v416_v30 = vpop.f32.mrf.mxu3 }
  0xc7   :  { %v1211_v33 = vld [vmem:[%s9645_s3 + $0xf20] sm:$0xff]  ;;  %1905 = vmatpush.msrb.mxu2 %v1147_v31 }
  0xc8   :  { %v1015_v49 = vld [vmem:[%s9645_s3 + $0x900] sm:$0xff]  ;;  %1928 = vmatpush.msrb.mxu3 %v1211_v33 }
  0xc9   :  { %v1079_v34 = vld [vmem:[%s9645_s3 + $0xb00] sm:$0xff]  ;;  %1860 = vmatpush.msrb.mxu0 %v1015_v49 }
  0xca   :  { %v5242_v35 = vld [vmem:[%s9644_s2] sm:$0xff]  ;;  %1883 = vmatpush.msrb.mxu1 %v1079_v34 }
  0xcb   :  { %v1143_v36 = vld [vmem:[%s9645_s3 + $0xd00] sm:$0xff]  ;;  %v295_v42 = vperm.slane %v5242_v35, 0  ;;  %v296_v48 = vperm.slane %v5242_v35, 1  ;;  %v297_v53 = vperm.slane %v5242_v35, 2  ;;  %v298_v63 = vperm.slane %v5242_v35, 3 }
  0xcc   :  { %v1207_v37 = vld [vmem:[%s9645_s3 + $0xf00] sm:$0xff]  ;;  %1906 = vmatpush.msrb.mxu2 %v1143_v36 }
  0xcd   :  { %v1011_v38 = vld [vmem:[%s9645_s3 + $0x8e0] sm:$0xff]  ;;  %1929 = vmatpush.msrb.mxu3 %v1207_v37  ;;  %v345_v54 = vadd.f32 %v344_v45, %v295_v42  ;;  %v368_v60 = vadd.f32 %v367_v52, %v296_v48  ;;  %v391_v0 = vadd.f32 %v390_v57, %v297_v53  ;;  %v414_v9 = vadd.f32 %v413_v1, %v298_v63 }
  0xce   :  { %v1075_v39 = vld [vmem:[%s9645_s3 + $0xae0] sm:$0xff]  ;;  %1861 = vmatpush.msrb.mxu0 %v1011_v38  ;;  %v348_v19 = vadd.f32 %v347_v14, %v295_v42  ;;  %v371_v24 = vadd.f32 %v370_v32, %v296_v48  ;;  %v394_v27 = vadd.f32 %v393_v21, %v297_v53  ;;  %v417_v37 = vadd.f32 %v416_v30, %v298_v63  ;;  %v459_v48 = vpop.f32.mrf.mxu1 }
  0xcf   :  { %v1139_v40 = vld [vmem:[%s9645_s3 + $0xce0] sm:$0xff]  ;;  %1884 = vmatpush.msrb.mxu1 %v1075_v39  ;;  %v5314_v4 = vmax.f32 %v345_v54, 0.0  ;;  %v5325_v8 = vmax.f32 %v368_v60, 0.0  ;;  %v5335_v12 = vmax.f32 %v391_v0, 0.0  ;;  %v5350_v18 = vmax.f32 %v414_v9, 0.0  ;;  %v505_v0 = vpop.f32.mrf.mxu3 }
  0xd0   :  { %v1203_v41 = vld [vmem:[%s9645_s3 + $0xee0] sm:$0xff]  ;;  %1907 = vmatpush.msrb.mxu2 %v1139_v40  ;;  %v5381_v31 = vmax.f32 %v348_v19, 0.0  ;;  %v5393_v36 = vmax.f32 %v371_v24, 0.0  ;;  %v299_v40 = vperm.slane %v5242_v35, 4  ;;  %v300_v45 = vperm.slane %v5242_v35, 5 }
  0xd1   :  { %v1007_v43 = vld [vmem:[%s9645_s3 + $0x8c0] sm:$0xff]  ;;  %1930 = vmatpush.msrb.mxu3 %v1203_v41  ;;  %1777 = vmatmul.f32.vlgmr.msra.gmra.mxu0 %v5314_v4  ;;  %v5404_v41 = vmax.f32 %v394_v27, 0.0  ;;  %v302_v60 = vperm.slane %v5242_v35, 7 }
  0xd2   :  { %v1071_v44 = vld [vmem:[%s9645_s3 + $0xac0] sm:$0xff]  ;;  %1862 = vmatpush.msrb.mxu0 %v1007_v43  ;;  %1800 = vmatmul.f32.vlgmr.msra.gmra.mxu1 %v5325_v8  ;;  %v436_v43 = vpop.f32.mrf.mxu0 }
  0xd3   :  { %v1135_v46 = vld [vmem:[%s9645_s3 + $0xcc0] sm:$0xff]  ;;  %1885 = vmatpush.msrb.mxu1 %v1071_v44  ;;  %1823 = vmatmul.f32.vlgmr.msra.gmra.mxu2 %v5335_v12  ;;  %v437_v53 = vadd.f32 %v436_v43, %v299_v40 }
  0xd4   :  { %v1199_v47 = vld [vmem:[%s9645_s3 + $0xec0] sm:$0xff]  ;;  %1908 = vmatpush.msrb.mxu2 %v1135_v46  ;;  %1846 = vmatmul.f32.vlgmr.msra.gmra.mxu3 %v5350_v18 }
  0xd5   :  { %v1003_v50 = vld [vmem:[%s9645_s3 + $0x8a0] sm:$0xff]  ;;  %1931 = vmatpush.msrb.mxu3 %v1199_v47  ;;  %v5453_v1 = vmax.f32 %v437_v53, 0.0 }
  0xd6   :  { %v1067_v51 = vld [vmem:[%s9645_s3 + $0xaa0] sm:$0xff]  ;;  %1863 = vmatpush.msrb.mxu0 %v1003_v50  ;;  %v301_v50 = vperm.slane %v5242_v35, 6 }
  0xd7   :  { %v1131_v55 = vld [vmem:[%s9645_s3 + $0xca0] sm:$0xff]  ;;  %1886 = vmatpush.msrb.mxu1 %v1067_v51  ;;  %v5421_v51 = vmax.f32 %v417_v37, 0.0 }
  0xd8   :  { %v1195_v56 = vld [vmem:[%s9645_s3 + $0xea0] sm:$0xff]  ;;  %1909 = vmatpush.msrb.mxu2 %v1131_v55  ;;  %v482_v55 = vpop.f32.mrf.mxu2 }
  0xd9   :  { %v999_v58 = vld [vmem:[%s9645_s3 + $0x880] sm:$0xff]  ;;  %1932 = vmatpush.msrb.mxu3 %v1195_v56  ;;  %1780 = vmatmul.f32.gmra.mxu0 %v5381_v31 }
  0xda   :  { %v1063_v59 = vld [vmem:[%s9645_s3 + $0xa80] sm:$0xff]  ;;  %1864 = vmatpush.msrb.mxu0 %v999_v58  ;;  %1803 = vmatmul.f32.gmra.mxu1 %v5393_v36 }
  0xdb   :  { %v1127_v61 = vld [vmem:[%s9645_s3 + $0xc80] sm:$0xff]  ;;  %1887 = vmatpush.msrb.mxu1 %v1063_v59  ;;  %1826 = vmatmul.f32.gmra.mxu2 %v5404_v41  ;;  %v460_v59 = vadd.f32 %v459_v48, %v300_v45 }
  0xdc   :  { %v1191_v62 = vld [vmem:[%s9645_s3 + $0xe80] sm:$0xff]  ;;  %1910 = vmatpush.msrb.mxu2 %v1127_v61  ;;  %v483_v61 = vadd.f32 %v482_v55, %v301_v50  ;;  %1849 = vmatmul.f32.gmra.mxu3 %v5421_v51 }
  0xdd   :  { %v995_v2 = vld [vmem:[%s9645_s3 + $0x860] sm:$0xff]  ;;  %1933 = vmatpush.msrb.mxu3 %v1191_v62 }
  0xde   :  { %v1059_v3 = vld [vmem:[%s9645_s3 + $0xa60] sm:$0xff]  ;;  %1865 = vmatpush.msrb.mxu0 %v995_v2 }
  0xdf   :  { %v1123_v5 = vld [vmem:[%s9645_s3 + $0xc60] sm:$0xff]  ;;  %1888 = vmatpush.msrb.mxu1 %v1059_v3 }
  0xe0   :  { %v1187_v6 = vld [vmem:[%s9645_s3 + $0xe60] sm:$0xff]  ;;  %1911 = vmatpush.msrb.mxu2 %v1123_v5  ;;  %v462_v48 = vpop.f32.mrf.mxu1  ;;  %v485_v55 = vpop.f32.mrf.mxu2 }
  0xe1   :  { %v1055_v7 = vld [vmem:[%s9645_s3 + $0xa40] sm:$0xff]  ;;  %1934 = vmatpush.msrb.mxu3 %v1187_v6  ;;  %v5465_v6 = vmax.f32 %v460_v59, 0.0 }
  0xe2   :  { %v991_v10 = vld [vmem:[%s9645_s3 + $0x840] sm:$0xff]  ;;  %1889 = vmatpush.msrb.mxu1 %v1055_v7  ;;  %v506_v7 = vadd.f32 %v505_v0, %v302_v60  ;;  %v5597_v0 = vld [vmem:[%s9644_s2 + $0x8] sm:$0xff] }
  0xe3   :  { %v1119_v11 = vld [vmem:[%s9645_s3 + $0xc40] sm:$0xff]  ;;  %1866 = vmatpush.msrb.mxu0 %v991_v10 }
  0xe4   :  { %v1183_v13 = vld [vmem:[%s9645_s3 + $0xe40] sm:$0xff]  ;;  %1912 = vmatpush.msrb.mxu2 %v1119_v11  ;;  %v5475_v11 = vmax.f32 %v483_v61, 0.0  ;;  %v486_v61 = vadd.f32 %v485_v55, %v301_v50 }
  0xe5   :  { %v987_v15 = vld [vmem:[%s9645_s3 + $0x820] sm:$0xff]  ;;  %1935 = vmatpush.msrb.mxu3 %v1183_v13 }
  0xe6   :  { %v1051_v16 = vld [vmem:[%s9645_s3 + $0xa20] sm:$0xff]  ;;  %1867 = vmatpush.msrb.mxu0 %v987_v15 }
  0xe7   :  { %v1115_v17 = vld [vmem:[%s9645_s3 + $0xc20] sm:$0xff]  ;;  %1890 = vmatpush.msrb.mxu1 %v1051_v16 }
  0xe8   :  { %v1179_v20 = vld [vmem:[%s9645_s3 + $0xe20] sm:$0xff]  ;;  %1913 = vmatpush.msrb.mxu2 %v1115_v17  ;;  %v5490_v17 = vmax.f32 %v506_v7, 0.0 }
  0xe9   :  { %v983_v22 = vld [vmem:[%s9645_s3 + $0x800] sm:$0xff]  ;;  %1936 = vmatpush.msrb.mxu3 %v1179_v20 }
  0xea   :  { %v1047_v23 = vld [vmem:[%s9645_s3 + $0xa00] sm:$0xff]  ;;  %1868 = vmatpush.msrb.mxu0 %v983_v22 }
  0xeb   :  { %v1111_v25 = vld [vmem:[%s9645_s3 + $0xc00] sm:$0xff]  ;;  %1891 = vmatpush.msrb.mxu1 %v1047_v23  ;;  %1869 = vmatmul.f32.vlgmr.msrb.gmra.mxu0 %v5453_v1 }
  0xec   :  { %v1175_v26 = vld [vmem:[%s9645_s3 + $0xe00] sm:$0xff]  ;;  %1914 = vmatpush.msrb.mxu2 %v1111_v25  ;;  %1892 = vmatmul.f32.vlgmr.msrb.gmra.mxu1 %v5465_v6 }
  0xed   :  { %v1299_v28 = vld [vmem:[%s9645_s3 + $0x11e0] sm:$0xff]  ;;  %1937 = vmatpush.msrb.mxu3 %v1175_v26  ;;  %1915 = vmatmul.f32.vlgmr.msrb.gmra.mxu2 %v5475_v11 }
  0xee   :  { %v1363_v29 = vld [vmem:[%s9645_s3 + $0x13e0] sm:$0xff]  ;;  %1945 = vmatpush.msra.mxu0 %v1299_v28  ;;  %1938 = vmatmul.f32.vlgmr.msrb.gmra.mxu3 %v5490_v17 }
  0xef   :  { %v1427_v33 = vld [vmem:[%s9645_s3 + $0x15e0] sm:$0xff]  ;;  %1968 = vmatpush.msra.mxu1 %v1363_v29 }
  0xf0   :  { %v1491_v49 = vld [vmem:[%s9645_s3 + $0x17e0] sm:$0xff]  ;;  %1991 = vmatpush.msra.mxu2 %v1427_v33 }
  0xf1   :  { %v1359_v34 = vld [vmem:[%s9645_s3 + $0x13c0] sm:$0xff]  ;;  %2014 = vmatpush.msra.mxu3 %v1491_v49 }
  0xf2   :  { %v1295_v38 = vld [vmem:[%s9645_s3 + $0x11c0] sm:$0xff]  ;;  %1969 = vmatpush.msra.mxu1 %v1359_v34 }
  0xf3   :  { %v1423_v39 = vld [vmem:[%s9645_s3 + $0x15c0] sm:$0xff]  ;;  %1946 = vmatpush.msra.mxu0 %v1295_v38  ;;  %v439_v38 = vpop.f32.mrf.mxu0 }
  0xf4   :  { %v1487_v42 = vld [vmem:[%s9645_s3 + $0x17c0] sm:$0xff]  ;;  %1992 = vmatpush.msra.mxu2 %v1423_v39 }
  0xf5   :  { %v1291_v44 = vld [vmem:[%s9645_s3 + $0x11a0] sm:$0xff]  ;;  %2015 = vmatpush.msra.mxu3 %v1487_v42 }
  0xf6   :  { %v1355_v46 = vld [vmem:[%s9645_s3 + $0x13a0] sm:$0xff]  ;;  %1947 = vmatpush.msra.mxu0 %v1291_v44 }
  0xf7   :  { %v1419_v47 = vld [vmem:[%s9645_s3 + $0x15a0] sm:$0xff]  ;;  %1970 = vmatpush.msra.mxu1 %v1355_v46 }
  0xf8   :  { %v1483_v52 = vld [vmem:[%s9645_s3 + $0x17a0] sm:$0xff]  ;;  %1993 = vmatpush.msra.mxu2 %v1419_v47 }
  0xf9   :  { %v1287_v54 = vld [vmem:[%s9645_s3 + $0x1180] sm:$0xff]  ;;  %2016 = vmatpush.msra.mxu3 %v1483_v52  ;;  %v440_v52 = vadd.f32 %v439_v38, %v299_v40  ;;  %v463_v40 = vadd.f32 %v462_v48, %v300_v45  ;;  %v306_v48 = vperm.slane %v5597_v0, 3 }
  0xfa   :  { %v1351_v56 = vld [vmem:[%s9645_s3 + $0x1380] sm:$0xff]  ;;  %1948 = vmatpush.msra.mxu0 %v1287_v54 }
  0xfb   :  { %v1415_v57 = vld [vmem:[%s9645_s3 + $0x1580] sm:$0xff]  ;;  %1971 = vmatpush.msra.mxu1 %v1351_v56  ;;  %v5610_v7 = vmax.f32 %v463_v40, 0.0 }
  0xfc   :  { %v1479_v58 = vld [vmem:[%s9645_s3 + $0x1780] sm:$0xff]  ;;  %1994 = vmatpush.msra.mxu2 %v1415_v57 }
  0xfd   :  { %v1283_v62 = vld [vmem:[%s9645_s3 + $0x1160] sm:$0xff]  ;;  %2017 = vmatpush.msra.mxu3 %v1479_v58  ;;  %1895 = vmatmul.f32.gmra.mxu1 %v5610_v7 }
  0xfe   :  { %v1347_v63 = vld [vmem:[%s9645_s3 + $0x1360] sm:$0xff]  ;;  %1949 = vmatpush.msra.mxu0 %v1283_v62  ;;  %v508_v62 = vpop.f32.mrf.mxu3 }
  0xff   :  { %v1411_v2 = vld [vmem:[%s9645_s3 + $0x1560] sm:$0xff]  ;;  %1972 = vmatpush.msra.mxu1 %v1347_v63 }
 0x100   :  { %v1475_v3 = vld [vmem:[%s9645_s3 + $0x1760] sm:$0xff]  ;;  %1995 = vmatpush.msra.mxu2 %v1411_v2  ;;  %v5599_v2 = vmax.f32 %v440_v52, 0.0 }
 0x101   :  { %v1343_v5 = vld [vmem:[%s9645_s3 + $0x1340] sm:$0xff]  ;;  %2018 = vmatpush.msra.mxu3 %v1475_v3 }
 0x102   :  { %v1279_v9 = vld [vmem:[%s9645_s3 + $0x1140] sm:$0xff]  ;;  %1973 = vmatpush.msra.mxu1 %v1343_v5  ;;  %1872 = vmatmul.f32.gmra.mxu0 %v5599_v2 }
 0x103   :  { %v1407_v10 = vld [vmem:[%s9645_s3 + $0x1540] sm:$0xff]  ;;  %1950 = vmatpush.msra.mxu0 %v1279_v9  ;;  %v509_v9 = vadd.f32 %v508_v62, %v302_v60 }
 0x104   :  { %v1471_v13 = vld [vmem:[%s9645_s3 + $0x1740] sm:$0xff]  ;;  %1996 = vmatpush.msra.mxu2 %v1407_v10 }
 0x105   :  { %v1275_v14 = vld [vmem:[%s9645_s3 + $0x1120] sm:$0xff]  ;;  %2019 = vmatpush.msra.mxu3 %v1471_v13 }
 0x106   :  { %v1339_v15 = vld [vmem:[%s9645_s3 + $0x1320] sm:$0xff]  ;;  %1951 = vmatpush.msra.mxu0 %v1275_v14  ;;  %v303_v14 = vperm.slane %v5597_v0, 0 }
 0x107   :  { %v1403_v16 = vld [vmem:[%s9645_s3 + $0x1520] sm:$0xff]  ;;  %1974 = vmatpush.msra.mxu1 %v1339_v15  ;;  %v528_v15 = vpop.f32.mrf.mxu0 }
 0x108   :  { %v1467_v32 = vld [vmem:[%s9645_s3 + $0x1720] sm:$0xff]  ;;  %1997 = vmatpush.msra.mxu2 %v1403_v16  ;;  %v5621_v16 = vmax.f32 %v486_v61, 0.0 }
 0x109   :  { %v1271_v19 = vld [vmem:[%s9645_s3 + $0x1100] sm:$0xff]  ;;  %2020 = vmatpush.msra.mxu3 %v1467_v32  ;;  %v304_v32 = vperm.slane %v5597_v0, 1 }
 0x10a   :  { %v1335_v20 = vld [vmem:[%s9645_s3 + $0x1300] sm:$0xff]  ;;  %1952 = vmatpush.msra.mxu0 %v1271_v19  ;;  %1918 = vmatmul.f32.gmra.mxu2 %v5621_v16 }
 0x10b   :  { %v1399_v21 = vld [vmem:[%s9645_s3 + $0x1500] sm:$0xff]  ;;  %1975 = vmatpush.msra.mxu1 %v1335_v20 }
 0x10c   :  { %v1463_v22 = vld [vmem:[%s9645_s3 + $0x1700] sm:$0xff]  ;;  %1998 = vmatpush.msra.mxu2 %v1399_v21  ;;  %v551_v21 = vpop.f32.mrf.mxu1 }
 0x10d   :  { %v1267_v23 = vld [vmem:[%s9645_s3 + $0x10e0] sm:$0xff]  ;;  %2021 = vmatpush.msra.mxu3 %v1463_v22  ;;  %v5637_v22 = vmax.f32 %v509_v9, 0.0 }
 0x10e   :  { %v1331_v24 = vld [vmem:[%s9645_s3 + $0x12e0] sm:$0xff]  ;;  %1953 = vmatpush.msra.mxu0 %v1267_v23 }
 0x10f   :  { %v1395_v25 = vld [vmem:[%s9645_s3 + $0x14e0] sm:$0xff]  ;;  %1976 = vmatpush.msra.mxu1 %v1331_v24  ;;  %v529_v24 = vadd.f32 %v528_v15, %v303_v14  ;;  %1941 = vmatmul.f32.gmra.mxu3 %v5637_v22 }
 0x110   :  { %v1459_v26 = vld [vmem:[%s9645_s3 + $0x16e0] sm:$0xff]  ;;  %1999 = vmatpush.msra.mxu2 %v1395_v25 }
 0x111   :  { %v1263_v27 = vld [vmem:[%s9645_s3 + $0x10c0] sm:$0xff]  ;;  %2022 = vmatpush.msra.mxu3 %v1459_v26 }
 0x112   :  { %v1327_v28 = vld [vmem:[%s9645_s3 + $0x12c0] sm:$0xff]  ;;  %1954 = vmatpush.msra.mxu0 %v1263_v27 }
 0x113   :  { %v1391_v29 = vld [vmem:[%s9645_s3 + $0x14c0] sm:$0xff]  ;;  %1977 = vmatpush.msra.mxu1 %v1327_v28 }
 0x114   :  { %v1455_v30 = vld [vmem:[%s9645_s3 + $0x16c0] sm:$0xff]  ;;  %2000 = vmatpush.msra.mxu2 %v1391_v29  ;;  %v552_v29 = vadd.f32 %v551_v21, %v304_v32 }
 0x115   :  { %v1259_v33 = vld [vmem:[%s9645_s3 + $0x10a0] sm:$0xff]  ;;  %2023 = vmatpush.msra.mxu3 %v1455_v30 }
 0x116   :  { %v1323_v49 = vld [vmem:[%s9645_s3 + $0x12a0] sm:$0xff]  ;;  %1955 = vmatpush.msra.mxu0 %v1259_v33 }
 0x117   :  { %v1387_v34 = vld [vmem:[%s9645_s3 + $0x14a0] sm:$0xff]  ;;  %1978 = vmatpush.msra.mxu1 %v1323_v49  ;;  %v305_v49 = vperm.slane %v5597_v0, 2 }
 0x118   :  { %v1451_v37 = vld [vmem:[%s9645_s3 + $0x16a0] sm:$0xff]  ;;  %2001 = vmatpush.msra.mxu2 %v1387_v34  ;;  %v5667_v34 = vmax.f32 %v529_v24, 0.0 }
 0x119   :  { %v1255_v39 = vld [vmem:[%s9645_s3 + $0x1080] sm:$0xff]  ;;  %2024 = vmatpush.msra.mxu3 %v1451_v37 }
 0x11a   :  { %v1319_v42 = vld [vmem:[%s9645_s3 + $0x1280] sm:$0xff]  ;;  %1956 = vmatpush.msra.mxu0 %v1255_v39  ;;  %v574_v39 = vpop.f32.mrf.mxu2 }
 0x11b   :  { %v1383_v43 = vld [vmem:[%s9645_s3 + $0x1480] sm:$0xff]  ;;  %1979 = vmatpush.msra.mxu1 %v1319_v42 }
 0x11c   :  { %v1447_v44 = vld [vmem:[%s9645_s3 + $0x1680] sm:$0xff]  ;;  %2002 = vmatpush.msra.mxu2 %v1383_v43  ;;  %v5679_v43 = vmax.f32 %v552_v29, 0.0 }
 0x11d   :  { %v1251_v46 = vld [vmem:[%s9645_s3 + $0x1060] sm:$0xff]  ;;  %2025 = vmatpush.msra.mxu3 %v1447_v44 }
 0x11e   :  { %v1315_v47 = vld [vmem:[%s9645_s3 + $0x1260] sm:$0xff]  ;;  %1957 = vmatpush.msra.mxu0 %v1251_v46 }
 0x11f   :  { %v1379_v53 = vld [vmem:[%s9645_s3 + $0x1460] sm:$0xff]  ;;  %1980 = vmatpush.msra.mxu1 %v1315_v47  ;;  %v531_v47 = vpop.f32.mrf.mxu0 }
 0x120   :  { %v1443_v54 = vld [vmem:[%s9645_s3 + $0x1660] sm:$0xff]  ;;  %2003 = vmatpush.msra.mxu2 %v1379_v53  ;;  %v575_v53 = vadd.f32 %v574_v39, %v305_v49 }
 0x121   :  { %v1247_v56 = vld [vmem:[%s9645_s3 + $0x1040] sm:$0xff]  ;;  %2026 = vmatpush.msra.mxu3 %v1443_v54  ;;  %v597_v54 = vpop.f32.mrf.mxu3 }
 0x122   :  { %v1311_v57 = vld [vmem:[%s9645_s3 + $0x1240] sm:$0xff]  ;;  %1958 = vmatpush.msra.mxu0 %v1247_v56  ;;  %v598_v61 = vadd.f32 %v597_v54, %v306_v48 }
 0x123   :  { %v1375_v58 = vld [vmem:[%s9645_s3 + $0x1440] sm:$0xff]  ;;  %1981 = vmatpush.msra.mxu1 %v1311_v57 }
 0x124   :  { %v1439_v59 = vld [vmem:[%s9645_s3 + $0x1640] sm:$0xff]  ;;  %2004 = vmatpush.msra.mxu2 %v1375_v58  ;;  %v532_v58 = vadd.f32 %v531_v47, %v303_v14  ;;  %v5738_v15 = vmax.f32 %v598_v61, 0.0 }
 0x125   :  { %v1243_v63 = vld [vmem:[%s9645_s3 + $0x1020] sm:$0xff]  ;;  %2027 = vmatpush.msra.mxu3 %v1439_v59  ;;  %v554_v59 = vpop.f32.mrf.mxu1 }
 0x126   :  { %v1307_v45 = vld [vmem:[%s9645_s3 + $0x1220] sm:$0xff]  ;;  %1959 = vmatpush.msra.mxu0 %v1243_v63 }
 0x127   :  { %v1371_v50 = vld [vmem:[%s9645_s3 + $0x1420] sm:$0xff]  ;;  %1982 = vmatpush.msra.mxu1 %v1307_v45  ;;  %v5717_v45 = vmax.f32 %v575_v53, 0.0 }
 0x128   :  { %v1435_v3 = vld [vmem:[%s9645_s3 + $0x1620] sm:$0xff]  ;;  %2005 = vmatpush.msra.mxu2 %v1371_v50 }
 0x129   :  { %v1303_v5 = vld [vmem:[%s9645_s3 + $0x1200] sm:$0xff]  ;;  %2028 = vmatpush.msra.mxu3 %v1435_v3 }
 0x12a   :  { %v1239_v10 = vld [vmem:[%s9645_s3 + $0x1000] sm:$0xff]  ;;  %1983 = vmatpush.msra.mxu1 %v1303_v5  ;;  %v555_v5 = vadd.f32 %v554_v59, %v304_v32 }
 0x12b   :  { %v1367_v13 = vld [vmem:[%s9645_s3 + $0x1400] sm:$0xff]  ;;  %1960 = vmatpush.msra.mxu0 %v1239_v10  ;;  %1984 = vmatmul.f32.vlgmr.msra.gmra.mxu1 %v5679_v43  ;;  %v5730_v10 = vmax.f32 %v532_v58, 0.0 }
 0x12c   :  { %v1431_v35 = vld [vmem:[%s9645_s3 + $0x1600] sm:$0xff]  ;;  %2006 = vmatpush.msra.mxu2 %v1367_v13  ;;  %1961 = vmatmul.f32.vlgmr.msra.gmra.mxu0 %v5667_v34 }
 0x12d   :  { %v1555_v60 = vld [vmem:[%s9645_s3 + $0x19e0] sm:$0xff]  ;;  %2029 = vmatpush.msra.mxu3 %v1431_v35  ;;  %2007 = vmatmul.f32.vlgmr.msra.gmra.mxu2 %v5717_v45 }
 0x12e   :  { %v1619_v19 = vld [vmem:[%s9645_s3 + $0x1be0] sm:$0xff]  ;;  %2037 = vmatpush.msrb.mxu0 %v1555_v60  ;;  %v577_v60 = vpop.f32.mrf.mxu2  ;;  %2030 = vmatmul.f32.vlgmr.msra.gmra.mxu3 %v5738_v15 }
 0x12f   :  { %v1683_v20 = vld [vmem:[%s9645_s3 + $0x1de0] sm:$0xff]  ;;  %2060 = vmatpush.msrb.mxu1 %v1619_v19  ;;  %v5747_v19 = vmax.f32 %v555_v5, 0.0  ;;  %v578_v24 = vadd.f32 %v577_v60, %v305_v49 }
 0x130   :  { %v1747_v23 = vld [vmem:[%s9645_s3 + $0x1fe0] sm:$0xff]  ;;  %2083 = vmatpush.msrb.mxu2 %v1683_v20 }
 0x131   :  { %v1551_v25 = vld [vmem:[%s9645_s3 + $0x19c0] sm:$0xff]  ;;  %2106 = vmatpush.msrb.mxu3 %v1747_v23 }
 0x132   :  { %v1615_v26 = vld [vmem:[%s9645_s3 + $0x1bc0] sm:$0xff]  ;;  %2038 = vmatpush.msrb.mxu0 %v1551_v25  ;;  %v600_v25 = vpop.f32.mrf.mxu3 }
 0x133   :  { %v1679_v27 = vld [vmem:[%s9645_s3 + $0x1dc0] sm:$0xff]  ;;  %2061 = vmatpush.msrb.mxu1 %v1615_v26 }
 0x134   :  { %v1743_v28 = vld [vmem:[%s9645_s3 + $0x1fc0] sm:$0xff]  ;;  %2084 = vmatpush.msrb.mxu2 %v1679_v27  ;;  %1964 = vmatmul.f32.gmra.mxu0 %v5730_v10 }
 0x135   :  { %v1547_v30 = vld [vmem:[%s9645_s3 + $0x19a0] sm:$0xff]  ;;  %2107 = vmatpush.msrb.mxu3 %v1743_v28  ;;  %1987 = vmatmul.f32.gmra.mxu1 %v5747_v19 }
 0x136   :  { %v1611_v33 = vld [vmem:[%s9645_s3 + $0x1ba0] sm:$0xff]  ;;  %2039 = vmatpush.msrb.mxu0 %v1547_v30  ;;  %v601_v30 = vadd.f32 %v600_v25, %v306_v48  ;;  %v643_v25 = vpop.f32.mrf.mxu1 }
 0x137   :  { %v1675_v37 = vld [vmem:[%s9645_s3 + $0x1da0] sm:$0xff]  ;;  %2062 = vmatpush.msrb.mxu1 %v1611_v33 }
 0x138   :  { %v1739_v38 = vld [vmem:[%s9645_s3 + $0x1fa0] sm:$0xff]  ;;  %2085 = vmatpush.msrb.mxu2 %v1675_v37  ;;  %v5783_v37 = vmax.f32 %v578_v24, 0.0  ;;  %v5800_v47 = vmax.f32 %v601_v30, 0.0  ;;  %v852_v24 = vld [vmem:[%s9645_s3 + $0x3e8] sm:$0xff] }
 0x139   :  { %v1607_v42 = vld [vmem:[%s9645_s3 + $0x1b80] sm:$0xff]  ;;  %2108 = vmatpush.msrb.mxu3 %v1739_v38  ;;  %v848_v30 = vld [vmem:[%s9645_s3 + $0x3c8] sm:$0xff] }
 0x13a   :  { %v1543_v44 = vld [vmem:[%s9645_s3 + $0x1980] sm:$0xff]  ;;  %2063 = vmatpush.msrb.mxu1 %v1607_v42  ;;  %2010 = vmatmul.f32.gmra.mxu2 %v5783_v37 }
 0x13b   :  { %v1671_v46 = vld [vmem:[%s9645_s3 + $0x1d80] sm:$0xff]  ;;  %2040 = vmatpush.msrb.mxu0 %v1543_v44  ;;  %2033 = vmatmul.f32.gmra.mxu3 %v5800_v47 }
 0x13c   :  { %v1735_v52 = vld [vmem:[%s9645_s3 + $0x1f80] sm:$0xff]  ;;  %2086 = vmatpush.msrb.mxu2 %v1671_v46 }
 0x13d   :  { %v1539_v55 = vld [vmem:[%s9645_s3 + $0x1960] sm:$0xff]  ;;  %2109 = vmatpush.msrb.mxu3 %v1735_v52 }
 0x13e   :  { %v1603_v56 = vld [vmem:[%s9645_s3 + $0x1b60] sm:$0xff]  ;;  %2041 = vmatpush.msrb.mxu0 %v1539_v55 }
 0x13f   :  { %v1667_v57 = vld [vmem:[%s9645_s3 + $0x1d60] sm:$0xff]  ;;  %2064 = vmatpush.msrb.mxu1 %v1603_v56 }
 0x140   :  { %v1731_v40 = vld [vmem:[%s9645_s3 + $0x1f60] sm:$0xff]  ;;  %2087 = vmatpush.msrb.mxu2 %v1667_v57 }
 0x141   :  { %v1535_v62 = vld [vmem:[%s9645_s3 + $0x1940] sm:$0xff]  ;;  %2110 = vmatpush.msrb.mxu3 %v1731_v40 }
 0x142   :  { %v1599_v63 = vld [vmem:[%s9645_s3 + $0x1b40] sm:$0xff]  ;;  %2042 = vmatpush.msrb.mxu0 %v1535_v62 }
 0x143   :  { %v1663_v50 = vld [vmem:[%s9645_s3 + $0x1d40] sm:$0xff]  ;;  %2065 = vmatpush.msrb.mxu1 %v1599_v63 }
 0x144   :  { %v1727_v3 = vld [vmem:[%s9645_s3 + $0x1f40] sm:$0xff]  ;;  %2088 = vmatpush.msrb.mxu2 %v1663_v50 }
 0x145   :  { %v1531_v9 = vld [vmem:[%s9645_s3 + $0x1920] sm:$0xff]  ;;  %2111 = vmatpush.msrb.mxu3 %v1727_v3 }
 0x146   :  { %v1595_v13 = vld [vmem:[%s9645_s3 + $0x1b20] sm:$0xff]  ;;  %2043 = vmatpush.msrb.mxu0 %v1531_v9 }
 0x147   :  { %v1659_v14 = vld [vmem:[%s9645_s3 + $0x1d20] sm:$0xff]  ;;  %2066 = vmatpush.msrb.mxu1 %v1595_v13  ;;  %v307_v13 = vperm.slane %v5597_v0, 4 }
 0x148   :  { %v1723_v35 = vld [vmem:[%s9645_s3 + $0x1f20] sm:$0xff]  ;;  %2089 = vmatpush.msrb.mxu2 %v1659_v14  ;;  %v620_v14 = vpop.f32.mrf.mxu0 }
 0x149   :  { %v1527_v32 = vld [vmem:[%s9645_s3 + $0x1900] sm:$0xff]  ;;  %2112 = vmatpush.msrb.mxu3 %v1723_v35 }
 0x14a   :  { %v1591_v20 = vld [vmem:[%s9645_s3 + $0x1b00] sm:$0xff]  ;;  %2044 = vmatpush.msrb.mxu0 %v1527_v32 }
 0x14b   :  { %v1655_v21 = vld [vmem:[%s9645_s3 + $0x1d00] sm:$0xff]  ;;  %2067 = vmatpush.msrb.mxu1 %v1591_v20 }
 0x14c   :  { %v1719_v23 = vld [vmem:[%s9645_s3 + $0x1f00] sm:$0xff]  ;;  %2090 = vmatpush.msrb.mxu2 %v1655_v21  ;;  %v308_v21 = vperm.slane %v5597_v0, 5 }
 0x14d   :  { %v1523_v26 = vld [vmem:[%s9645_s3 + $0x18e0] sm:$0xff]  ;;  %2113 = vmatpush.msrb.mxu3 %v1719_v23  ;;  %v788_v23 = vld [vmem:[%s9645_s3 + $0x1e8] sm:$0xff] }
 0x14e   :  { %v1587_v27 = vld [vmem:[%s9645_s3 + $0x1ae0] sm:$0xff]  ;;  %2045 = vmatpush.msrb.mxu0 %v1523_v26  ;;  %v916_v26 = vld [vmem:[%s9645_s3 + $0x5e8] sm:$0xff] }
 0x14f   :  { %v1651_v28 = vld [vmem:[%s9645_s3 + $0x1ce0] sm:$0xff]  ;;  %2068 = vmatpush.msrb.mxu1 %v1587_v27  ;;  %v980_v27 = vld [vmem:[%s9645_s3 + $0x7e8] sm:$0xff] }
 0x150   :  { %v1715_v29 = vld [vmem:[%s9645_s3 + $0x1ee0] sm:$0xff]  ;;  %2091 = vmatpush.msrb.mxu2 %v1651_v28  ;;  %v621_v28 = vadd.f32 %v620_v14, %v307_v13  ;;  %v646_v14 = vpop.f32.mrf.mxu1 }
 0x151   :  { %v1519_v33 = vld [vmem:[%s9645_s3 + $0x18c0] sm:$0xff]  ;;  %2114 = vmatpush.msrb.mxu3 %v1715_v29  ;;  %v784_v29 = vld [vmem:[%s9645_s3 + $0x1c8] sm:$0xff] }
 0x152   :  { %v1583_v49 = vld [vmem:[%s9645_s3 + $0x1ac0] sm:$0xff]  ;;  %2046 = vmatpush.msrb.mxu0 %v1519_v33  ;;  %v912_v33 = vld [vmem:[%s9645_s3 + $0x5c8] sm:$0xff] }
 0x153   :  { %v1647_v38 = vld [vmem:[%s9645_s3 + $0x1cc0] sm:$0xff]  ;;  %2069 = vmatpush.msrb.mxu1 %v1583_v49  ;;  %v976_v49 = vld [vmem:[%s9645_s3 + $0x7c8] sm:$0xff] }
 0x154   :  { %v1711_v39 = vld [vmem:[%s9645_s3 + $0x1ec0] sm:$0xff]  ;;  %2092 = vmatpush.msrb.mxu2 %v1647_v38  ;;  %v644_v38 = vadd.f32 %v643_v25, %v308_v21  ;;  %v764_v25 = vld [vmem:[%s9645_s3 + $0x128] sm:$0xff] }
 0x155   :  { %v1515_v42 = vld [vmem:[%s9645_s3 + $0x18a0] sm:$0xff]  ;;  %2115 = vmatpush.msrb.mxu3 %v1711_v39  ;;  %v780_v39 = vld [vmem:[%s9645_s3 + $0x1a8] sm:$0xff] }
 0x156   :  { %v1579_v44 = vld [vmem:[%s9645_s3 + $0x1aa0] sm:$0xff]  ;;  %2047 = vmatpush.msrb.mxu0 %v1515_v42  ;;  %v844_v42 = vld [vmem:[%s9645_s3 + $0x3a8] sm:$0xff] }
 0x157   :  { %v1643_v46 = vld [vmem:[%s9645_s3 + $0x1ca0] sm:$0xff]  ;;  %2070 = vmatpush.msrb.mxu1 %v1579_v44  ;;  %v309_v44 = vperm.slane %v5597_v0, 6 }
 0x158   :  { %v1707_v48 = vld [vmem:[%s9645_s3 + $0x1ea0] sm:$0xff]  ;;  %2093 = vmatpush.msrb.mxu2 %v1643_v46  ;;  %v5904_v46 = vmax.f32 %v621_v28, 0.0  ;;  %v892_v28 = vld [vmem:[%s9645_s3 + $0x528] sm:$0xff] }
 0x159   :  { %v1511_v52 = vld [vmem:[%s9645_s3 + $0x1880] sm:$0xff]  ;;  %2116 = vmatpush.msrb.mxu3 %v1707_v48  ;;  %v908_v48 = vld [vmem:[%s9645_s3 + $0x5a8] sm:$0xff] }
 0x15a   :  { %v1575_v53 = vld [vmem:[%s9645_s3 + $0x1a80] sm:$0xff]  ;;  %2048 = vmatpush.msrb.mxu0 %v1511_v52  ;;  %v972_v52 = vld [vmem:[%s9645_s3 + $0x7a8] sm:$0xff] }
 0x15b   :  { %v1639_v54 = vld [vmem:[%s9645_s3 + $0x1c80] sm:$0xff]  ;;  %2071 = vmatpush.msrb.mxu1 %v1575_v53  ;;  %v666_v53 = vpop.f32.mrf.mxu2 }
 0x15c   :  { %v1703_v55 = vld [vmem:[%s9645_s3 + $0x1e80] sm:$0xff]  ;;  %2094 = vmatpush.msrb.mxu2 %v1639_v54  ;;  %v840_v54 = vld [vmem:[%s9645_s3 + $0x388] sm:$0xff] }
 0x15d   :  { %v1507_v56 = vld [vmem:[%s9645_s3 + $0x1860] sm:$0xff]  ;;  %2117 = vmatpush.msrb.mxu3 %v1703_v55  ;;  %v5915_v55 = vmax.f32 %v644_v38, 0.0  ;;  %v824_v38 = vld [vmem:[%s9645_s3 + $0x308] sm:$0xff] }
 0x15e   :  { %v1571_v57 = vld [vmem:[%s9645_s3 + $0x1a60] sm:$0xff]  ;;  %2049 = vmatpush.msrb.mxu0 %v1507_v56  ;;  %v776_v56 = vld [vmem:[%s9645_s3 + $0x188] sm:$0xff] }
 0x15f   :  { %v1635_v40 = vld [vmem:[%s9645_s3 + $0x1c60] sm:$0xff]  ;;  %2072 = vmatpush.msrb.mxu1 %v1571_v57  ;;  %v904_v57 = vld [vmem:[%s9645_s3 + $0x588] sm:$0xff] }
 0x160   :  { %v1699_v58 = vld [vmem:[%s9645_s3 + $0x1e60] sm:$0xff]  ;;  %2095 = vmatpush.msrb.mxu2 %v1635_v40  ;;  %v623_v40 = vpop.f32.mrf.mxu0 }
 0x161   :  { %v1503_v59 = vld [vmem:[%s9645_s3 + $0x1840] sm:$0xff]  ;;  %2118 = vmatpush.msrb.mxu3 %v1699_v58  ;;  %v310_v58 = vperm.slane %v5597_v0, 7  ;;  %v944_v0 = vld [vmem:[%s9645_s3 + $0x6c8] sm:$0xff] }
 0x162   :  { %v1567_v61 = vld [vmem:[%s9645_s3 + $0x1a40] sm:$0xff]  ;;  %2050 = vmatpush.msrb.mxu0 %v1503_v59  ;;  %v968_v59 = vld [vmem:[%s9645_s3 + $0x788] sm:$0xff] }
 0x163   :  { %v1631_v62 = vld [vmem:[%s9645_s3 + $0x1c40] sm:$0xff]  ;;  %2073 = vmatpush.msrb.mxu1 %v1567_v61  ;;  %v667_v61 = vadd.f32 %v666_v53, %v309_v44  ;;  %v756_v53 = vld [vmem:[%s9645_s3 + $0xe8] sm:$0xff] }
 0x164   :  { %v1695_v63 = vld [vmem:[%s9645_s3 + $0x1e40] sm:$0xff]  ;;  %2096 = vmatpush.msrb.mxu2 %v1631_v62  ;;  %v689_v62 = vpop.f32.mrf.mxu3 }
 0x165   :  { %v1499_v50 = vld [vmem:[%s9645_s3 + $0x1820] sm:$0xff]  ;;  %2119 = vmatpush.msrb.mxu3 %v1695_v63  ;;  %v772_v63 = vld [vmem:[%s9645_s3 + $0x168] sm:$0xff] }
 0x166   :  { %v1563_v3 = vld [vmem:[%s9645_s3 + $0x1a20] sm:$0xff]  ;;  %2051 = vmatpush.msrb.mxu0 %v1499_v50  ;;  %v836_v50 = vld [vmem:[%s9645_s3 + $0x368] sm:$0xff] }
 0x167   :  { %v1627_v5 = vld [vmem:[%s9645_s3 + $0x1c20] sm:$0xff]  ;;  %2074 = vmatpush.msrb.mxu1 %v1563_v3  ;;  %v900_v3 = vld [vmem:[%s9645_s3 + $0x568] sm:$0xff] }
 0x168   :  { %v1691_v9 = vld [vmem:[%s9645_s3 + $0x1e20] sm:$0xff]  ;;  %2097 = vmatpush.msrb.mxu2 %v1627_v5  ;;  %v964_v5 = vld [vmem:[%s9645_s3 + $0x768] sm:$0xff] }
 0x169   :  { %v1495_v35 = vld [vmem:[%s9645_s3 + $0x1800] sm:$0xff]  ;;  %2120 = vmatpush.msrb.mxu3 %v1691_v9  ;;  %v624_v9 = vadd.f32 %v623_v40, %v307_v13  ;;  %v896_v13 = vld [vmem:[%s9645_s3 + $0x548] sm:$0xff] }
 0x16a   :  { %v1559_v60 = vld [vmem:[%s9645_s3 + $0x1a00] sm:$0xff]  ;;  %2052 = vmatpush.msrb.mxu0 %v1495_v35  ;;  %v690_v35 = vadd.f32 %v689_v62, %v310_v58  ;;  %v752_v40 = vld [vmem:[%s9645_s3 + $0xc8] sm:$0xff] }
 0x16b   :  { %v1623_v32 = vld [vmem:[%s9645_s3 + $0x1c00] sm:$0xff]  ;;  %2075 = vmatpush.msrb.mxu1 %v1559_v60  ;;  %2053 = vmatmul.f32.vlgmr.msrb.gmra.mxu0 %v5904_v46  ;;  %v768_v60 = vld [vmem:[%s9645_s3 + $0x148] sm:$0xff] }
 0x16c   :  { %v1687_v20 = vld [vmem:[%s9645_s3 + $0x1e00] sm:$0xff]  ;;  %2098 = vmatpush.msrb.mxu2 %v1623_v32  ;;  %2129 = vmatpush.msra.mxu0 %v788_v23  ;;  %v832_v32 = vld [vmem:[%s9645_s3 + $0x348] sm:$0xff] }
 0x16d   :  { %2121 = vmatpush.msrb.mxu3 %v1687_v20  ;;  %2152 = vmatpush.msra.mxu1 %v852_v24  ;;  %v5953_v20 = vmax.f32 %v667_v61, 0.0  ;;  %v960_v23 = vld [vmem:[%s9645_s3 + $0x748] sm:$0xff]  ;;  %v647_v24 = vadd.f32 %v646_v14, %v308_v21 }
 0x16e   :  { %2175 = vmatpush.msra.mxu2 %v916_v26  ;;  %2130 = vmatpush.msra.mxu0 %v784_v29  ;;  %v5966_v26 = vmax.f32 %v624_v9, 0.0  ;;  %v5974_v29 = vmax.f32 %v690_v35, 0.0  ;;  %v956_v21 = vld [vmem:[%s9645_s3 + $0x728] sm:$0xff] }
 0x16f   :  { %2198 = vmatpush.msra.mxu3 %v980_v27  ;;  %2153 = vmatpush.msra.mxu1 %v848_v30  ;;  %v828_v27 = vld [vmem:[%s9645_s3 + $0x328] sm:$0xff]  ;;  %v669_v30 = vpop.f32.mrf.mxu2 }
 0x170   :  { %2176 = vmatpush.msra.mxu2 %v912_v33  ;;  %2131 = vmatpush.msra.mxu0 %v780_v39  ;;  %v760_v33 = vld [vmem:[%s9645_s3 + $0x108] sm:$0xff] }
 0x171   :  { %2199 = vmatpush.msra.mxu3 %v976_v49  ;;  %2154 = vmatpush.msra.mxu1 %v844_v42  ;;  %v5983_v49 = vmax.f32 %v647_v24, 0.0  ;;  %v888_v39 = vld [vmem:[%s9645_s3 + $0x508] sm:$0xff] }
 0x172   :  { %2177 = vmatpush.msra.mxu2 %v908_v48  ;;  %2132 = vmatpush.msra.mxu0 %v776_v56  ;;  %v952_v42 = vld [vmem:[%s9645_s3 + $0x708] sm:$0xff]  ;;  %v670_v48 = vadd.f32 %v669_v30, %v309_v44 }
 0x173   :  { %2200 = vmatpush.msra.mxu3 %v972_v52  ;;  %2155 = vmatpush.msra.mxu1 %v840_v54  ;;  %v692_v52 = vpop.f32.mrf.mxu3  ;;  %v820_v54 = vld [vmem:[%s9645_s3 + $0x2e8] sm:$0xff] }
 0x174   :  { %2178 = vmatpush.msra.mxu2 %v904_v57  ;;  %2076 = vmatmul.f32.vlgmr.msrb.gmra.mxu1 %v5915_v55  ;;  %v884_v56 = vld [vmem:[%s9645_s3 + $0x4e8] sm:$0xff]  ;;  %v693_v57 = vadd.f32 %v692_v52, %v310_v58  ;;  %v6019_v61 = vmax.f32 %v670_v48, 0.0 }
 0x175   :  { %2201 = vmatpush.msra.mxu3 %v968_v59  ;;  %2133 = vmatpush.msra.mxu0 %v772_v63  ;;  %v948_v44 = vld [vmem:[%s9645_s3 + $0x6e8] sm:$0xff] }
 0x176   :  { %2156 = vmatpush.msra.mxu1 %v836_v50  ;;  %2179 = vmatpush.msra.mxu2 %v900_v3  ;;  %v816_v59 = vld [vmem:[%s9645_s3 + $0x2c8] sm:$0xff]  ;;  %v6036_v3 = vmax.f32 %v693_v57, 0.0 }
 0x177   :  { %2202 = vmatpush.msra.mxu3 %v964_v5  ;;  %2134 = vmatpush.msra.mxu0 %v768_v60  ;;  %v880_v62 = vld [vmem:[%s9645_s3 + $0x4c8] sm:$0xff] }
 0x178   :  { %2157 = vmatpush.msra.mxu1 %v832_v32  ;;  %2180 = vmatpush.msra.mxu2 %v896_v13  ;;  %v748_v58 = vld [vmem:[%s9645_s3 + $0xa8] sm:$0xff]  ;;  %9653 = vst [vmem:[#allocation5_spill] sm:$0xff] %v6036_v3 }
 0x179   :  { %2203 = vmatpush.msra.mxu3 %v960_v23  ;;  %2099 = vmatmul.f32.vlgmr.msrb.gmra.mxu2 %v5953_v20  ;;  %v812_v63 = vld [vmem:[%s9645_s3 + $0x2a8] sm:$0xff] }
 0x17a   :  { %2135 = vmatpush.msra.mxu0 %v764_v25  ;;  %2158 = vmatpush.msra.mxu1 %v828_v27  ;;  %v876_v50 = vld [vmem:[%s9645_s3 + $0x4a8] sm:$0xff] }
 0x17b   :  { %2181 = vmatpush.msra.mxu2 %v892_v28  ;;  %2204 = vmatpush.msra.mxu3 %v956_v21  ;;  %v940_v5 = vld [vmem:[%s9645_s3 + $0x6a8] sm:$0xff] }
 0x17c   :  { %2056 = vmatmul.f32.gmra.mxu0 %v5966_v26  ;;  %2122 = vmatmul.f32.vlgmr.msrb.gmra.mxu3 %v5974_v29  ;;  %v744_v9 = vld [vmem:[%s9645_s3 + $0x88] sm:$0xff] }
 0x17d   :  { %2136 = vmatpush.msra.mxu0 %v760_v33  ;;  %2159 = vmatpush.msra.mxu1 %v824_v38  ;;  %v808_v14 = vld [vmem:[%s9645_s3 + $0x288] sm:$0xff] }
 0x17e   :  { %2182 = vmatpush.msra.mxu2 %v888_v39  ;;  %2205 = vmatpush.msra.mxu3 %v952_v42  ;;  %v872_v35 = vld [vmem:[%s9645_s3 + $0x488] sm:$0xff] }
 0x17f   :  { %2079 = vmatmul.f32.gmra.mxu1 %v5983_v49  ;;  %2137 = vmatpush.msra.mxu0 %v756_v53  ;;  %v936_v60 = vld [vmem:[%s9645_s3 + $0x688] sm:$0xff] }
 0x180   :  { %2160 = vmatpush.msra.mxu1 %v820_v54  ;;  %2183 = vmatpush.msra.mxu2 %v884_v56  ;;  %v740_v32 = vld [vmem:[%s9645_s3 + $0x68] sm:$0xff] }
 0x181   :  { %2206 = vmatpush.msra.mxu3 %v948_v44  ;;  %2138 = vmatpush.msra.mxu0 %v752_v40  ;;  %v804_v13 = vld [vmem:[%s9645_s3 + $0x268] sm:$0xff] }
 0x182   :  { %2161 = vmatpush.msra.mxu1 %v816_v59  ;;  %2184 = vmatpush.msra.mxu2 %v880_v62  ;;  %v868_v23 = vld [vmem:[%s9645_s3 + $0x468] sm:$0xff] }
 0x183   :  { %2207 = vmatpush.msra.mxu3 %v944_v0  ;;  %2102 = vmatmul.f32.gmra.mxu2 %v6019_v61  ;;  %v932_v24 = vld [vmem:[%s9645_s3 + $0x668] sm:$0xff] }
 0x184   :  { %2139 = vmatpush.msra.mxu0 %v748_v58  ;;  %2162 = vmatpush.msra.mxu1 %v812_v63  ;;  %v736_v25 = vld [vmem:[%s9645_s3 + $0x48] sm:$0xff] }
 0x185   :  { %2185 = vmatpush.msra.mxu2 %v876_v50  ;;  %2208 = vmatpush.msra.mxu3 %v940_v5  ;;  %v800_v27 = vld [vmem:[%s9645_s3 + $0x248] sm:$0xff] }
 0x186   :  { %2140 = vmatpush.msra.mxu0 %v744_v9  ;;  %2125 = vmatmul.f32.gmra.mxu3 %v6036_v3  ;;  %v864_v28 = vld [vmem:[%s9645_s3 + $0x448] sm:$0xff] }
 0x187   :  { %2163 = vmatpush.msra.mxu1 %v808_v14  ;;  %2186 = vmatpush.msra.mxu2 %v872_v35  ;;  %v928_v21 = vld [vmem:[%s9645_s3 + $0x648] sm:$0xff] }
 0x188   :  { %2209 = vmatpush.msra.mxu3 %v936_v60  ;;  %2141 = vmatpush.msra.mxu0 %v740_v32  ;;  %v732_v30 = vld [vmem:[%s9645_s3 + $0x28] sm:$0xff] }
 0x189   :  { %2164 = vmatpush.msra.mxu1 %v804_v13  ;;  %2187 = vmatpush.msra.mxu2 %v868_v23  ;;  %v796_v33 = vld [vmem:[%s9645_s3 + $0x228] sm:$0xff] }
 0x18a   :  { %2210 = vmatpush.msra.mxu3 %v932_v24  ;;  %2142 = vmatpush.msra.mxu0 %v736_v25  ;;  %v860_v38 = vld [vmem:[%s9645_s3 + $0x428] sm:$0xff] }
 0x18b   :  { %2165 = vmatpush.msra.mxu1 %v800_v27  ;;  %v924_v39 = vld [vmem:[%s9645_s3 + $0x628] sm:$0xff]  ;;  %2188 = vmatpush.msra.mxu2 %v864_v28 }
 0x18c   :  { %2211 = vmatpush.msra.mxu3 %v928_v21  ;;  %v728_v42 = vld [vmem:[%s9645_s3 + $0x8] sm:$0xff]  ;;  %2143 = vmatpush.msra.mxu0 %v732_v30 }
 0x18d   :  { %v792_v48 = vld [vmem:[%s9645_s3 + $0x208] sm:$0xff]  ;;  %2166 = vmatpush.msra.mxu1 %v796_v33  ;;  %2189 = vmatpush.msra.mxu2 %v860_v38 }
 0x18e   :  { %v856_v52 = vld [vmem:[%s9645_s3 + $0x408] sm:$0xff]  ;;  %2212 = vmatpush.msra.mxu3 %v924_v39  ;;  %2144 = vmatpush.msra.mxu0 %v728_v42 }
 0x18f   :  { %v920_v53 = vld [vmem:[%s9645_s3 + $0x608] sm:$0xff]  ;;  %2167 = vmatpush.msra.mxu1 %v792_v48  ;;  %2190 = vmatpush.msra.mxu2 %v856_v52 }
 0x190   :  { %2213 = vmatpush.msra.mxu3 %v920_v53  ;;  %v1044_v54 = vld [vmem:[%s9645_s3 + $0x9e8] sm:$0xff]  ;;  %2145 = vmatmul.f32.vlgmr.msra.gmra.mxu0 %v5314_v4 }
 0x191   :  { %v1108_v56 = vld [vmem:[%s9645_s3 + $0xbe8] sm:$0xff]  ;;  %2168 = vmatmul.f32.vlgmr.msra.gmra.mxu1 %v5325_v8  ;;  %2191 = vmatmul.f32.vlgmr.msra.gmra.mxu2 %v5335_v12 }
 0x192   :  { %v1172_v44 = vld [vmem:[%s9645_s3 + $0xde8] sm:$0xff]  ;;  %2214 = vmatmul.f32.vlgmr.msra.gmra.mxu3 %v5350_v18  ;;  %2221 = vmatpush.msrb.mxu0 %v1044_v54 }
 0x193   :  { %v1236_v57 = vld [vmem:[%s9645_s3 + $0xfe8] sm:$0xff]  ;;  %2244 = vmatpush.msrb.mxu1 %v1108_v56  ;;  %2267 = vmatpush.msrb.mxu2 %v1172_v44 }
 0x194   :  { %v1040_v40 = vld [vmem:[%s9645_s3 + $0x9c8] sm:$0xff]  ;;  %2290 = vmatpush.msrb.mxu3 %v1236_v57 }
 0x195   :  { %v1104_v59 = vld [vmem:[%s9645_s3 + $0xbc8] sm:$0xff]  ;;  %2222 = vmatpush.msrb.mxu0 %v1040_v40 }
 0x196   :  { %v1168_v62 = vld [vmem:[%s9645_s3 + $0xdc8] sm:$0xff]  ;;  %2245 = vmatpush.msrb.mxu1 %v1104_v59 }
 0x197   :  { %v1232_v0 = vld [vmem:[%s9645_s3 + $0xfc8] sm:$0xff]  ;;  %2268 = vmatpush.msrb.mxu2 %v1168_v62 }
 0x198   :  { %v1036_v58 = vld [vmem:[%s9645_s3 + $0x9a8] sm:$0xff]  ;;  %2291 = vmatpush.msrb.mxu3 %v1232_v0  ;;  %2148 = vmatmul.f32.gmra.mxu0 %v5381_v31 }
 0x199   :  { %v1100_v63 = vld [vmem:[%s9645_s3 + $0xba8] sm:$0xff]  ;;  %2223 = vmatpush.msrb.mxu0 %v1036_v58  ;;  %2171 = vmatmul.f32.gmra.mxu1 %v5393_v36 }
 0x19a   :  { %v1164_v50 = vld [vmem:[%s9645_s3 + $0xda8] sm:$0xff]  ;;  %2246 = vmatpush.msrb.mxu1 %v1100_v63  ;;  %2194 = vmatmul.f32.gmra.mxu2 %v5404_v41 }
 0x19b   :  { %v1228_v5 = vld [vmem:[%s9645_s3 + $0xfa8] sm:$0xff]  ;;  %2269 = vmatpush.msrb.mxu2 %v1164_v50  ;;  %2217 = vmatmul.f32.gmra.mxu3 %v5421_v51 }
 0x19c   :  { %v1032_v9 = vld [vmem:[%s9645_s3 + $0x988] sm:$0xff]  ;;  %2292 = vmatpush.msrb.mxu3 %v1228_v5 }
 0x19d   :  { %v1096_v14 = vld [vmem:[%s9645_s3 + $0xb88] sm:$0xff]  ;;  %2224 = vmatpush.msrb.mxu0 %v1032_v9 }
 0x19e   :  { %v1160_v35 = vld [vmem:[%s9645_s3 + $0xd88] sm:$0xff]  ;;  %2247 = vmatpush.msrb.mxu1 %v1096_v14 }
 0x19f   :  { %v1224_v60 = vld [vmem:[%s9645_s3 + $0xf88] sm:$0xff]  ;;  %2270 = vmatpush.msrb.mxu2 %v1160_v35 }
 0x1a0   :  { %2293 = vmatpush.msrb.mxu3 %v1224_v60  ;;  %v1028_v32 = vld [vmem:[%s9645_s3 + $0x968] sm:$0xff] }
 0x1a1   :  { %v1092_v13 = vld [vmem:[%s9645_s3 + $0xb68] sm:$0xff]  ;;  %2225 = vmatpush.msrb.mxu0 %v1028_v32 }
 0x1a2   :  { %v1156_v23 = vld [vmem:[%s9645_s3 + $0xd68] sm:$0xff]  ;;  %2248 = vmatpush.msrb.mxu1 %v1092_v13 }
 0x1a3   :  { %v1220_v24 = vld [vmem:[%s9645_s3 + $0xf68] sm:$0xff]  ;;  %2271 = vmatpush.msrb.mxu2 %v1156_v23 }
 0x1a4   :  { %v1024_v25 = vld [vmem:[%s9645_s3 + $0x948] sm:$0xff]  ;;  %2294 = vmatpush.msrb.mxu3 %v1220_v24 }
 0x1a5   :  { %v1088_v27 = vld [vmem:[%s9645_s3 + $0xb48] sm:$0xff]  ;;  %2226 = vmatpush.msrb.mxu0 %v1024_v25 }
 0x1a6   :  { %v1152_v28 = vld [vmem:[%s9645_s3 + $0xd48] sm:$0xff]  ;;  %2249 = vmatpush.msrb.mxu1 %v1088_v27 }
 0x1a7   :  { %v1216_v21 = vld [vmem:[%s9645_s3 + $0xf48] sm:$0xff]  ;;  %2272 = vmatpush.msrb.mxu2 %v1152_v28 }
 0x1a8   :  { %v1020_v30 = vld [vmem:[%s9645_s3 + $0x928] sm:$0xff]  ;;  %2295 = vmatpush.msrb.mxu3 %v1216_v21 }
 0x1a9   :  { %v1084_v33 = vld [vmem:[%s9645_s3 + $0xb28] sm:$0xff]  ;;  %2227 = vmatpush.msrb.mxu0 %v1020_v30 }
 0x1aa   :  { %v1148_v38 = vld [vmem:[%s9645_s3 + $0xd28] sm:$0xff]  ;;  %2250 = vmatpush.msrb.mxu1 %v1084_v33 }
 0x1ab   :  { %v1212_v39 = vld [vmem:[%s9645_s3 + $0xf28] sm:$0xff]  ;;  %2273 = vmatpush.msrb.mxu2 %v1148_v38 }
 0x1ac   :  { %v1016_v42 = vld [vmem:[%s9645_s3 + $0x908] sm:$0xff]  ;;  %2296 = vmatpush.msrb.mxu3 %v1212_v39 }
 0x1ad   :  { %v1080_v48 = vld [vmem:[%s9645_s3 + $0xb08] sm:$0xff]  ;;  %2228 = vmatpush.msrb.mxu0 %v1016_v42 }
 0x1ae   :  { %v1144_v52 = vld [vmem:[%s9645_s3 + $0xd08] sm:$0xff]  ;;  %2251 = vmatpush.msrb.mxu1 %v1080_v48 }
 0x1af   :  { %v1208_v53 = vld [vmem:[%s9645_s3 + $0xf08] sm:$0xff]  ;;  %2274 = vmatpush.msrb.mxu2 %v1144_v52 }
 0x1b0   :  { %v1012_v54 = vld [vmem:[%s9645_s3 + $0x8e8] sm:$0xff]  ;;  %2297 = vmatpush.msrb.mxu3 %v1208_v53 }
 0x1b1   :  { %v1076_v56 = vld [vmem:[%s9645_s3 + $0xae8] sm:$0xff]  ;;  %2229 = vmatpush.msrb.mxu0 %v1012_v54 }
 0x1b2   :  { %v1140_v44 = vld [vmem:[%s9645_s3 + $0xce8] sm:$0xff]  ;;  %2252 = vmatpush.msrb.mxu1 %v1076_v56 }
 0x1b3   :  { %v1204_v57 = vld [vmem:[%s9645_s3 + $0xee8] sm:$0xff]  ;;  %2275 = vmatpush.msrb.mxu2 %v1140_v44 }
 0x1b4   :  { %v1008_v40 = vld [vmem:[%s9645_s3 + $0x8c8] sm:$0xff]  ;;  %2298 = vmatpush.msrb.mxu3 %v1204_v57 }
 0x1b5   :  { %v1072_v59 = vld [vmem:[%s9645_s3 + $0xac8] sm:$0xff]  ;;  %2230 = vmatpush.msrb.mxu0 %v1008_v40 }
 0x1b6   :  { %v1136_v62 = vld [vmem:[%s9645_s3 + $0xcc8] sm:$0xff]  ;;  %2253 = vmatpush.msrb.mxu1 %v1072_v59 }
 0x1b7   :  { %v1200_v0 = vld [vmem:[%s9645_s3 + $0xec8] sm:$0xff]  ;;  %2276 = vmatpush.msrb.mxu2 %v1136_v62 }
 0x1b8   :  { %v1004_v58 = vld [vmem:[%s9645_s3 + $0x8a8] sm:$0xff]  ;;  %2299 = vmatpush.msrb.mxu3 %v1200_v0 }
 0x1b9   :  { %v1068_v63 = vld [vmem:[%s9645_s3 + $0xaa8] sm:$0xff]  ;;  %2231 = vmatpush.msrb.mxu0 %v1004_v58 }
 0x1ba   :  { %v1132_v50 = vld [vmem:[%s9645_s3 + $0xca8] sm:$0xff]  ;;  %2254 = vmatpush.msrb.mxu1 %v1068_v63 }
 0x1bb   :  { %v1196_v5 = vld [vmem:[%s9645_s3 + $0xea8] sm:$0xff]  ;;  %2277 = vmatpush.msrb.mxu2 %v1132_v50 }
 0x1bc   :  { %v1000_v9 = vld [vmem:[%s9645_s3 + $0x888] sm:$0xff]  ;;  %2300 = vmatpush.msrb.mxu3 %v1196_v5 }
 0x1bd   :  { %v1064_v14 = vld [vmem:[%s9645_s3 + $0xa88] sm:$0xff]  ;;  %2232 = vmatpush.msrb.mxu0 %v1000_v9 }
 0x1be   :  { %v1128_v35 = vld [vmem:[%s9645_s3 + $0xc88] sm:$0xff]  ;;  %2255 = vmatpush.msrb.mxu1 %v1064_v14 }
 0x1bf   :  { %v1192_v60 = vld [vmem:[%s9645_s3 + $0xe88] sm:$0xff]  ;;  %2278 = vmatpush.msrb.mxu2 %v1128_v35 }
 0x1c0   :  { %v996_v32 = vld [vmem:[%s9645_s3 + $0x868] sm:$0xff]  ;;  %2301 = vmatpush.msrb.mxu3 %v1192_v60 }
 0x1c1   :  { %v1060_v13 = vld [vmem:[%s9645_s3 + $0xa68] sm:$0xff]  ;;  %2233 = vmatpush.msrb.mxu0 %v996_v32 }
 0x1c2   :  { %v1124_v23 = vld [vmem:[%s9645_s3 + $0xc68] sm:$0xff]  ;;  %2256 = vmatpush.msrb.mxu1 %v1060_v13 }
 0x1c3   :  { %v1188_v24 = vld [vmem:[%s9645_s3 + $0xe68] sm:$0xff]  ;;  %2279 = vmatpush.msrb.mxu2 %v1124_v23 }
 0x1c4   :  { %v992_v25 = vld [vmem:[%s9645_s3 + $0x848] sm:$0xff]  ;;  %2302 = vmatpush.msrb.mxu3 %v1188_v24 }
 0x1c5   :  { %v1056_v27 = vld [vmem:[%s9645_s3 + $0xa48] sm:$0xff]  ;;  %2234 = vmatpush.msrb.mxu0 %v992_v25 }
 0x1c6   :  { %v1120_v28 = vld [vmem:[%s9645_s3 + $0xc48] sm:$0xff]  ;;  %2257 = vmatpush.msrb.mxu1 %v1056_v27 }
 0x1c7   :  { %v1184_v21 = vld [vmem:[%s9645_s3 + $0xe48] sm:$0xff]  ;;  %2280 = vmatpush.msrb.mxu2 %v1120_v28 }
 0x1c8   :  { %v988_v30 = vld [vmem:[%s9645_s3 + $0x828] sm:$0xff]  ;;  %2303 = vmatpush.msrb.mxu3 %v1184_v21 }
 0x1c9   :  { %v1052_v33 = vld [vmem:[%s9645_s3 + $0xa28] sm:$0xff]  ;;  %2235 = vmatpush.msrb.mxu0 %v988_v30 }
 0x1ca   :  { %v1116_v38 = vld [vmem:[%s9645_s3 + $0xc28] sm:$0xff]  ;;  %2258 = vmatpush.msrb.mxu1 %v1052_v33 }
 0x1cb   :  { %v1180_v39 = vld [vmem:[%s9645_s3 + $0xe28] sm:$0xff]  ;;  %2281 = vmatpush.msrb.mxu2 %v1116_v38 }
 0x1cc   :  { %v984_v42 = vld [vmem:[%s9645_s3 + $0x808] sm:$0xff]  ;;  %2304 = vmatpush.msrb.mxu3 %v1180_v39 }
 0x1cd   :  { %v1048_v48 = vld [vmem:[%s9645_s3 + $0xa08] sm:$0xff]  ;;  %2236 = vmatpush.msrb.mxu0 %v984_v42 }
 0x1ce   :  { %v1112_v52 = vld [vmem:[%s9645_s3 + $0xc08] sm:$0xff]  ;;  %2259 = vmatpush.msrb.mxu1 %v1048_v48  ;;  %2237 = vmatmul.f32.vlgmr.msrb.gmra.mxu0 %v5453_v1 }
 0x1cf   :  { %v1176_v53 = vld [vmem:[%s9645_s3 + $0xe08] sm:$0xff]  ;;  %2282 = vmatpush.msrb.mxu2 %v1112_v52  ;;  %2260 = vmatmul.f32.vlgmr.msrb.gmra.mxu1 %v5465_v6 }
 0x1d0   :  { %2305 = vmatpush.msrb.mxu3 %v1176_v53  ;;  %v1300_v54 = vld [vmem:[%s9645_s3 + $0x11e8] sm:$0xff]  ;;  %2283 = vmatmul.f32.vlgmr.msrb.gmra.mxu2 %v5475_v11 }
 0x1d1   :  { %v1364_v56 = vld [vmem:[%s9645_s3 + $0x13e8] sm:$0xff]  ;;  %2306 = vmatmul.f32.vlgmr.msrb.gmra.mxu3 %v5490_v17  ;;  %2313 = vmatpush.msra.mxu0 %v1300_v54 }
 0x1d2   :  { %v1428_v44 = vld [vmem:[%s9645_s3 + $0x15e8] sm:$0xff]  ;;  %2336 = vmatpush.msra.mxu1 %v1364_v56 }
 0x1d3   :  { %v1492_v57 = vld [vmem:[%s9645_s3 + $0x17e8] sm:$0xff]  ;;  %2359 = vmatpush.msra.mxu2 %v1428_v44 }
 0x1d4   :  { %v1296_v40 = vld [vmem:[%s9645_s3 + $0x11c8] sm:$0xff]  ;;  %2382 = vmatpush.msra.mxu3 %v1492_v57 }
 0x1d5   :  { %v1360_v59 = vld [vmem:[%s9645_s3 + $0x13c8] sm:$0xff]  ;;  %2314 = vmatpush.msra.mxu0 %v1296_v40 }
 0x1d6   :  { %v1424_v62 = vld [vmem:[%s9645_s3 + $0x15c8] sm:$0xff]  ;;  %2337 = vmatpush.msra.mxu1 %v1360_v59  ;;  %2240 = vmatmul.f32.gmra.mxu0 %v5599_v2 }
 0x1d7   :  { %v1488_v0 = vld [vmem:[%s9645_s3 + $0x17c8] sm:$0xff]  ;;  %2360 = vmatpush.msra.mxu2 %v1424_v62  ;;  %2263 = vmatmul.f32.gmra.mxu1 %v5610_v7 }
 0x1d8   :  { %v1292_v58 = vld [vmem:[%s9645_s3 + $0x11a8] sm:$0xff]  ;;  %2383 = vmatpush.msra.mxu3 %v1488_v0  ;;  %2286 = vmatmul.f32.gmra.mxu2 %v5621_v16 }
 0x1d9   :  { %v1356_v63 = vld [vmem:[%s9645_s3 + $0x13a8] sm:$0xff]  ;;  %2315 = vmatpush.msra.mxu0 %v1292_v58  ;;  %2309 = vmatmul.f32.gmra.mxu3 %v5637_v22 }
 0x1da   :  { %v1420_v50 = vld [vmem:[%s9645_s3 + $0x15a8] sm:$0xff]  ;;  %2338 = vmatpush.msra.mxu1 %v1356_v63 }
 0x1db   :  { %v1484_v5 = vld [vmem:[%s9645_s3 + $0x17a8] sm:$0xff]  ;;  %2361 = vmatpush.msra.mxu2 %v1420_v50 }
 0x1dc   :  { %v1288_v9 = vld [vmem:[%s9645_s3 + $0x1188] sm:$0xff]  ;;  %2384 = vmatpush.msra.mxu3 %v1484_v5 }
 0x1dd   :  { %v1352_v14 = vld [vmem:[%s9645_s3 + $0x1388] sm:$0xff]  ;;  %2316 = vmatpush.msra.mxu0 %v1288_v9 }
 0x1de   :  { %v1416_v35 = vld [vmem:[%s9645_s3 + $0x1588] sm:$0xff]  ;;  %2339 = vmatpush.msra.mxu1 %v1352_v14 }
 0x1df   :  { %v1480_v60 = vld [vmem:[%s9645_s3 + $0x1788] sm:$0xff]  ;;  %2362 = vmatpush.msra.mxu2 %v1416_v35 }
 0x1e0   :  { %2385 = vmatpush.msra.mxu3 %v1480_v60  ;;  %v1284_v32 = vld [vmem:[%s9645_s3 + $0x1168] sm:$0xff] }
 0x1e1   :  { %v1348_v13 = vld [vmem:[%s9645_s3 + $0x1368] sm:$0xff]  ;;  %2317 = vmatpush.msra.mxu0 %v1284_v32 }
 0x1e2   :  { %v1412_v23 = vld [vmem:[%s9645_s3 + $0x1568] sm:$0xff]  ;;  %2340 = vmatpush.msra.mxu1 %v1348_v13 }
 0x1e3   :  { %v1476_v24 = vld [vmem:[%s9645_s3 + $0x1768] sm:$0xff]  ;;  %2363 = vmatpush.msra.mxu2 %v1412_v23 }
 0x1e4   :  { %v1280_v25 = vld [vmem:[%s9645_s3 + $0x1148] sm:$0xff]  ;;  %2386 = vmatpush.msra.mxu3 %v1476_v24 }
 0x1e5   :  { %v1344_v27 = vld [vmem:[%s9645_s3 + $0x1348] sm:$0xff]  ;;  %2318 = vmatpush.msra.mxu0 %v1280_v25 }
 0x1e6   :  { %v1408_v28 = vld [vmem:[%s9645_s3 + $0x1548] sm:$0xff]  ;;  %2341 = vmatpush.msra.mxu1 %v1344_v27 }
 0x1e7   :  { %v1472_v21 = vld [vmem:[%s9645_s3 + $0x1748] sm:$0xff]  ;;  %2364 = vmatpush.msra.mxu2 %v1408_v28 }
 0x1e8   :  { %v1276_v30 = vld [vmem:[%s9645_s3 + $0x1128] sm:$0xff]  ;;  %2387 = vmatpush.msra.mxu3 %v1472_v21 }
 0x1e9   :  { %v1340_v33 = vld [vmem:[%s9645_s3 + $0x1328] sm:$0xff]  ;;  %2319 = vmatpush.msra.mxu0 %v1276_v30 }
 0x1ea   :  { %v1404_v38 = vld [vmem:[%s9645_s3 + $0x1528] sm:$0xff]  ;;  %2342 = vmatpush.msra.mxu1 %v1340_v33 }
 0x1eb   :  { %v1468_v39 = vld [vmem:[%s9645_s3 + $0x1728] sm:$0xff]  ;;  %2365 = vmatpush.msra.mxu2 %v1404_v38 }
 0x1ec   :  { %v1272_v42 = vld [vmem:[%s9645_s3 + $0x1108] sm:$0xff]  ;;  %2388 = vmatpush.msra.mxu3 %v1468_v39 }
 0x1ed   :  { %v1336_v48 = vld [vmem:[%s9645_s3 + $0x1308] sm:$0xff]  ;;  %2320 = vmatpush.msra.mxu0 %v1272_v42 }
 0x1ee   :  { %v1400_v52 = vld [vmem:[%s9645_s3 + $0x1508] sm:$0xff]  ;;  %2343 = vmatpush.msra.mxu1 %v1336_v48 }
 0x1ef   :  { %v1464_v53 = vld [vmem:[%s9645_s3 + $0x1708] sm:$0xff]  ;;  %2366 = vmatpush.msra.mxu2 %v1400_v52 }
 0x1f0   :  { %v1268_v54 = vld [vmem:[%s9645_s3 + $0x10e8] sm:$0xff]  ;;  %2389 = vmatpush.msra.mxu3 %v1464_v53 }
 0x1f1   :  { %v1332_v56 = vld [vmem:[%s9645_s3 + $0x12e8] sm:$0xff]  ;;  %2321 = vmatpush.msra.mxu0 %v1268_v54 }
 0x1f2   :  { %v1396_v44 = vld [vmem:[%s9645_s3 + $0x14e8] sm:$0xff]  ;;  %2344 = vmatpush.msra.mxu1 %v1332_v56 }
 0x1f3   :  { %v1460_v57 = vld [vmem:[%s9645_s3 + $0x16e8] sm:$0xff]  ;;  %2367 = vmatpush.msra.mxu2 %v1396_v44 }
 0x1f4   :  { %v1264_v40 = vld [vmem:[%s9645_s3 + $0x10c8] sm:$0xff]  ;;  %2390 = vmatpush.msra.mxu3 %v1460_v57 }
 0x1f5   :  { %v1328_v59 = vld [vmem:[%s9645_s3 + $0x12c8] sm:$0xff]  ;;  %2322 = vmatpush.msra.mxu0 %v1264_v40 }
 0x1f6   :  { %v1392_v62 = vld [vmem:[%s9645_s3 + $0x14c8] sm:$0xff]  ;;  %2345 = vmatpush.msra.mxu1 %v1328_v59 }
 0x1f7   :  { %v1456_v0 = vld [vmem:[%s9645_s3 + $0x16c8] sm:$0xff]  ;;  %2368 = vmatpush.msra.mxu2 %v1392_v62 }
 0x1f8   :  { %v1260_v58 = vld [vmem:[%s9645_s3 + $0x10a8] sm:$0xff]  ;;  %2391 = vmatpush.msra.mxu3 %v1456_v0 }
 0x1f9   :  { %v1324_v63 = vld [vmem:[%s9645_s3 + $0x12a8] sm:$0xff]  ;;  %2323 = vmatpush.msra.mxu0 %v1260_v58 }
 0x1fa   :  { %v1388_v50 = vld [vmem:[%s9645_s3 + $0x14a8] sm:$0xff]  ;;  %2346 = vmatpush.msra.mxu1 %v1324_v63 }
 0x1fb   :  { %v1452_v5 = vld [vmem:[%s9645_s3 + $0x16a8] sm:$0xff]  ;;  %2369 = vmatpush.msra.mxu2 %v1388_v50 }
 0x1fc   :  { %v1256_v9 = vld [vmem:[%s9645_s3 + $0x1088] sm:$0xff]  ;;  %2392 = vmatpush.msra.mxu3 %v1452_v5 }
 0x1fd   :  { %v1320_v14 = vld [vmem:[%s9645_s3 + $0x1288] sm:$0xff]  ;;  %2324 = vmatpush.msra.mxu0 %v1256_v9 }
 0x1fe   :  { %v1384_v35 = vld [vmem:[%s9645_s3 + $0x1488] sm:$0xff]  ;;  %2347 = vmatpush.msra.mxu1 %v1320_v14 }
 0x1ff   :  { %v1448_v60 = vld [vmem:[%s9645_s3 + $0x1688] sm:$0xff]  ;;  %2370 = vmatpush.msra.mxu2 %v1384_v35 }
 0x200   :  { %v1252_v32 = vld [vmem:[%s9645_s3 + $0x1068] sm:$0xff]  ;;  %2393 = vmatpush.msra.mxu3 %v1448_v60 }
 0x201   :  { %v1316_v13 = vld [vmem:[%s9645_s3 + $0x1268] sm:$0xff]  ;;  %2325 = vmatpush.msra.mxu0 %v1252_v32 }
 0x202   :  { %v1380_v23 = vld [vmem:[%s9645_s3 + $0x1468] sm:$0xff]  ;;  %2348 = vmatpush.msra.mxu1 %v1316_v13 }
 0x203   :  { %v1444_v24 = vld [vmem:[%s9645_s3 + $0x1668] sm:$0xff]  ;;  %2371 = vmatpush.msra.mxu2 %v1380_v23 }
 0x204   :  { %v1248_v25 = vld [vmem:[%s9645_s3 + $0x1048] sm:$0xff]  ;;  %2394 = vmatpush.msra.mxu3 %v1444_v24 }
 0x205   :  { %v1312_v27 = vld [vmem:[%s9645_s3 + $0x1248] sm:$0xff]  ;;  %2326 = vmatpush.msra.mxu0 %v1248_v25 }
 0x206   :  { %v1376_v28 = vld [vmem:[%s9645_s3 + $0x1448] sm:$0xff]  ;;  %2349 = vmatpush.msra.mxu1 %v1312_v27 }
 0x207   :  { %v1440_v21 = vld [vmem:[%s9645_s3 + $0x1648] sm:$0xff]  ;;  %2372 = vmatpush.msra.mxu2 %v1376_v28 }
 0x208   :  { %v1244_v30 = vld [vmem:[%s9645_s3 + $0x1028] sm:$0xff]  ;;  %2395 = vmatpush.msra.mxu3 %v1440_v21 }
 0x209   :  { %v1308_v33 = vld [vmem:[%s9645_s3 + $0x1228] sm:$0xff]  ;;  %2327 = vmatpush.msra.mxu0 %v1244_v30 }
 0x20a   :  { %v1372_v38 = vld [vmem:[%s9645_s3 + $0x1428] sm:$0xff]  ;;  %2350 = vmatpush.msra.mxu1 %v1308_v33 }
 0x20b   :  { %v1436_v39 = vld [vmem:[%s9645_s3 + $0x1628] sm:$0xff]  ;;  %2373 = vmatpush.msra.mxu2 %v1372_v38 }
 0x20c   :  { %v1240_v42 = vld [vmem:[%s9645_s3 + $0x1008] sm:$0xff]  ;;  %2396 = vmatpush.msra.mxu3 %v1436_v39 }
 0x20d   :  { %v1304_v48 = vld [vmem:[%s9645_s3 + $0x1208] sm:$0xff]  ;;  %2328 = vmatpush.msra.mxu0 %v1240_v42 }
 0x20e   :  { %v1368_v52 = vld [vmem:[%s9645_s3 + $0x1408] sm:$0xff]  ;;  %2351 = vmatpush.msra.mxu1 %v1304_v48  ;;  %2329 = vmatmul.f32.vlgmr.msra.gmra.mxu0 %v5667_v34 }
 0x20f   :  { %v1432_v53 = vld [vmem:[%s9645_s3 + $0x1608] sm:$0xff]  ;;  %2374 = vmatpush.msra.mxu2 %v1368_v52  ;;  %2352 = vmatmul.f32.vlgmr.msra.gmra.mxu1 %v5679_v43 }
 0x210   :  { %2397 = vmatpush.msra.mxu3 %v1432_v53  ;;  %v1556_v54 = vld [vmem:[%s9645_s3 + $0x19e8] sm:$0xff]  ;;  %2375 = vmatmul.f32.vlgmr.msra.gmra.mxu2 %v5717_v45 }
 0x211   :  { %v1620_v56 = vld [vmem:[%s9645_s3 + $0x1be8] sm:$0xff]  ;;  %2398 = vmatmul.f32.vlgmr.msra.gmra.mxu3 %v5738_v15  ;;  %2405 = vmatpush.msrb.mxu0 %v1556_v54 }
 0x212   :  { %v1684_v44 = vld [vmem:[%s9645_s3 + $0x1de8] sm:$0xff]  ;;  %2428 = vmatpush.msrb.mxu1 %v1620_v56 }
 0x213   :  { %v1748_v57 = vld [vmem:[%s9645_s3 + $0x1fe8] sm:$0xff]  ;;  %2451 = vmatpush.msrb.mxu2 %v1684_v44 }
 0x214   :  { %v1552_v40 = vld [vmem:[%s9645_s3 + $0x19c8] sm:$0xff]  ;;  %2474 = vmatpush.msrb.mxu3 %v1748_v57 }
 0x215   :  { %v1616_v59 = vld [vmem:[%s9645_s3 + $0x1bc8] sm:$0xff]  ;;  %2406 = vmatpush.msrb.mxu0 %v1552_v40 }
 0x216   :  { %v1680_v62 = vld [vmem:[%s9645_s3 + $0x1dc8] sm:$0xff]  ;;  %2429 = vmatpush.msrb.mxu1 %v1616_v59  ;;  %2332 = vmatmul.f32.gmra.mxu0 %v5730_v10 }
 0x217   :  { %v1744_v0 = vld [vmem:[%s9645_s3 + $0x1fc8] sm:$0xff]  ;;  %2452 = vmatpush.msrb.mxu2 %v1680_v62  ;;  %2355 = vmatmul.f32.gmra.mxu1 %v5747_v19 }
 0x218   :  { %v1548_v58 = vld [vmem:[%s9645_s3 + $0x19a8] sm:$0xff]  ;;  %2475 = vmatpush.msrb.mxu3 %v1744_v0  ;;  %2378 = vmatmul.f32.gmra.mxu2 %v5783_v37 }
 0x219   :  { %v1612_v63 = vld [vmem:[%s9645_s3 + $0x1ba8] sm:$0xff]  ;;  %2407 = vmatpush.msrb.mxu0 %v1548_v58  ;;  %2401 = vmatmul.f32.gmra.mxu3 %v5800_v47 }
 0x21a   :  { %v1676_v50 = vld [vmem:[%s9645_s3 + $0x1da8] sm:$0xff]  ;;  %2430 = vmatpush.msrb.mxu1 %v1612_v63 }
 0x21b   :  { %v1740_v5 = vld [vmem:[%s9645_s3 + $0x1fa8] sm:$0xff]  ;;  %2453 = vmatpush.msrb.mxu2 %v1676_v50 }
 0x21c   :  { %v1544_v9 = vld [vmem:[%s9645_s3 + $0x1988] sm:$0xff]  ;;  %2476 = vmatpush.msrb.mxu3 %v1740_v5 }
 0x21d   :  { %v1608_v14 = vld [vmem:[%s9645_s3 + $0x1b88] sm:$0xff]  ;;  %2408 = vmatpush.msrb.mxu0 %v1544_v9 }
 0x21e   :  { %v1672_v35 = vld [vmem:[%s9645_s3 + $0x1d88] sm:$0xff]  ;;  %2431 = vmatpush.msrb.mxu1 %v1608_v14 }
 0x21f   :  { %v1736_v60 = vld [vmem:[%s9645_s3 + $0x1f88] sm:$0xff]  ;;  %2454 = vmatpush.msrb.mxu2 %v1672_v35 }
 0x220   :  { %2477 = vmatpush.msrb.mxu3 %v1736_v60  ;;  %v1540_v32 = vld [vmem:[%s9645_s3 + $0x1968] sm:$0xff] }
 0x221   :  { %v1604_v13 = vld [vmem:[%s9645_s3 + $0x1b68] sm:$0xff]  ;;  %2409 = vmatpush.msrb.mxu0 %v1540_v32 }
 0x222   :  { %v1668_v23 = vld [vmem:[%s9645_s3 + $0x1d68] sm:$0xff]  ;;  %2432 = vmatpush.msrb.mxu1 %v1604_v13 }
 0x223   :  { %v1732_v24 = vld [vmem:[%s9645_s3 + $0x1f68] sm:$0xff]  ;;  %2455 = vmatpush.msrb.mxu2 %v1668_v23 }
 0x224   :  { %v1536_v25 = vld [vmem:[%s9645_s3 + $0x1948] sm:$0xff]  ;;  %2478 = vmatpush.msrb.mxu3 %v1732_v24 }
 0x225   :  { %v1600_v27 = vld [vmem:[%s9645_s3 + $0x1b48] sm:$0xff]  ;;  %2410 = vmatpush.msrb.mxu0 %v1536_v25 }
 0x226   :  { %v1664_v28 = vld [vmem:[%s9645_s3 + $0x1d48] sm:$0xff]  ;;  %2433 = vmatpush.msrb.mxu1 %v1600_v27 }
 0x227   :  { %v1728_v21 = vld [vmem:[%s9645_s3 + $0x1f48] sm:$0xff]  ;;  %2456 = vmatpush.msrb.mxu2 %v1664_v28 }
 0x228   :  { %v1532_v30 = vld [vmem:[%s9645_s3 + $0x1928] sm:$0xff]  ;;  %2479 = vmatpush.msrb.mxu3 %v1728_v21 }
 0x229   :  { %v1596_v33 = vld [vmem:[%s9645_s3 + $0x1b28] sm:$0xff]  ;;  %2411 = vmatpush.msrb.mxu0 %v1532_v30 }
 0x22a   :  { %v1660_v38 = vld [vmem:[%s9645_s3 + $0x1d28] sm:$0xff]  ;;  %2434 = vmatpush.msrb.mxu1 %v1596_v33 }
 0x22b   :  { %v1724_v39 = vld [vmem:[%s9645_s3 + $0x1f28] sm:$0xff]  ;;  %2457 = vmatpush.msrb.mxu2 %v1660_v38 }
 0x22c   :  { %v1528_v42 = vld [vmem:[%s9645_s3 + $0x1908] sm:$0xff]  ;;  %2480 = vmatpush.msrb.mxu3 %v1724_v39 }
 0x22d   :  { %v1592_v48 = vld [vmem:[%s9645_s3 + $0x1b08] sm:$0xff]  ;;  %2412 = vmatpush.msrb.mxu0 %v1528_v42 }
 0x22e   :  { %v1656_v52 = vld [vmem:[%s9645_s3 + $0x1d08] sm:$0xff]  ;;  %2435 = vmatpush.msrb.mxu1 %v1592_v48 }
 0x22f   :  { %v1720_v53 = vld [vmem:[%s9645_s3 + $0x1f08] sm:$0xff]  ;;  %2458 = vmatpush.msrb.mxu2 %v1656_v52 }
 0x230   :  { %v1524_v54 = vld [vmem:[%s9645_s3 + $0x18e8] sm:$0xff]  ;;  %2481 = vmatpush.msrb.mxu3 %v1720_v53 }
 0x231   :  { %v1588_v56 = vld [vmem:[%s9645_s3 + $0x1ae8] sm:$0xff]  ;;  %2413 = vmatpush.msrb.mxu0 %v1524_v54  ;;  %v789_v54 = vld [vmem:[%s9645_s3 + $0x1f0] sm:$0xff] }
 0x232   :  { %v1652_v44 = vld [vmem:[%s9645_s3 + $0x1ce8] sm:$0xff]  ;;  %2436 = vmatpush.msrb.mxu1 %v1588_v56  ;;  %v853_v56 = vld [vmem:[%s9645_s3 + $0x3f0] sm:$0xff] }
 0x233   :  { %v1716_v57 = vld [vmem:[%s9645_s3 + $0x1ee8] sm:$0xff]  ;;  %2459 = vmatpush.msrb.mxu2 %v1652_v44  ;;  %v917_v44 = vld [vmem:[%s9645_s3 + $0x5f0] sm:$0xff] }
 0x234   :  { %v1520_v40 = vld [vmem:[%s9645_s3 + $0x18c8] sm:$0xff]  ;;  %2482 = vmatpush.msrb.mxu3 %v1716_v57  ;;  %v981_v57 = vld [vmem:[%s9645_s3 + $0x7f0] sm:$0xff] }
 0x235   :  { %v1584_v59 = vld [vmem:[%s9645_s3 + $0x1ac8] sm:$0xff]  ;;  %2414 = vmatpush.msrb.mxu0 %v1520_v40  ;;  %v785_v40 = vld [vmem:[%s9645_s3 + $0x1d0] sm:$0xff] }
 0x236   :  { %v1648_v62 = vld [vmem:[%s9645_s3 + $0x1cc8] sm:$0xff]  ;;  %2437 = vmatpush.msrb.mxu1 %v1584_v59  ;;  %v849_v59 = vld [vmem:[%s9645_s3 + $0x3d0] sm:$0xff] }
 0x237   :  { %v1712_v0 = vld [vmem:[%s9645_s3 + $0x1ec8] sm:$0xff]  ;;  %2460 = vmatpush.msrb.mxu2 %v1648_v62  ;;  %v913_v62 = vld [vmem:[%s9645_s3 + $0x5d0] sm:$0xff] }
 0x238   :  { %v1516_v58 = vld [vmem:[%s9645_s3 + $0x18a8] sm:$0xff]  ;;  %2483 = vmatpush.msrb.mxu3 %v1712_v0  ;;  %v977_v0 = vld [vmem:[%s9645_s3 + $0x7d0] sm:$0xff] }
 0x239   :  { %v1580_v63 = vld [vmem:[%s9645_s3 + $0x1aa8] sm:$0xff]  ;;  %2415 = vmatpush.msrb.mxu0 %v1516_v58  ;;  %v781_v58 = vld [vmem:[%s9645_s3 + $0x1b0] sm:$0xff] }
 0x23a   :  { %v1644_v50 = vld [vmem:[%s9645_s3 + $0x1ca8] sm:$0xff]  ;;  %2438 = vmatpush.msrb.mxu1 %v1580_v63  ;;  %v845_v63 = vld [vmem:[%s9645_s3 + $0x3b0] sm:$0xff] }
 0x23b   :  { %v1708_v5 = vld [vmem:[%s9645_s3 + $0x1ea8] sm:$0xff]  ;;  %2461 = vmatpush.msrb.mxu2 %v1644_v50  ;;  %v909_v50 = vld [vmem:[%s9645_s3 + $0x5b0] sm:$0xff] }
 0x23c   :  { %v1512_v9 = vld [vmem:[%s9645_s3 + $0x1888] sm:$0xff]  ;;  %2484 = vmatpush.msrb.mxu3 %v1708_v5  ;;  %v973_v5 = vld [vmem:[%s9645_s3 + $0x7b0] sm:$0xff] }
 0x23d   :  { %v1576_v14 = vld [vmem:[%s9645_s3 + $0x1a88] sm:$0xff]  ;;  %2416 = vmatpush.msrb.mxu0 %v1512_v9  ;;  %v777_v9 = vld [vmem:[%s9645_s3 + $0x190] sm:$0xff] }
 0x23e   :  { %v1640_v35 = vld [vmem:[%s9645_s3 + $0x1c88] sm:$0xff]  ;;  %2439 = vmatpush.msrb.mxu1 %v1576_v14  ;;  %v841_v14 = vld [vmem:[%s9645_s3 + $0x390] sm:$0xff] }
 0x23f   :  { %v1704_v60 = vld [vmem:[%s9645_s3 + $0x1e88] sm:$0xff]  ;;  %2462 = vmatpush.msrb.mxu2 %v1640_v35  ;;  %v905_v35 = vld [vmem:[%s9645_s3 + $0x590] sm:$0xff] }
 0x240   :  { %v1508_v32 = vld [vmem:[%s9645_s3 + $0x1868] sm:$0xff]  ;;  %2485 = vmatpush.msrb.mxu3 %v1704_v60  ;;  %v969_v60 = vld [vmem:[%s9645_s3 + $0x790] sm:$0xff] }
 0x241   :  { %v1572_v13 = vld [vmem:[%s9645_s3 + $0x1a68] sm:$0xff]  ;;  %2417 = vmatpush.msrb.mxu0 %v1508_v32  ;;  %v773_v32 = vld [vmem:[%s9645_s3 + $0x170] sm:$0xff] }
 0x242   :  { %v1636_v23 = vld [vmem:[%s9645_s3 + $0x1c68] sm:$0xff]  ;;  %2440 = vmatpush.msrb.mxu1 %v1572_v13  ;;  %v837_v13 = vld [vmem:[%s9645_s3 + $0x370] sm:$0xff] }
 0x243   :  { %v1700_v24 = vld [vmem:[%s9645_s3 + $0x1e68] sm:$0xff]  ;;  %2463 = vmatpush.msrb.mxu2 %v1636_v23  ;;  %v901_v23 = vld [vmem:[%s9645_s3 + $0x570] sm:$0xff] }
 0x244   :  { %v1504_v25 = vld [vmem:[%s9645_s3 + $0x1848] sm:$0xff]  ;;  %2486 = vmatpush.msrb.mxu3 %v1700_v24  ;;  %v965_v24 = vld [vmem:[%s9645_s3 + $0x770] sm:$0xff] }
 0x245   :  { %v1568_v27 = vld [vmem:[%s9645_s3 + $0x1a48] sm:$0xff]  ;;  %2418 = vmatpush.msrb.mxu0 %v1504_v25  ;;  %v769_v25 = vld [vmem:[%s9645_s3 + $0x150] sm:$0xff] }
 0x246   :  { %v1632_v28 = vld [vmem:[%s9645_s3 + $0x1c48] sm:$0xff]  ;;  %2441 = vmatpush.msrb.mxu1 %v1568_v27  ;;  %v833_v27 = vld [vmem:[%s9645_s3 + $0x350] sm:$0xff] }
 0x247   :  { %v1696_v21 = vld [vmem:[%s9645_s3 + $0x1e48] sm:$0xff]  ;;  %2464 = vmatpush.msrb.mxu2 %v1632_v28  ;;  %v897_v28 = vld [vmem:[%s9645_s3 + $0x550] sm:$0xff] }
 0x248   :  { %v1500_v30 = vld [vmem:[%s9645_s3 + $0x1828] sm:$0xff]  ;;  %2487 = vmatpush.msrb.mxu3 %v1696_v21  ;;  %v961_v21 = vld [vmem:[%s9645_s3 + $0x750] sm:$0xff] }
 0x249   :  { %v1564_v33 = vld [vmem:[%s9645_s3 + $0x1a28] sm:$0xff]  ;;  %2419 = vmatpush.msrb.mxu0 %v1500_v30  ;;  %v765_v30 = vld [vmem:[%s9645_s3 + $0x130] sm:$0xff] }
 0x24a   :  { %v1628_v38 = vld [vmem:[%s9645_s3 + $0x1c28] sm:$0xff]  ;;  %2442 = vmatpush.msrb.mxu1 %v1564_v33  ;;  %v829_v33 = vld [vmem:[%s9645_s3 + $0x330] sm:$0xff] }
 0x24b   :  { %v1692_v39 = vld [vmem:[%s9645_s3 + $0x1e28] sm:$0xff]  ;;  %2465 = vmatpush.msrb.mxu2 %v1628_v38  ;;  %v893_v38 = vld [vmem:[%s9645_s3 + $0x530] sm:$0xff] }
 0x24c   :  { %v1496_v42 = vld [vmem:[%s9645_s3 + $0x1808] sm:$0xff]  ;;  %2488 = vmatpush.msrb.mxu3 %v1692_v39  ;;  %v957_v39 = vld [vmem:[%s9645_s3 + $0x730] sm:$0xff] }
 0x24d   :  { %v1560_v48 = vld [vmem:[%s9645_s3 + $0x1a08] sm:$0xff]  ;;  %2420 = vmatpush.msrb.mxu0 %v1496_v42  ;;  %v761_v42 = vld [vmem:[%s9645_s3 + $0x110] sm:$0xff] }
 0x24e   :  { %v1624_v52 = vld [vmem:[%s9645_s3 + $0x1c08] sm:$0xff]  ;;  %2443 = vmatpush.msrb.mxu1 %v1560_v48  ;;  %2421 = vmatmul.f32.vlgmr.msrb.gmra.mxu0 %v5904_v46  ;;  %v825_v48 = vld [vmem:[%s9645_s3 + $0x310] sm:$0xff] }
 0x24f   :  { %v1688_v53 = vld [vmem:[%s9645_s3 + $0x1e08] sm:$0xff]  ;;  %2466 = vmatpush.msrb.mxu2 %v1624_v52  ;;  %2444 = vmatmul.f32.vlgmr.msrb.gmra.mxu1 %v5915_v55  ;;  %v889_v52 = vld [vmem:[%s9645_s3 + $0x510] sm:$0xff] }
 0x250   :  { %2489 = vmatpush.msrb.mxu3 %v1688_v53  ;;  %2467 = vmatmul.f32.vlgmr.msrb.gmra.mxu2 %v5953_v20  ;;  %v953_v53 = vld [vmem:[%s9645_s3 + $0x710] sm:$0xff] }
 0x251   :  { %2490 = vmatmul.f32.vlgmr.msrb.gmra.mxu3 %v5974_v29  ;;  %2497 = vmatpush.msra.mxu0 %v789_v54  ;;  %v757_v54 = vld [vmem:[%s9645_s3 + $0xf0] sm:$0xff] }
 0x252   :  { %2520 = vmatpush.msra.mxu1 %v853_v56  ;;  %2543 = vmatpush.msra.mxu2 %v917_v44  ;;  %v821_v56 = vld [vmem:[%s9645_s3 + $0x2f0] sm:$0xff] }
 0x253   :  { %2566 = vmatpush.msra.mxu3 %v981_v57  ;;  %2498 = vmatpush.msra.mxu0 %v785_v40  ;;  %v885_v44 = vld [vmem:[%s9645_s3 + $0x4f0] sm:$0xff] }
 0x254   :  { %2521 = vmatpush.msra.mxu1 %v849_v59  ;;  %2544 = vmatpush.msra.mxu2 %v913_v62  ;;  %v949_v57 = vld [vmem:[%s9645_s3 + $0x6f0] sm:$0xff] }
 0x255   :  { %2567 = vmatpush.msra.mxu3 %v977_v0  ;;  %2499 = vmatpush.msra.mxu0 %v781_v58  ;;  %v753_v40 = vld [vmem:[%s9645_s3 + $0xd0] sm:$0xff] }
 0x256   :  { %2522 = vmatpush.msra.mxu1 %v845_v63  ;;  %2545 = vmatpush.msra.mxu2 %v909_v50  ;;  %v817_v59 = vld [vmem:[%s9645_s3 + $0x2d0] sm:$0xff] }
 0x257   :  { %2568 = vmatpush.msra.mxu3 %v973_v5  ;;  %2500 = vmatpush.msra.mxu0 %v777_v9  ;;  %v881_v62 = vld [vmem:[%s9645_s3 + $0x4d0] sm:$0xff] }
 0x258   :  { %2523 = vmatpush.msra.mxu1 %v841_v14  ;;  %2546 = vmatpush.msra.mxu2 %v905_v35  ;;  %v945_v0 = vld [vmem:[%s9645_s3 + $0x6d0] sm:$0xff] }
 0x259   :  { %2569 = vmatpush.msra.mxu3 %v969_v60  ;;  %2424 = vmatmul.f32.gmra.mxu0 %v5966_v26  ;;  %v749_v58 = vld [vmem:[%s9645_s3 + $0xb0] sm:$0xff] }
 0x25a   :  { %2447 = vmatmul.f32.gmra.mxu1 %v5983_v49  ;;  %2470 = vmatmul.f32.gmra.mxu2 %v6019_v61  ;;  %v813_v63 = vld [vmem:[%s9645_s3 + $0x2b0] sm:$0xff] }
 0x25b   :  { %2493 = vmatmul.f32.gmra.mxu3 %v6036_v3  ;;  %2501 = vmatpush.msra.mxu0 %v773_v32  ;;  %v877_v50 = vld [vmem:[%s9645_s3 + $0x4b0] sm:$0xff] }
 0x25c   :  { %2524 = vmatpush.msra.mxu1 %v837_v13  ;;  %2547 = vmatpush.msra.mxu2 %v901_v23  ;;  %v941_v5 = vld [vmem:[%s9645_s3 + $0x6b0] sm:$0xff] }
 0x25d   :  { %2570 = vmatpush.msra.mxu3 %v965_v24  ;;  %2502 = vmatpush.msra.mxu0 %v769_v25  ;;  %v745_v9 = vld [vmem:[%s9645_s3 + $0x90] sm:$0xff] }
 0x25e   :  { %2525 = vmatpush.msra.mxu1 %v833_v27  ;;  %2548 = vmatpush.msra.mxu2 %v897_v28  ;;  %v809_v14 = vld [vmem:[%s9645_s3 + $0x290] sm:$0xff] }
 0x25f   :  { %2571 = vmatpush.msra.mxu3 %v961_v21  ;;  %2503 = vmatpush.msra.mxu0 %v765_v30  ;;  %v873_v35 = vld [vmem:[%s9645_s3 + $0x490] sm:$0xff] }
 0x260   :  { %2526 = vmatpush.msra.mxu1 %v829_v33  ;;  %2549 = vmatpush.msra.mxu2 %v893_v38  ;;  %v937_v60 = vld [vmem:[%s9645_s3 + $0x690] sm:$0xff] }
 0x261   :  { %2572 = vmatpush.msra.mxu3 %v957_v39  ;;  %2504 = vmatpush.msra.mxu0 %v761_v42  ;;  %v741_v32 = vld [vmem:[%s9645_s3 + $0x70] sm:$0xff] }
 0x262   :  { %2527 = vmatpush.msra.mxu1 %v825_v48  ;;  %2550 = vmatpush.msra.mxu2 %v889_v52  ;;  %v805_v13 = vld [vmem:[%s9645_s3 + $0x270] sm:$0xff] }
 0x263   :  { %2573 = vmatpush.msra.mxu3 %v953_v53  ;;  %2505 = vmatpush.msra.mxu0 %v757_v54  ;;  %v869_v23 = vld [vmem:[%s9645_s3 + $0x470] sm:$0xff] }
 0x264   :  { %2528 = vmatpush.msra.mxu1 %v821_v56  ;;  %2551 = vmatpush.msra.mxu2 %v885_v44  ;;  %v933_v24 = vld [vmem:[%s9645_s3 + $0x670] sm:$0xff] }
 0x265   :  { %2574 = vmatpush.msra.mxu3 %v949_v57  ;;  %2506 = vmatpush.msra.mxu0 %v753_v40  ;;  %v737_v25 = vld [vmem:[%s9645_s3 + $0x50] sm:$0xff] }
 0x266   :  { %2529 = vmatpush.msra.mxu1 %v817_v59  ;;  %2552 = vmatpush.msra.mxu2 %v881_v62  ;;  %v801_v27 = vld [vmem:[%s9645_s3 + $0x250] sm:$0xff] }
 0x267   :  { %2575 = vmatpush.msra.mxu3 %v945_v0  ;;  %2507 = vmatpush.msra.mxu0 %v749_v58  ;;  %v865_v28 = vld [vmem:[%s9645_s3 + $0x450] sm:$0xff] }
 0x268   :  { %2530 = vmatpush.msra.mxu1 %v813_v63  ;;  %2553 = vmatpush.msra.mxu2 %v877_v50  ;;  %v929_v21 = vld [vmem:[%s9645_s3 + $0x650] sm:$0xff] }
 0x269   :  { %2576 = vmatpush.msra.mxu3 %v941_v5  ;;  %2508 = vmatpush.msra.mxu0 %v745_v9  ;;  %v733_v30 = vld [vmem:[%s9645_s3 + $0x30] sm:$0xff] }
 0x26a   :  { %2531 = vmatpush.msra.mxu1 %v809_v14  ;;  %2554 = vmatpush.msra.mxu2 %v873_v35  ;;  %v797_v33 = vld [vmem:[%s9645_s3 + $0x230] sm:$0xff] }
 0x26b   :  { %2577 = vmatpush.msra.mxu3 %v937_v60  ;;  %2509 = vmatpush.msra.mxu0 %v741_v32  ;;  %v861_v38 = vld [vmem:[%s9645_s3 + $0x430] sm:$0xff] }
 0x26c   :  { %2532 = vmatpush.msra.mxu1 %v805_v13  ;;  %2555 = vmatpush.msra.mxu2 %v869_v23  ;;  %v925_v39 = vld [vmem:[%s9645_s3 + $0x630] sm:$0xff] }
 0x26d   :  { %2578 = vmatpush.msra.mxu3 %v933_v24  ;;  %2510 = vmatpush.msra.mxu0 %v737_v25  ;;  %v729_v42 = vld [vmem:[%s9645_s3 + $0x10] sm:$0xff] }
 0x26e   :  { %2533 = vmatpush.msra.mxu1 %v801_v27  ;;  %2556 = vmatpush.msra.mxu2 %v865_v28  ;;  %v793_v48 = vld [vmem:[%s9645_s3 + $0x210] sm:$0xff] }
 0x26f   :  { %2579 = vmatpush.msra.mxu3 %v929_v21  ;;  %2511 = vmatpush.msra.mxu0 %v733_v30  ;;  %v857_v52 = vld [vmem:[%s9645_s3 + $0x410] sm:$0xff] }
 0x270   :  { %2534 = vmatpush.msra.mxu1 %v797_v33  ;;  %v921_v53 = vld [vmem:[%s9645_s3 + $0x610] sm:$0xff]  ;;  %2557 = vmatpush.msra.mxu2 %v861_v38 }
 0x271   :  { %2580 = vmatpush.msra.mxu3 %v925_v39  ;;  %2512 = vmatpush.msra.mxu0 %v729_v42  ;;  %v1045_v54 = vld [vmem:[%s9645_s3 + $0x9f0] sm:$0xff] }
 0x272   :  { %2535 = vmatpush.msra.mxu1 %v793_v48  ;;  %2558 = vmatpush.msra.mxu2 %v857_v52  ;;  %v1109_v56 = vld [vmem:[%s9645_s3 + $0xbf0] sm:$0xff] }
 0x273   :  { %2581 = vmatpush.msra.mxu3 %v921_v53  ;;  %2513 = vmatmul.f32.vlgmr.msra.gmra.mxu0 %v5314_v4  ;;  %v1173_v44 = vld [vmem:[%s9645_s3 + $0xdf0] sm:$0xff] }
 0x274   :  { %2536 = vmatmul.f32.vlgmr.msra.gmra.mxu1 %v5325_v8  ;;  %v1237_v57 = vld [vmem:[%s9645_s3 + $0xff0] sm:$0xff]  ;;  %2559 = vmatmul.f32.vlgmr.msra.gmra.mxu2 %v5335_v12 }
 0x275   :  { %2582 = vmatmul.f32.vlgmr.msra.gmra.mxu3 %v5350_v18  ;;  %v1041_v40 = vld [vmem:[%s9645_s3 + $0x9d0] sm:$0xff]  ;;  %2589 = vmatpush.msrb.mxu0 %v1045_v54 }
 0x276   :  { %v1105_v59 = vld [vmem:[%s9645_s3 + $0xbd0] sm:$0xff]  ;;  %2612 = vmatpush.msrb.mxu1 %v1109_v56  ;;  %2635 = vmatpush.msrb.mxu2 %v1173_v44 }
 0x277   :  { %v1169_v62 = vld [vmem:[%s9645_s3 + $0xdd0] sm:$0xff]  ;;  %2658 = vmatpush.msrb.mxu3 %v1237_v57  ;;  %2590 = vmatpush.msrb.mxu0 %v1041_v40 }
 0x278   :  { %v1233_v0 = vld [vmem:[%s9645_s3 + $0xfd0] sm:$0xff]  ;;  %2613 = vmatpush.msrb.mxu1 %v1105_v59  ;;  %2636 = vmatpush.msrb.mxu2 %v1169_v62 }
 0x279   :  { %v1037_v58 = vld [vmem:[%s9645_s3 + $0x9b0] sm:$0xff]  ;;  %2659 = vmatpush.msrb.mxu3 %v1233_v0 }
 0x27a   :  { %v1101_v63 = vld [vmem:[%s9645_s3 + $0xbb0] sm:$0xff]  ;;  %2591 = vmatpush.msrb.mxu0 %v1037_v58 }
 0x27b   :  { %v1165_v50 = vld [vmem:[%s9645_s3 + $0xdb0] sm:$0xff]  ;;  %2614 = vmatpush.msrb.mxu1 %v1101_v63  ;;  %2516 = vmatmul.f32.gmra.mxu0 %v5381_v31 }
 0x27c   :  { %v1229_v5 = vld [vmem:[%s9645_s3 + $0xfb0] sm:$0xff]  ;;  %2637 = vmatpush.msrb.mxu2 %v1165_v50  ;;  %2539 = vmatmul.f32.gmra.mxu1 %v5393_v36 }
 0x27d   :  { %v1033_v9 = vld [vmem:[%s9645_s3 + $0x990] sm:$0xff]  ;;  %2660 = vmatpush.msrb.mxu3 %v1229_v5  ;;  %2562 = vmatmul.f32.gmra.mxu2 %v5404_v41 }
 0x27e   :  { %v1097_v14 = vld [vmem:[%s9645_s3 + $0xb90] sm:$0xff]  ;;  %2592 = vmatpush.msrb.mxu0 %v1033_v9  ;;  %2585 = vmatmul.f32.gmra.mxu3 %v5421_v51 }
 0x27f   :  { %v1161_v35 = vld [vmem:[%s9645_s3 + $0xd90] sm:$0xff]  ;;  %2615 = vmatpush.msrb.mxu1 %v1097_v14 }
 0x280   :  { %v1225_v60 = vld [vmem:[%s9645_s3 + $0xf90] sm:$0xff]  ;;  %2638 = vmatpush.msrb.mxu2 %v1161_v35 }
 0x281   :  { %2661 = vmatpush.msrb.mxu3 %v1225_v60  ;;  %v1029_v32 = vld [vmem:[%s9645_s3 + $0x970] sm:$0xff] }
 0x282   :  { %v1093_v13 = vld [vmem:[%s9645_s3 + $0xb70] sm:$0xff]  ;;  %2593 = vmatpush.msrb.mxu0 %v1029_v32 }
 0x283   :  { %v1157_v23 = vld [vmem:[%s9645_s3 + $0xd70] sm:$0xff]  ;;  %2616 = vmatpush.msrb.mxu1 %v1093_v13 }
 0x284   :  { %v1221_v24 = vld [vmem:[%s9645_s3 + $0xf70] sm:$0xff]  ;;  %2639 = vmatpush.msrb.mxu2 %v1157_v23 }
 0x285   :  { %v1025_v25 = vld [vmem:[%s9645_s3 + $0x950] sm:$0xff]  ;;  %2662 = vmatpush.msrb.mxu3 %v1221_v24 }
 0x286   :  { %v1089_v27 = vld [vmem:[%s9645_s3 + $0xb50] sm:$0xff]  ;;  %2594 = vmatpush.msrb.mxu0 %v1025_v25 }
 0x287   :  { %v1153_v28 = vld [vmem:[%s9645_s3 + $0xd50] sm:$0xff]  ;;  %2617 = vmatpush.msrb.mxu1 %v1089_v27 }
 0x288   :  { %v1217_v21 = vld [vmem:[%s9645_s3 + $0xf50] sm:$0xff]  ;;  %2640 = vmatpush.msrb.mxu2 %v1153_v28 }
 0x289   :  { %v1021_v30 = vld [vmem:[%s9645_s3 + $0x930] sm:$0xff]  ;;  %2663 = vmatpush.msrb.mxu3 %v1217_v21 }
 0x28a   :  { %v1085_v33 = vld [vmem:[%s9645_s3 + $0xb30] sm:$0xff]  ;;  %2595 = vmatpush.msrb.mxu0 %v1021_v30 }
 0x28b   :  { %v1149_v38 = vld [vmem:[%s9645_s3 + $0xd30] sm:$0xff]  ;;  %2618 = vmatpush.msrb.mxu1 %v1085_v33 }
 0x28c   :  { %v1213_v39 = vld [vmem:[%s9645_s3 + $0xf30] sm:$0xff]  ;;  %2641 = vmatpush.msrb.mxu2 %v1149_v38 }
 0x28d   :  { %v1017_v42 = vld [vmem:[%s9645_s3 + $0x910] sm:$0xff]  ;;  %2664 = vmatpush.msrb.mxu3 %v1213_v39 }
 0x28e   :  { %v1081_v48 = vld [vmem:[%s9645_s3 + $0xb10] sm:$0xff]  ;;  %2596 = vmatpush.msrb.mxu0 %v1017_v42 }
 0x28f   :  { %v1145_v52 = vld [vmem:[%s9645_s3 + $0xd10] sm:$0xff]  ;;  %2619 = vmatpush.msrb.mxu1 %v1081_v48 }
 0x290   :  { %v1209_v53 = vld [vmem:[%s9645_s3 + $0xf10] sm:$0xff]  ;;  %2642 = vmatpush.msrb.mxu2 %v1145_v52 }
 0x291   :  { %v1013_v54 = vld [vmem:[%s9645_s3 + $0x8f0] sm:$0xff]  ;;  %2665 = vmatpush.msrb.mxu3 %v1209_v53 }
 0x292   :  { %v1077_v56 = vld [vmem:[%s9645_s3 + $0xaf0] sm:$0xff]  ;;  %2597 = vmatpush.msrb.mxu0 %v1013_v54 }
 0x293   :  { %v1141_v44 = vld [vmem:[%s9645_s3 + $0xcf0] sm:$0xff]  ;;  %2620 = vmatpush.msrb.mxu1 %v1077_v56 }
 0x294   :  { %v1205_v57 = vld [vmem:[%s9645_s3 + $0xef0] sm:$0xff]  ;;  %2643 = vmatpush.msrb.mxu2 %v1141_v44 }
 0x295   :  { %v1009_v40 = vld [vmem:[%s9645_s3 + $0x8d0] sm:$0xff]  ;;  %2666 = vmatpush.msrb.mxu3 %v1205_v57 }
 0x296   :  { %v1073_v59 = vld [vmem:[%s9645_s3 + $0xad0] sm:$0xff]  ;;  %2598 = vmatpush.msrb.mxu0 %v1009_v40 }
 0x297   :  { %v1137_v62 = vld [vmem:[%s9645_s3 + $0xcd0] sm:$0xff]  ;;  %2621 = vmatpush.msrb.mxu1 %v1073_v59 }
 0x298   :  { %v1201_v0 = vld [vmem:[%s9645_s3 + $0xed0] sm:$0xff]  ;;  %2644 = vmatpush.msrb.mxu2 %v1137_v62 }
 0x299   :  { %v1005_v58 = vld [vmem:[%s9645_s3 + $0x8b0] sm:$0xff]  ;;  %2667 = vmatpush.msrb.mxu3 %v1201_v0 }
 0x29a   :  { %v1069_v63 = vld [vmem:[%s9645_s3 + $0xab0] sm:$0xff]  ;;  %2599 = vmatpush.msrb.mxu0 %v1005_v58 }
 0x29b   :  { %v1133_v50 = vld [vmem:[%s9645_s3 + $0xcb0] sm:$0xff]  ;;  %2622 = vmatpush.msrb.mxu1 %v1069_v63 }
 0x29c   :  { %v1197_v5 = vld [vmem:[%s9645_s3 + $0xeb0] sm:$0xff]  ;;  %2645 = vmatpush.msrb.mxu2 %v1133_v50 }
 0x29d   :  { %v1001_v9 = vld [vmem:[%s9645_s3 + $0x890] sm:$0xff]  ;;  %2668 = vmatpush.msrb.mxu3 %v1197_v5 }
 0x29e   :  { %v1065_v14 = vld [vmem:[%s9645_s3 + $0xa90] sm:$0xff]  ;;  %2600 = vmatpush.msrb.mxu0 %v1001_v9 }
 0x29f   :  { %v1129_v35 = vld [vmem:[%s9645_s3 + $0xc90] sm:$0xff]  ;;  %2623 = vmatpush.msrb.mxu1 %v1065_v14 }
 0x2a0   :  { %v1193_v60 = vld [vmem:[%s9645_s3 + $0xe90] sm:$0xff]  ;;  %2646 = vmatpush.msrb.mxu2 %v1129_v35 }
 0x2a1   :  { %v997_v32 = vld [vmem:[%s9645_s3 + $0x870] sm:$0xff]  ;;  %2669 = vmatpush.msrb.mxu3 %v1193_v60 }
 0x2a2   :  { %v1061_v13 = vld [vmem:[%s9645_s3 + $0xa70] sm:$0xff]  ;;  %2601 = vmatpush.msrb.mxu0 %v997_v32 }
 0x2a3   :  { %v1125_v23 = vld [vmem:[%s9645_s3 + $0xc70] sm:$0xff]  ;;  %2624 = vmatpush.msrb.mxu1 %v1061_v13 }
 0x2a4   :  { %v1189_v24 = vld [vmem:[%s9645_s3 + $0xe70] sm:$0xff]  ;;  %2647 = vmatpush.msrb.mxu2 %v1125_v23 }
 0x2a5   :  { %v993_v25 = vld [vmem:[%s9645_s3 + $0x850] sm:$0xff]  ;;  %2670 = vmatpush.msrb.mxu3 %v1189_v24 }
 0x2a6   :  { %v1057_v27 = vld [vmem:[%s9645_s3 + $0xa50] sm:$0xff]  ;;  %2602 = vmatpush.msrb.mxu0 %v993_v25 }
 0x2a7   :  { %v1121_v28 = vld [vmem:[%s9645_s3 + $0xc50] sm:$0xff]  ;;  %2625 = vmatpush.msrb.mxu1 %v1057_v27 }
 0x2a8   :  { %v1185_v21 = vld [vmem:[%s9645_s3 + $0xe50] sm:$0xff]  ;;  %2648 = vmatpush.msrb.mxu2 %v1121_v28 }
 0x2a9   :  { %v989_v30 = vld [vmem:[%s9645_s3 + $0x830] sm:$0xff]  ;;  %2671 = vmatpush.msrb.mxu3 %v1185_v21 }
 0x2aa   :  { %v1053_v33 = vld [vmem:[%s9645_s3 + $0xa30] sm:$0xff]  ;;  %2603 = vmatpush.msrb.mxu0 %v989_v30 }
 0x2ab   :  { %v1117_v38 = vld [vmem:[%s9645_s3 + $0xc30] sm:$0xff]  ;;  %2626 = vmatpush.msrb.mxu1 %v1053_v33 }
 0x2ac   :  { %v1181_v39 = vld [vmem:[%s9645_s3 + $0xe30] sm:$0xff]  ;;  %2649 = vmatpush.msrb.mxu2 %v1117_v38 }
 0x2ad   :  { %v985_v42 = vld [vmem:[%s9645_s3 + $0x810] sm:$0xff]  ;;  %2672 = vmatpush.msrb.mxu3 %v1181_v39 }
 0x2ae   :  { %v1049_v48 = vld [vmem:[%s9645_s3 + $0xa10] sm:$0xff]  ;;  %2604 = vmatpush.msrb.mxu0 %v985_v42 }
 0x2af   :  { %v1113_v52 = vld [vmem:[%s9645_s3 + $0xc10] sm:$0xff]  ;;  %2627 = vmatpush.msrb.mxu1 %v1049_v48  ;;  %2605 = vmatmul.f32.vlgmr.msrb.gmra.mxu0 %v5453_v1 }
 0x2b0   :  { %v1177_v53 = vld [vmem:[%s9645_s3 + $0xe10] sm:$0xff]  ;;  %2650 = vmatpush.msrb.mxu2 %v1113_v52  ;;  %2628 = vmatmul.f32.vlgmr.msrb.gmra.mxu1 %v5465_v6 }
 0x2b1   :  { %2673 = vmatpush.msrb.mxu3 %v1177_v53  ;;  %v1301_v54 = vld [vmem:[%s9645_s3 + $0x11f0] sm:$0xff]  ;;  %2651 = vmatmul.f32.vlgmr.msrb.gmra.mxu2 %v5475_v11 }
 0x2b2   :  { %v1365_v56 = vld [vmem:[%s9645_s3 + $0x13f0] sm:$0xff]  ;;  %2674 = vmatmul.f32.vlgmr.msrb.gmra.mxu3 %v5490_v17  ;;  %2681 = vmatpush.msra.mxu0 %v1301_v54 }
 0x2b3   :  { %v1429_v44 = vld [vmem:[%s9645_s3 + $0x15f0] sm:$0xff]  ;;  %2704 = vmatpush.msra.mxu1 %v1365_v56 }
 0x2b4   :  { %v1493_v57 = vld [vmem:[%s9645_s3 + $0x17f0] sm:$0xff]  ;;  %2727 = vmatpush.msra.mxu2 %v1429_v44 }
 0x2b5   :  { %v1297_v40 = vld [vmem:[%s9645_s3 + $0x11d0] sm:$0xff]  ;;  %2750 = vmatpush.msra.mxu3 %v1493_v57 }
 0x2b6   :  { %v1361_v59 = vld [vmem:[%s9645_s3 + $0x13d0] sm:$0xff]  ;;  %2682 = vmatpush.msra.mxu0 %v1297_v40 }
 0x2b7   :  { %v1425_v62 = vld [vmem:[%s9645_s3 + $0x15d0] sm:$0xff]  ;;  %2705 = vmatpush.msra.mxu1 %v1361_v59  ;;  %2608 = vmatmul.f32.gmra.mxu0 %v5599_v2 }
 0x2b8   :  { %v1489_v0 = vld [vmem:[%s9645_s3 + $0x17d0] sm:$0xff]  ;;  %2728 = vmatpush.msra.mxu2 %v1425_v62  ;;  %2631 = vmatmul.f32.gmra.mxu1 %v5610_v7 }
 0x2b9   :  { %v1293_v58 = vld [vmem:[%s9645_s3 + $0x11b0] sm:$0xff]  ;;  %2751 = vmatpush.msra.mxu3 %v1489_v0  ;;  %2654 = vmatmul.f32.gmra.mxu2 %v5621_v16 }
 0x2ba   :  { %v1357_v63 = vld [vmem:[%s9645_s3 + $0x13b0] sm:$0xff]  ;;  %2683 = vmatpush.msra.mxu0 %v1293_v58  ;;  %2677 = vmatmul.f32.gmra.mxu3 %v5637_v22 }
 0x2bb   :  { %v1421_v50 = vld [vmem:[%s9645_s3 + $0x15b0] sm:$0xff]  ;;  %2706 = vmatpush.msra.mxu1 %v1357_v63 }
 0x2bc   :  { %v1485_v5 = vld [vmem:[%s9645_s3 + $0x17b0] sm:$0xff]  ;;  %2729 = vmatpush.msra.mxu2 %v1421_v50 }
 0x2bd   :  { %v1289_v9 = vld [vmem:[%s9645_s3 + $0x1190] sm:$0xff]  ;;  %2752 = vmatpush.msra.mxu3 %v1485_v5 }
 0x2be   :  { %v1353_v14 = vld [vmem:[%s9645_s3 + $0x1390] sm:$0xff]  ;;  %2684 = vmatpush.msra.mxu0 %v1289_v9 }
 0x2bf   :  { %v1417_v35 = vld [vmem:[%s9645_s3 + $0x1590] sm:$0xff]  ;;  %2707 = vmatpush.msra.mxu1 %v1353_v14 }
 0x2c0   :  { %v1481_v60 = vld [vmem:[%s9645_s3 + $0x1790] sm:$0xff]  ;;  %2730 = vmatpush.msra.mxu2 %v1417_v35 }
 0x2c1   :  { %2753 = vmatpush.msra.mxu3 %v1481_v60  ;;  %v1285_v32 = vld [vmem:[%s9645_s3 + $0x1170] sm:$0xff] }
 0x2c2   :  { %v1349_v13 = vld [vmem:[%s9645_s3 + $0x1370] sm:$0xff]  ;;  %2685 = vmatpush.msra.mxu0 %v1285_v32 }
 0x2c3   :  { %v1413_v23 = vld [vmem:[%s9645_s3 + $0x1570] sm:$0xff]  ;;  %2708 = vmatpush.msra.mxu1 %v1349_v13 }
 0x2c4   :  { %v1477_v24 = vld [vmem:[%s9645_s3 + $0x1770] sm:$0xff]  ;;  %2731 = vmatpush.msra.mxu2 %v1413_v23 }
 0x2c5   :  { %v1281_v25 = vld [vmem:[%s9645_s3 + $0x1150] sm:$0xff]  ;;  %2754 = vmatpush.msra.mxu3 %v1477_v24 }
 0x2c6   :  { %v1345_v27 = vld [vmem:[%s9645_s3 + $0x1350] sm:$0xff]  ;;  %2686 = vmatpush.msra.mxu0 %v1281_v25 }
 0x2c7   :  { %v1409_v28 = vld [vmem:[%s9645_s3 + $0x1550] sm:$0xff]  ;;  %2709 = vmatpush.msra.mxu1 %v1345_v27 }
 0x2c8   :  { %v1473_v21 = vld [vmem:[%s9645_s3 + $0x1750] sm:$0xff]  ;;  %2732 = vmatpush.msra.mxu2 %v1409_v28 }
 0x2c9   :  { %v1277_v30 = vld [vmem:[%s9645_s3 + $0x1130] sm:$0xff]  ;;  %2755 = vmatpush.msra.mxu3 %v1473_v21 }
 0x2ca   :  { %v1341_v33 = vld [vmem:[%s9645_s3 + $0x1330] sm:$0xff]  ;;  %2687 = vmatpush.msra.mxu0 %v1277_v30 }
 0x2cb   :  { %v1405_v38 = vld [vmem:[%s9645_s3 + $0x1530] sm:$0xff]  ;;  %2710 = vmatpush.msra.mxu1 %v1341_v33 }
 0x2cc   :  { %v1469_v39 = vld [vmem:[%s9645_s3 + $0x1730] sm:$0xff]  ;;  %2733 = vmatpush.msra.mxu2 %v1405_v38 }
 0x2cd   :  { %v1273_v42 = vld [vmem:[%s9645_s3 + $0x1110] sm:$0xff]  ;;  %2756 = vmatpush.msra.mxu3 %v1469_v39 }
 0x2ce   :  { %v1337_v48 = vld [vmem:[%s9645_s3 + $0x1310] sm:$0xff]  ;;  %2688 = vmatpush.msra.mxu0 %v1273_v42 }
 0x2cf   :  { %v1401_v52 = vld [vmem:[%s9645_s3 + $0x1510] sm:$0xff]  ;;  %2711 = vmatpush.msra.mxu1 %v1337_v48 }
 0x2d0   :  { %v1465_v53 = vld [vmem:[%s9645_s3 + $0x1710] sm:$0xff]  ;;  %2734 = vmatpush.msra.mxu2 %v1401_v52  ;;  %v7297_v52 = vpop.f32.mrf.mxu0 }
 0x2d1   :  { %v1269_v54 = vld [vmem:[%s9645_s3 + $0x10f0] sm:$0xff]  ;;  %2757 = vmatpush.msra.mxu3 %v1465_v53 }
 0x2d2   :  { %v1333_v56 = vld [vmem:[%s9645_s3 + $0x12f0] sm:$0xff]  ;;  %2689 = vmatpush.msra.mxu0 %v1269_v54 }
 0x2d3   :  { %v1397_v44 = vld [vmem:[%s9645_s3 + $0x14f0] sm:$0xff]  ;;  %2712 = vmatpush.msra.mxu1 %v1333_v56 }
 0x2d4   :  { %v1461_v57 = vld [vmem:[%s9645_s3 + $0x16f0] sm:$0xff]  ;;  %2735 = vmatpush.msra.mxu2 %v1397_v44 }
 0x2d5   :  { %v1265_v40 = vld [vmem:[%s9645_s3 + $0x10d0] sm:$0xff]  ;;  %2758 = vmatpush.msra.mxu3 %v1461_v57 }
 0x2d6   :  { %v1329_v59 = vld [vmem:[%s9645_s3 + $0x12d0] sm:$0xff]  ;;  %2690 = vmatpush.msra.mxu0 %v1265_v40 }
 0x2d7   :  { %v1393_v62 = vld [vmem:[%s9645_s3 + $0x14d0] sm:$0xff]  ;;  %2713 = vmatpush.msra.mxu1 %v1329_v59 }
 0x2d8   :  { %v1457_v0 = vld [vmem:[%s9645_s3 + $0x16d0] sm:$0xff]  ;;  %2736 = vmatpush.msra.mxu2 %v1393_v62 }
 0x2d9   :  { %v1261_v58 = vld [vmem:[%s9645_s3 + $0x10b0] sm:$0xff]  ;;  %2759 = vmatpush.msra.mxu3 %v1457_v0  ;;  %v7327_v0 = vpop.f32.mrf.mxu1 }
 0x2da   :  { %v1325_v63 = vld [vmem:[%s9645_s3 + $0x12b0] sm:$0xff]  ;;  %2691 = vmatpush.msra.mxu0 %v1261_v58 }
 0x2db   :  { %v1389_v50 = vld [vmem:[%s9645_s3 + $0x14b0] sm:$0xff]  ;;  %2714 = vmatpush.msra.mxu1 %v1325_v63 }
 0x2dc   :  { %v1453_v5 = vld [vmem:[%s9645_s3 + $0x16b0] sm:$0xff]  ;;  %2737 = vmatpush.msra.mxu2 %v1389_v50 }
 0x2dd   :  { %v1257_v9 = vld [vmem:[%s9645_s3 + $0x1090] sm:$0xff]  ;;  %2760 = vmatpush.msra.mxu3 %v1453_v5 }
 0x2de   :  { %v1321_v14 = vld [vmem:[%s9645_s3 + $0x1290] sm:$0xff]  ;;  %2692 = vmatpush.msra.mxu0 %v1257_v9  ;;  %v7341_v9 = vpop.f32.mrf.mxu2 }
 0x2df   :  { %v1385_v35 = vld [vmem:[%s9645_s3 + $0x1490] sm:$0xff]  ;;  %2715 = vmatpush.msra.mxu1 %v1321_v14 }
 0x2e0   :  { %v1449_v60 = vld [vmem:[%s9645_s3 + $0x1690] sm:$0xff]  ;;  %2738 = vmatpush.msra.mxu2 %v1385_v35 }
 0x2e1   :  { %v1253_v32 = vld [vmem:[%s9645_s3 + $0x1070] sm:$0xff]  ;;  %2761 = vmatpush.msra.mxu3 %v1449_v60 }
 0x2e2   :  { %v1317_v13 = vld [vmem:[%s9645_s3 + $0x1270] sm:$0xff]  ;;  %2693 = vmatpush.msra.mxu0 %v1253_v32 }
 0x2e3   :  { %v1381_v23 = vld [vmem:[%s9645_s3 + $0x1470] sm:$0xff]  ;;  %2716 = vmatpush.msra.mxu1 %v1317_v13  ;;  %v7355_v13 = vpop.f32.mrf.mxu0 }
 0x2e4   :  { %v1445_v24 = vld [vmem:[%s9645_s3 + $0x1670] sm:$0xff]  ;;  %2739 = vmatpush.msra.mxu2 %v1381_v23 }
 0x2e5   :  { %v1249_v25 = vld [vmem:[%s9645_s3 + $0x1050] sm:$0xff]  ;;  %2762 = vmatpush.msra.mxu3 %v1445_v24 }
 0x2e6   :  { %v1313_v27 = vld [vmem:[%s9645_s3 + $0x1250] sm:$0xff]  ;;  %2694 = vmatpush.msra.mxu0 %v1249_v25  ;;  %v7363_v25 = vpop.f32.mrf.mxu3 }
 0x2e7   :  { %v1377_v28 = vld [vmem:[%s9645_s3 + $0x1450] sm:$0xff]  ;;  %2717 = vmatpush.msra.mxu1 %v1313_v27 }
 0x2e8   :  { %v1441_v21 = vld [vmem:[%s9645_s3 + $0x1650] sm:$0xff]  ;;  %2740 = vmatpush.msra.mxu2 %v1377_v28 }
 0x2e9   :  { %v1245_v30 = vld [vmem:[%s9645_s3 + $0x1030] sm:$0xff]  ;;  %2763 = vmatpush.msra.mxu3 %v1441_v21 }
 0x2ea   :  { %v1309_v33 = vld [vmem:[%s9645_s3 + $0x1230] sm:$0xff]  ;;  %2695 = vmatpush.msra.mxu0 %v1245_v30 }
 0x2eb   :  { %v1373_v38 = vld [vmem:[%s9645_s3 + $0x1430] sm:$0xff]  ;;  %2718 = vmatpush.msra.mxu1 %v1309_v33 }
 0x2ec   :  { %v1437_v39 = vld [vmem:[%s9645_s3 + $0x1630] sm:$0xff]  ;;  %2741 = vmatpush.msra.mxu2 %v1373_v38 }
 0x2ed   :  { %v1241_v42 = vld [vmem:[%s9645_s3 + $0x1010] sm:$0xff]  ;;  %2764 = vmatpush.msra.mxu3 %v1437_v39  ;;  %v7387_v39 = vpop.f32.mrf.mxu1 }
 0x2ee   :  { %v1305_v48 = vld [vmem:[%s9645_s3 + $0x1210] sm:$0xff]  ;;  %2696 = vmatpush.msra.mxu0 %v1241_v42 }
 0x2ef   :  { %v1369_v53 = vld [vmem:[%s9645_s3 + $0x1410] sm:$0xff]  ;;  %2719 = vmatpush.msra.mxu1 %v1305_v48  ;;  %2697 = vmatmul.f32.vlgmr.msra.gmra.mxu0 %v5667_v34 }
 0x2f0   :  { %v1433_v54 = vld [vmem:[%s9645_s3 + $0x1610] sm:$0xff]  ;;  %2742 = vmatpush.msra.mxu2 %v1369_v53  ;;  %2720 = vmatmul.f32.vlgmr.msra.gmra.mxu1 %v5679_v43 }
 0x2f1   :  { %2765 = vmatpush.msra.mxu3 %v1433_v54  ;;  %v1557_v56 = vld [vmem:[%s9645_s3 + $0x19f0] sm:$0xff]  ;;  %2743 = vmatmul.f32.vlgmr.msra.gmra.mxu2 %v5717_v45 }
 0x2f2   :  { %v1621_v44 = vld [vmem:[%s9645_s3 + $0x1bf0] sm:$0xff]  ;;  %2766 = vmatmul.f32.vlgmr.msra.gmra.mxu3 %v5738_v15  ;;  %2773 = vmatpush.msrb.mxu0 %v1557_v56  ;;  %v7401_v56 = vpop.f32.mrf.mxu2 }
 0x2f3   :  { %v1685_v57 = vld [vmem:[%s9645_s3 + $0x1df0] sm:$0xff]  ;;  %2796 = vmatpush.msrb.mxu1 %v1621_v44 }
 0x2f4   :  { %v1749_v40 = vld [vmem:[%s9645_s3 + $0x1ff0] sm:$0xff]  ;;  %2819 = vmatpush.msrb.mxu2 %v1685_v57 }
 0x2f5   :  { %v1553_v59 = vld [vmem:[%s9645_s3 + $0x19d0] sm:$0xff]  ;;  %2842 = vmatpush.msrb.mxu3 %v1749_v40 }
 0x2f6   :  { %v1617_v62 = vld [vmem:[%s9645_s3 + $0x1bd0] sm:$0xff]  ;;  %2774 = vmatpush.msrb.mxu0 %v1553_v59 }
 0x2f7   :  { %v1681_v58 = vld [vmem:[%s9645_s3 + $0x1dd0] sm:$0xff]  ;;  %2797 = vmatpush.msrb.mxu1 %v1617_v62  ;;  %2700 = vmatmul.f32.gmra.mxu0 %v5730_v10  ;;  %v7415_v62 = vpop.f32.mrf.mxu0 }
 0x2f8   :  { %v1745_v63 = vld [vmem:[%s9645_s3 + $0x1fd0] sm:$0xff]  ;;  %2820 = vmatpush.msrb.mxu2 %v1681_v58  ;;  %2723 = vmatmul.f32.gmra.mxu1 %v5747_v19 }
 0x2f9   :  { %v1549_v50 = vld [vmem:[%s9645_s3 + $0x19b0] sm:$0xff]  ;;  %2843 = vmatpush.msrb.mxu3 %v1745_v63  ;;  %2746 = vmatmul.f32.gmra.mxu2 %v5783_v37 }
 0x2fa   :  { %v1613_v5 = vld [vmem:[%s9645_s3 + $0x1bb0] sm:$0xff]  ;;  %2775 = vmatpush.msrb.mxu0 %v1549_v50  ;;  %2769 = vmatmul.f32.gmra.mxu3 %v5800_v47 }
 0x2fb   :  { %v1677_v14 = vld [vmem:[%s9645_s3 + $0x1db0] sm:$0xff]  ;;  %2798 = vmatpush.msrb.mxu1 %v1613_v5 }
 0x2fc   :  { %v1741_v35 = vld [vmem:[%s9645_s3 + $0x1fb0] sm:$0xff]  ;;  %2821 = vmatpush.msrb.mxu2 %v1677_v14  ;;  %v7429_v14 = vpop.f32.mrf.mxu3 }
 0x2fd   :  { %v1545_v60 = vld [vmem:[%s9645_s3 + $0x1990] sm:$0xff]  ;;  %2844 = vmatpush.msrb.mxu3 %v1741_v35 }
 0x2fe   :  { %v1609_v32 = vld [vmem:[%s9645_s3 + $0x1b90] sm:$0xff]  ;;  %2776 = vmatpush.msrb.mxu0 %v1545_v60 }
 0x2ff   :  { %v1673_v23 = vld [vmem:[%s9645_s3 + $0x1d90] sm:$0xff]  ;;  %2799 = vmatpush.msrb.mxu1 %v1609_v32 }
 0x300   :  { %v1737_v24 = vld [vmem:[%s9645_s3 + $0x1f90] sm:$0xff]  ;;  %2822 = vmatpush.msrb.mxu2 %v1673_v23 }
 0x301   :  { %2845 = vmatpush.msrb.mxu3 %v1737_v24  ;;  %v1541_v27 = vld [vmem:[%s9645_s3 + $0x1970] sm:$0xff] }
 0x302   :  { %v1605_v28 = vld [vmem:[%s9645_s3 + $0x1b70] sm:$0xff]  ;;  %2777 = vmatpush.msrb.mxu0 %v1541_v27 }
 0x303   :  { %v1669_v21 = vld [vmem:[%s9645_s3 + $0x1d70] sm:$0xff]  ;;  %2800 = vmatpush.msrb.mxu1 %v1605_v28 }
 0x304   :  { %v1733_v30 = vld [vmem:[%s9645_s3 + $0x1f70] sm:$0xff]  ;;  %2823 = vmatpush.msrb.mxu2 %v1669_v21 }
 0x305   :  { %v1537_v33 = vld [vmem:[%s9645_s3 + $0x1950] sm:$0xff]  ;;  %2846 = vmatpush.msrb.mxu3 %v1733_v30  ;;  %v7455_v30 = vpop.f32.mrf.mxu1 }
 0x306   :  { %v1601_v38 = vld [vmem:[%s9645_s3 + $0x1b50] sm:$0xff]  ;;  %2778 = vmatpush.msrb.mxu0 %v1537_v33 }
 0x307   :  { %v1665_v42 = vld [vmem:[%s9645_s3 + $0x1d50] sm:$0xff]  ;;  %2801 = vmatpush.msrb.mxu1 %v1601_v38 }
 0x308   :  { %v1729_v48 = vld [vmem:[%s9645_s3 + $0x1f50] sm:$0xff]  ;;  %2824 = vmatpush.msrb.mxu2 %v1665_v42 }
 0x309   :  { %v1533_v53 = vld [vmem:[%s9645_s3 + $0x1930] sm:$0xff]  ;;  %2847 = vmatpush.msrb.mxu3 %v1729_v48 }
 0x30a   :  { %v1597_v54 = vld [vmem:[%s9645_s3 + $0x1b30] sm:$0xff]  ;;  %2779 = vmatpush.msrb.mxu0 %v1533_v53  ;;  %v7469_v53 = vpop.f32.mrf.mxu2 }
 0x30b   :  { %v1661_v44 = vld [vmem:[%s9645_s3 + $0x1d30] sm:$0xff]  ;;  %2802 = vmatpush.msrb.mxu1 %v1597_v54  ;;  %v7471_v54 = vpop.f32.mrf.mxu0 }
 0x30c   :  { %v1725_v57 = vld [vmem:[%s9645_s3 + $0x1f30] sm:$0xff]  ;;  %2825 = vmatpush.msrb.mxu2 %v1661_v44 }
 0x30d   :  { %v1529_v40 = vld [vmem:[%s9645_s3 + $0x1910] sm:$0xff]  ;;  %2848 = vmatpush.msrb.mxu3 %v1725_v57 }
 0x30e   :  { %v1593_v59 = vld [vmem:[%s9645_s3 + $0x1b10] sm:$0xff]  ;;  %2780 = vmatpush.msrb.mxu0 %v1529_v40 }
 0x30f   :  { %v1657_v58 = vld [vmem:[%s9645_s3 + $0x1d10] sm:$0xff]  ;;  %2803 = vmatpush.msrb.mxu1 %v1593_v59 }
 0x310   :  { %v1721_v63 = vld [vmem:[%s9645_s3 + $0x1f10] sm:$0xff]  ;;  %2826 = vmatpush.msrb.mxu2 %v1657_v58 }
 0x311   :  { %v1525_v50 = vld [vmem:[%s9645_s3 + $0x18f0] sm:$0xff]  ;;  %2849 = vmatpush.msrb.mxu3 %v1721_v63 }
 0x312   :  { %v1589_v5 = vld [vmem:[%s9645_s3 + $0x1af0] sm:$0xff]  ;;  %2781 = vmatpush.msrb.mxu0 %v1525_v50 }
 0x313   :  { %v1653_v35 = vld [vmem:[%s9645_s3 + $0x1cf0] sm:$0xff]  ;;  %2804 = vmatpush.msrb.mxu1 %v1589_v5 }
 0x314   :  { %v1717_v60 = vld [vmem:[%s9645_s3 + $0x1ef0] sm:$0xff]  ;;  %2827 = vmatpush.msrb.mxu2 %v1653_v35  ;;  %v7497_v35 = vpop.f32.mrf.mxu3 }
 0x315   :  { %v1521_v32 = vld [vmem:[%s9645_s3 + $0x18d0] sm:$0xff]  ;;  %2850 = vmatpush.msrb.mxu3 %v1717_v60 }
 0x316   :  { %v1585_v23 = vld [vmem:[%s9645_s3 + $0x1ad0] sm:$0xff]  ;;  %2782 = vmatpush.msrb.mxu0 %v1521_v32 }
 0x317   :  { %v1649_v24 = vld [vmem:[%s9645_s3 + $0x1cd0] sm:$0xff]  ;;  %2805 = vmatpush.msrb.mxu1 %v1585_v23 }
 0x318   :  { %v1713_v27 = vld [vmem:[%s9645_s3 + $0x1ed0] sm:$0xff]  ;;  %2828 = vmatpush.msrb.mxu2 %v1649_v24 }
 0x319   :  { %v1517_v28 = vld [vmem:[%s9645_s3 + $0x18b0] sm:$0xff]  ;;  %2851 = vmatpush.msrb.mxu3 %v1713_v27  ;;  %v7511_v27 = vpop.f32.mrf.mxu1 }
 0x31a   :  { %v1581_v21 = vld [vmem:[%s9645_s3 + $0x1ab0] sm:$0xff]  ;;  %2783 = vmatpush.msrb.mxu0 %v1517_v28 }
 0x31b   :  { %v1645_v33 = vld [vmem:[%s9645_s3 + $0x1cb0] sm:$0xff]  ;;  %2806 = vmatpush.msrb.mxu1 %v1581_v21 }
 0x31c   :  { %v1709_v38 = vld [vmem:[%s9645_s3 + $0x1eb0] sm:$0xff]  ;;  %2829 = vmatpush.msrb.mxu2 %v1645_v33 }
 0x31d   :  { %v1513_v42 = vld [vmem:[%s9645_s3 + $0x1890] sm:$0xff]  ;;  %2852 = vmatpush.msrb.mxu3 %v1709_v38 }
 0x31e   :  { %v1577_v48 = vld [vmem:[%s9645_s3 + $0x1a90] sm:$0xff]  ;;  %2784 = vmatpush.msrb.mxu0 %v1513_v42  ;;  %v7525_v42 = vpop.f32.mrf.mxu2 }
 0x31f   :  { %v1641_v44 = vld [vmem:[%s9645_s3 + $0x1c90] sm:$0xff]  ;;  %2807 = vmatpush.msrb.mxu1 %v1577_v48 }
 0x320   :  { %v1705_v57 = vld [vmem:[%s9645_s3 + $0x1e90] sm:$0xff]  ;;  %2830 = vmatpush.msrb.mxu2 %v1641_v44 }
 0x321   :  { %v1509_v40 = vld [vmem:[%s9645_s3 + $0x1870] sm:$0xff]  ;;  %2853 = vmatpush.msrb.mxu3 %v1705_v57  ;;  %v7533_v57 = vpop.f32.mrf.mxu0 }
 0x322   :  { %v1573_v59 = vld [vmem:[%s9645_s3 + $0x1a70] sm:$0xff]  ;;  %2785 = vmatpush.msrb.mxu0 %v1509_v40  ;;  %v790_v40 = vld [vmem:[%s9645_s3 + $0x1f8] sm:$0xff] }
 0x323   :  { %v1637_v58 = vld [vmem:[%s9645_s3 + $0x1c70] sm:$0xff]  ;;  %2808 = vmatpush.msrb.mxu1 %v1573_v59  ;;  %v854_v59 = vld [vmem:[%s9645_s3 + $0x3f8] sm:$0xff] }
 0x324   :  { %v1701_v63 = vld [vmem:[%s9645_s3 + $0x1e70] sm:$0xff]  ;;  %2831 = vmatpush.msrb.mxu2 %v1637_v58  ;;  %v7541_v58 = vpop.f32.mrf.mxu3 }
 0x325   :  { %v1505_v50 = vld [vmem:[%s9645_s3 + $0x1850] sm:$0xff]  ;;  %2854 = vmatpush.msrb.mxu3 %v1701_v63  ;;  %9654 = vst [vmem:[#allocation6_spill] sm:$0xff] %v7541_v58  ;;  %v918_v63 = vld [vmem:[%s9645_s3 + $0x5f8] sm:$0xff] }
 0x326   :  { %v1569_v5 = vld [vmem:[%s9645_s3 + $0x1a50] sm:$0xff]  ;;  %2786 = vmatpush.msrb.mxu0 %v1505_v50  ;;  %v982_v50 = vld [vmem:[%s9645_s3 + $0x7f8] sm:$0xff] }
 0x327   :  { %v1633_v60 = vld [vmem:[%s9645_s3 + $0x1c50] sm:$0xff]  ;;  %2809 = vmatpush.msrb.mxu1 %v1569_v5  ;;  %v786_v5 = vld [vmem:[%s9645_s3 + $0x1d8] sm:$0xff] }
 0x328   :  { %v1697_v32 = vld [vmem:[%s9645_s3 + $0x1e50] sm:$0xff]  ;;  %2832 = vmatpush.msrb.mxu2 %v1633_v60  ;;  %v850_v60 = vld [vmem:[%s9645_s3 + $0x3d8] sm:$0xff] }
 0x329   :  { %v1501_v23 = vld [vmem:[%s9645_s3 + $0x1830] sm:$0xff]  ;;  %2855 = vmatpush.msrb.mxu3 %v1697_v32  ;;  %v914_v32 = vld [vmem:[%s9645_s3 + $0x5d8] sm:$0xff] }
 0x32a   :  { %v1565_v24 = vld [vmem:[%s9645_s3 + $0x1a30] sm:$0xff]  ;;  %2787 = vmatpush.msrb.mxu0 %v1501_v23  ;;  %v978_v23 = vld [vmem:[%s9645_s3 + $0x7d8] sm:$0xff] }
 0x32b   :  { %v1629_v28 = vld [vmem:[%s9645_s3 + $0x1c30] sm:$0xff]  ;;  %2810 = vmatpush.msrb.mxu1 %v1565_v24  ;;  %v782_v24 = vld [vmem:[%s9645_s3 + $0x1b8] sm:$0xff] }
 0x32c   :  { %v1693_v21 = vld [vmem:[%s9645_s3 + $0x1e30] sm:$0xff]  ;;  %2833 = vmatpush.msrb.mxu2 %v1629_v28  ;;  %v846_v28 = vld [vmem:[%s9645_s3 + $0x3b8] sm:$0xff] }
 0x32d   :  { %v1497_v33 = vld [vmem:[%s9645_s3 + $0x1810] sm:$0xff]  ;;  %2856 = vmatpush.msrb.mxu3 %v1693_v21  ;;  %v7571_v21 = vpop.f32.mrf.mxu1  ;;  %v1058_v58 = vld [vmem:[%s9645_s3 + $0xa58] sm:$0xff] }
 0x32e   :  { %v1561_v38 = vld [vmem:[%s9645_s3 + $0x1a10] sm:$0xff]  ;;  %2788 = vmatpush.msrb.mxu0 %v1497_v33  ;;  %v7573_v33 = vpop.f32.mrf.mxu2 }
 0x32f   :  { %v1625_v48 = vld [vmem:[%s9645_s3 + $0x1c10] sm:$0xff]  ;;  %2811 = vmatpush.msrb.mxu1 %v1561_v38  ;;  %2789 = vmatmul.f32.vlgmr.msrb.gmra.mxu0 %v5904_v46  ;;  %9655 = vst [vmem:[#allocation7_spill] sm:$0xff] %v7573_v33  ;;  %v910_v38 = vld [vmem:[%s9645_s3 + $0x5b8] sm:$0xff] }
 0x330   :  { %v1689_v44 = vld [vmem:[%s9645_s3 + $0x1e10] sm:$0xff]  ;;  %2834 = vmatpush.msrb.mxu2 %v1625_v48  ;;  %2812 = vmatmul.f32.vlgmr.msrb.gmra.mxu1 %v5915_v55  ;;  %v974_v48 = vld [vmem:[%s9645_s3 + $0x7b8] sm:$0xff] }
 0x331   :  { %2857 = vmatpush.msrb.mxu3 %v1689_v44  ;;  %2835 = vmatmul.f32.vlgmr.msrb.gmra.mxu2 %v5953_v20  ;;  %v778_v44 = vld [vmem:[%s9645_s3 + $0x198] sm:$0xff] }
 0x332   :  { %2858 = vmatmul.f32.vlgmr.msrb.gmra.mxu3 %v5974_v29  ;;  %2865 = vmatpush.msra.mxu0 %v790_v40  ;;  %v842_v40 = vld [vmem:[%s9645_s3 + $0x398] sm:$0xff] }
 0x333   :  { %2888 = vmatpush.msra.mxu1 %v854_v59  ;;  %2911 = vmatpush.msra.mxu2 %v918_v63  ;;  %v906_v59 = vld [vmem:[%s9645_s3 + $0x598] sm:$0xff] }
 0x334   :  { %2934 = vmatpush.msra.mxu3 %v982_v50  ;;  %2866 = vmatpush.msra.mxu0 %v786_v5  ;;  %v970_v63 = vld [vmem:[%s9645_s3 + $0x798] sm:$0xff]  ;;  %v7593_v50 = vpop.f32.mrf.mxu0  ;;  %v7595_v5 = vpop.f32.mrf.mxu3 }
 0x335   :  { %2889 = vmatpush.msra.mxu1 %v850_v60  ;;  %2912 = vmatpush.msra.mxu2 %v914_v32  ;;  %9656 = vst [vmem:[#allocation8_spill] sm:$0xff] %v7593_v50  ;;  %v774_v60 = vld [vmem:[%s9645_s3 + $0x178] sm:$0xff] }
 0x336   :  { %2935 = vmatpush.msra.mxu3 %v978_v23  ;;  %2867 = vmatpush.msra.mxu0 %v782_v24  ;;  %9657 = vst [vmem:[#allocation9_spill] sm:$0xff] %v7595_v5  ;;  %v838_v32 = vld [vmem:[%s9645_s3 + $0x378] sm:$0xff] }
 0x337   :  { %2890 = vmatpush.msra.mxu1 %v846_v28  ;;  %2913 = vmatpush.msra.mxu2 %v910_v38  ;;  %v902_v23 = vld [vmem:[%s9645_s3 + $0x578] sm:$0xff] }
 0x338   :  { %2936 = vmatpush.msra.mxu3 %v974_v48  ;;  %2868 = vmatpush.msra.mxu0 %v778_v44  ;;  %v966_v24 = vld [vmem:[%s9645_s3 + $0x778] sm:$0xff] }
 0x339   :  { %2891 = vmatpush.msra.mxu1 %v842_v40  ;;  %2914 = vmatpush.msra.mxu2 %v906_v59  ;;  %v770_v28 = vld [vmem:[%s9645_s3 + $0x158] sm:$0xff] }
 0x33a   :  { %2937 = vmatpush.msra.mxu3 %v970_v63  ;;  %2792 = vmatmul.f32.gmra.mxu0 %v5966_v26  ;;  %v834_v38 = vld [vmem:[%s9645_s3 + $0x358] sm:$0xff]  ;;  %v7631_v63 = vpop.f32.mrf.mxu1 }
 0x33b   :  { %2815 = vmatmul.f32.gmra.mxu1 %v5983_v49  ;;  %2838 = vmatmul.f32.gmra.mxu2 %v6019_v61  ;;  %v898_v48 = vld [vmem:[%s9645_s3 + $0x558] sm:$0xff]  ;;  %9658 = vst [vmem:[#allocation10_spill] sm:$0xff] %v7631_v63 }
 0x33c   :  { %2861 = vmatmul.f32.gmra.mxu3 %v6036_v3  ;;  %2869 = vmatpush.msra.mxu0 %v774_v60  ;;  %v962_v44 = vld [vmem:[%s9645_s3 + $0x758] sm:$0xff]  ;;  %v7633_v60 = vpop.f32.mrf.mxu2 }
 0x33d   :  { %2892 = vmatpush.msra.mxu1 %v838_v32  ;;  %2915 = vmatpush.msra.mxu2 %v902_v23  ;;  %v766_v40 = vld [vmem:[%s9645_s3 + $0x138] sm:$0xff]  ;;  %9659 = vst [vmem:[#allocation11_spill] sm:$0xff] %v7633_v60 }
 0x33e   :  { %2938 = vmatpush.msra.mxu3 %v966_v24  ;;  %v830_v59 = vld [vmem:[%s9645_s3 + $0x338] sm:$0xff]  ;;  %2870 = vmatpush.msra.mxu0 %v770_v28  ;;  %v7647_v28 = vpop.f32.mrf.mxu0 }
 0x33f   :  { %2893 = vmatpush.msra.mxu1 %v834_v38  ;;  %v894_v32 = vld [vmem:[%s9645_s3 + $0x538] sm:$0xff]  ;;  %2916 = vmatpush.msra.mxu2 %v898_v48  ;;  %9660 = vst [vmem:[#allocation12_spill] sm:$0xff] %v7647_v28 }
 0x340   :  { %v958_v23 = vld [vmem:[%s9645_s3 + $0x738] sm:$0xff]  ;;  %2939 = vmatpush.msra.mxu3 %v962_v44  ;;  %2871 = vmatpush.msra.mxu0 %v766_v40  ;;  %v7661_v40 = vpop.f32.mrf.mxu3 }
 0x341   :  { %v762_v24 = vld [vmem:[%s9645_s3 + $0x118] sm:$0xff]  ;;  %2894 = vmatpush.msra.mxu1 %v830_v59  ;;  %2917 = vmatpush.msra.mxu2 %v894_v32  ;;  %9661 = vst [vmem:[#allocation13_spill] sm:$0xff] %v7661_v40 }
 0x342   :  { %v826_v60 = vld [vmem:[%s9645_s3 + $0x318] sm:$0xff]  ;;  %2940 = vmatpush.msra.mxu3 %v958_v23  ;;  %2872 = vmatpush.msra.mxu0 %v762_v24 }
 0x343   :  { %v890_v38 = vld [vmem:[%s9645_s3 + $0x518] sm:$0xff]  ;;  %2895 = vmatpush.msra.mxu1 %v826_v60 }
 0x344   :  { %v954_v48 = vld [vmem:[%s9645_s3 + $0x718] sm:$0xff]  ;;  %2918 = vmatpush.msra.mxu2 %v890_v38 }
 0x345   :  { %v758_v44 = vld [vmem:[%s9645_s3 + $0xf8] sm:$0xff]  ;;  %2941 = vmatpush.msra.mxu3 %v954_v48 }
 0x346   :  { %v822_v63 = vld [vmem:[%s9645_s3 + $0x2f8] sm:$0xff]  ;;  %2873 = vmatpush.msra.mxu0 %v758_v44  ;;  %v7687_v44 = vpop.f32.mrf.mxu1 }
 0x347   :  { %v886_v59 = vld [vmem:[%s9645_s3 + $0x4f8] sm:$0xff]  ;;  %2896 = vmatpush.msra.mxu1 %v822_v63  ;;  %9662 = vst [vmem:[#allocation14_spill] sm:$0xff] %v7687_v44  ;;  %v7689_v63 = vpop.f32.mrf.mxu2 }
 0x348   :  { %v950_v32 = vld [vmem:[%s9645_s3 + $0x6f8] sm:$0xff]  ;;  %2919 = vmatpush.msra.mxu2 %v886_v59  ;;  %9663 = vst [vmem:[#allocation15_spill] sm:$0xff] %v7689_v63 }
 0x349   :  { %v754_v23 = vld [vmem:[%s9645_s3 + $0xd8] sm:$0xff]  ;;  %2942 = vmatpush.msra.mxu3 %v950_v32 }
 0x34a   :  { %v818_v40 = vld [vmem:[%s9645_s3 + $0x2d8] sm:$0xff]  ;;  %2874 = vmatpush.msra.mxu0 %v754_v23 }
 0x34b   :  { %v882_v60 = vld [vmem:[%s9645_s3 + $0x4d8] sm:$0xff]  ;;  %2897 = vmatpush.msra.mxu1 %v818_v40 }
 0x34c   :  { %v946_v24 = vld [vmem:[%s9645_s3 + $0x6d8] sm:$0xff]  ;;  %2920 = vmatpush.msra.mxu2 %v882_v60 }
 0x34d   :  { %v750_v38 = vld [vmem:[%s9645_s3 + $0xb8] sm:$0xff]  ;;  %2943 = vmatpush.msra.mxu3 %v946_v24 }
 0x34e   :  { %v814_v48 = vld [vmem:[%s9645_s3 + $0x2b8] sm:$0xff]  ;;  %2875 = vmatpush.msra.mxu0 %v750_v38  ;;  %v7715_v38 = vpop.f32.mrf.mxu0 }
 0x34f   :  { %v878_v28 = vld [vmem:[%s9645_s3 + $0x4b8] sm:$0xff]  ;;  %2898 = vmatpush.msra.mxu1 %v814_v48  ;;  %9664 = vst [vmem:[#allocation16_spill] sm:$0xff] %v7715_v38  ;;  %v7717_v48 = vpop.f32.mrf.mxu3 }
 0x350   :  { %v942_v59 = vld [vmem:[%s9645_s3 + $0x6b8] sm:$0xff]  ;;  %2921 = vmatpush.msra.mxu2 %v878_v28  ;;  %9665 = vst [vmem:[#allocation17_spill] sm:$0xff] %v7717_v48 }
 0x351   :  { %v746_v32 = vld [vmem:[%s9645_s3 + $0x98] sm:$0xff]  ;;  %2944 = vmatpush.msra.mxu3 %v942_v59 }
 0x352   :  { %v810_v63 = vld [vmem:[%s9645_s3 + $0x298] sm:$0xff]  ;;  %2876 = vmatpush.msra.mxu0 %v746_v32 }
 0x353   :  { %v874_v40 = vld [vmem:[%s9645_s3 + $0x498] sm:$0xff]  ;;  %2899 = vmatpush.msra.mxu1 %v810_v63 }
 0x354   :  { %v938_v23 = vld [vmem:[%s9645_s3 + $0x698] sm:$0xff]  ;;  %2922 = vmatpush.msra.mxu2 %v874_v40 }
 0x355   :  { %v742_v60 = vld [vmem:[%s9645_s3 + $0x78] sm:$0xff]  ;;  %2945 = vmatpush.msra.mxu3 %v938_v23 }
 0x356   :  { %v806_v24 = vld [vmem:[%s9645_s3 + $0x278] sm:$0xff]  ;;  %2877 = vmatpush.msra.mxu0 %v742_v60 }
 0x357   :  { %v870_v44 = vld [vmem:[%s9645_s3 + $0x478] sm:$0xff]  ;;  %2900 = vmatpush.msra.mxu1 %v806_v24 }
 0x358   :  { %v934_v28 = vld [vmem:[%s9645_s3 + $0x678] sm:$0xff]  ;;  %2923 = vmatpush.msra.mxu2 %v870_v44 }
 0x359   :  { %v738_v59 = vld [vmem:[%s9645_s3 + $0x58] sm:$0xff]  ;;  %2946 = vmatpush.msra.mxu3 %v934_v28 }
 0x35a   :  { %v802_v48 = vld [vmem:[%s9645_s3 + $0x258] sm:$0xff]  ;;  %2878 = vmatpush.msra.mxu0 %v738_v59  ;;  %v7755_v59 = vpop.f32.mrf.mxu1 }
 0x35b   :  { %v866_v63 = vld [vmem:[%s9645_s3 + $0x458] sm:$0xff]  ;;  %2901 = vmatpush.msra.mxu1 %v802_v48  ;;  %9666 = vst [vmem:[#allocation18_spill] sm:$0xff] %v7755_v59  ;;  %v7757_v48 = vpop.f32.mrf.mxu2 }
 0x35c   :  { %v930_v32 = vld [vmem:[%s9645_s3 + $0x658] sm:$0xff]  ;;  %2924 = vmatpush.msra.mxu2 %v866_v63  ;;  %9667 = vst [vmem:[#allocation19_spill] sm:$0xff] %v7757_v48  ;;  %v7773_v48 = vpop.f32.mrf.mxu3 }
 0x35d   :  { %v734_v40 = vld [vmem:[%s9645_s3 + $0x38] sm:$0xff]  ;;  %2947 = vmatpush.msra.mxu3 %v930_v32  ;;  %v7765_v32 = vpop.f32.mrf.mxu0  ;;  %9668 = vst [vmem:[#allocation20_spill] sm:$0xff] %v7773_v48 }
 0x35e   :  { %v798_v23 = vld [vmem:[%s9645_s3 + $0x238] sm:$0xff]  ;;  %2879 = vmatpush.msra.mxu0 %v734_v40 }
 0x35f   :  { %v862_v60 = vld [vmem:[%s9645_s3 + $0x438] sm:$0xff]  ;;  %2902 = vmatpush.msra.mxu1 %v798_v23 }
 0x360   :  { %v926_v24 = vld [vmem:[%s9645_s3 + $0x638] sm:$0xff]  ;;  %2925 = vmatpush.msra.mxu2 %v862_v60 }
 0x361   :  { %v730_v44 = vld [vmem:[%s9645_s3 + $0x18] sm:$0xff]  ;;  %2948 = vmatpush.msra.mxu3 %v926_v24 }
 0x362   :  { %v794_v28 = vld [vmem:[%s9645_s3 + $0x218] sm:$0xff]  ;;  %2880 = vmatpush.msra.mxu0 %v730_v44 }
 0x363   :  { %v858_v38 = vld [vmem:[%s9645_s3 + $0x418] sm:$0xff]  ;;  %2903 = vmatpush.msra.mxu1 %v794_v28  ;;  %2881 = vmatmul.f32.vlgmr.msra.gmra.mxu0 %v5314_v4  ;;  %v7803_v28 = vpop.f32.mrf.mxu1 }
 0x364   :  { %v922_v63 = vld [vmem:[%s9645_s3 + $0x618] sm:$0xff]  ;;  %2926 = vmatpush.msra.mxu2 %v858_v38  ;;  %2904 = vmatmul.f32.vlgmr.msra.gmra.mxu1 %v5325_v8 }
 0x365   :  { %2949 = vmatpush.msra.mxu3 %v922_v63  ;;  %v1046_v40 = vld [vmem:[%s9645_s3 + $0x9f8] sm:$0xff]  ;;  %2927 = vmatmul.f32.vlgmr.msra.gmra.mxu2 %v5335_v12  ;;  %v7805_v63 = vpop.f32.mrf.mxu2 }
 0x366   :  { %v1110_v23 = vld [vmem:[%s9645_s3 + $0xbf8] sm:$0xff]  ;;  %2950 = vmatmul.f32.vlgmr.msra.gmra.mxu3 %v5350_v18  ;;  %2957 = vmatpush.msrb.mxu0 %v1046_v40 }
 0x367   :  { %v1174_v60 = vld [vmem:[%s9645_s3 + $0xdf8] sm:$0xff]  ;;  %2980 = vmatpush.msrb.mxu1 %v1110_v23 }
 0x368   :  { %v1238_v38 = vld [vmem:[%s9645_s3 + $0xff8] sm:$0xff]  ;;  %3003 = vmatpush.msrb.mxu2 %v1174_v60 }
 0x369   :  { %v1042_v24 = vld [vmem:[%s9645_s3 + $0x9d8] sm:$0xff]  ;;  %3026 = vmatpush.msrb.mxu3 %v1238_v38 }
 0x36a   :  { %v1106_v4 = vld [vmem:[%s9645_s3 + $0xbd8] sm:$0xff]  ;;  %2958 = vmatpush.msrb.mxu0 %v1042_v24 }
 0x36b   :  { %v1170_v8 = vld [vmem:[%s9645_s3 + $0xdd8] sm:$0xff]  ;;  %2981 = vmatpush.msrb.mxu1 %v1106_v4  ;;  %2884 = vmatmul.f32.gmra.mxu0 %v5381_v31 }
 0x36c   :  { %v1234_v12 = vld [vmem:[%s9645_s3 + $0xfd8] sm:$0xff]  ;;  %3004 = vmatpush.msrb.mxu2 %v1170_v8  ;;  %v7825_v8 = vpop.f32.mrf.mxu0  ;;  %2907 = vmatmul.f32.gmra.mxu1 %v5393_v36 }
 0x36d   :  { %v1038_v18 = vld [vmem:[%s9645_s3 + $0x9b8] sm:$0xff]  ;;  %3027 = vmatpush.msrb.mxu3 %v1234_v12  ;;  %2930 = vmatmul.f32.gmra.mxu2 %v5404_v41 }
 0x36e   :  { %v1102_v44 = vld [vmem:[%s9645_s3 + $0xbb8] sm:$0xff]  ;;  %2959 = vmatpush.msrb.mxu0 %v1038_v18  ;;  %2953 = vmatmul.f32.gmra.mxu3 %v5421_v51 }
 0x36f   :  { %v1166_v40 = vld [vmem:[%s9645_s3 + $0xdb8] sm:$0xff]  ;;  %2982 = vmatpush.msrb.mxu1 %v1102_v44  ;;  %v7833_v44 = vpop.f32.mrf.mxu3 }
 0x370   :  { %v1230_v23 = vld [vmem:[%s9645_s3 + $0xfb8] sm:$0xff]  ;;  %3005 = vmatpush.msrb.mxu2 %v1166_v40 }
 0x371   :  { %v1034_v60 = vld [vmem:[%s9645_s3 + $0x998] sm:$0xff]  ;;  %3028 = vmatpush.msrb.mxu3 %v1230_v23 }
 0x372   :  { %v1098_v38 = vld [vmem:[%s9645_s3 + $0xb98] sm:$0xff]  ;;  %2960 = vmatpush.msrb.mxu0 %v1034_v60 }
 0x373   :  { %v1162_v24 = vld [vmem:[%s9645_s3 + $0xd98] sm:$0xff]  ;;  %2983 = vmatpush.msrb.mxu1 %v1098_v38 }
 0x374   :  { %v1226_v4 = vld [vmem:[%s9645_s3 + $0xf98] sm:$0xff]  ;;  %3006 = vmatpush.msrb.mxu2 %v1162_v24  ;;  %v7863_v24 = vpop.f32.mrf.mxu1 }
 0x375   :  { %3029 = vmatpush.msrb.mxu3 %v1226_v4  ;;  %v1030_v12 = vld [vmem:[%s9645_s3 + $0x978] sm:$0xff]  ;;  %v7865_v4 = vpop.f32.mrf.mxu2 }
 0x376   :  { %v1094_v18 = vld [vmem:[%s9645_s3 + $0xb78] sm:$0xff]  ;;  %2961 = vmatpush.msrb.mxu0 %v1030_v12 }
 0x377   :  { %v1158_v40 = vld [vmem:[%s9645_s3 + $0xd78] sm:$0xff]  ;;  %2984 = vmatpush.msrb.mxu1 %v1094_v18 }
 0x378   :  { %v1222_v23 = vld [vmem:[%s9645_s3 + $0xf78] sm:$0xff]  ;;  %3007 = vmatpush.msrb.mxu2 %v1158_v40 }
 0x379   :  { %v1026_v60 = vld [vmem:[%s9645_s3 + $0x958] sm:$0xff]  ;;  %3030 = vmatpush.msrb.mxu3 %v1222_v23 }
 0x37a   :  { %v1090_v31 = vld [vmem:[%s9645_s3 + $0xb58] sm:$0xff]  ;;  %2962 = vmatpush.msrb.mxu0 %v1026_v60  ;;  %v7879_v60 = vpop.f32.mrf.mxu0 }
 0x37b   :  { %v1154_v36 = vld [vmem:[%s9645_s3 + $0xd58] sm:$0xff]  ;;  %2985 = vmatpush.msrb.mxu1 %v1090_v31 }
 0x37c   :  { %v1218_v41 = vld [vmem:[%s9645_s3 + $0xf58] sm:$0xff]  ;;  %3008 = vmatpush.msrb.mxu2 %v1154_v36 }
 0x37d   :  { %v1022_v51 = vld [vmem:[%s9645_s3 + $0x938] sm:$0xff]  ;;  %3031 = vmatpush.msrb.mxu3 %v1218_v41 }
 0x37e   :  { %v1086_v38 = vld [vmem:[%s9645_s3 + $0xb38] sm:$0xff]  ;;  %2963 = vmatpush.msrb.mxu0 %v1022_v51 }
 0x37f   :  { %v1150_v12 = vld [vmem:[%s9645_s3 + $0xd38] sm:$0xff]  ;;  %2986 = vmatpush.msrb.mxu1 %v1086_v38 }
 0x380   :  { %v1214_v18 = vld [vmem:[%s9645_s3 + $0xf38] sm:$0xff]  ;;  %3009 = vmatpush.msrb.mxu2 %v1150_v12 }
 0x381   :  { %v1018_v40 = vld [vmem:[%s9645_s3 + $0x918] sm:$0xff]  ;;  %3032 = vmatpush.msrb.mxu3 %v1214_v18 }
 0x382   :  { %v1082_v23 = vld [vmem:[%s9645_s3 + $0xb18] sm:$0xff]  ;;  %2964 = vmatpush.msrb.mxu0 %v1018_v40  ;;  %v7905_v40 = vpop.f32.mrf.mxu3 }
 0x383   :  { %v1146_v31 = vld [vmem:[%s9645_s3 + $0xd18] sm:$0xff]  ;;  %2987 = vmatpush.msrb.mxu1 %v1082_v23 }
 0x384   :  { %v1210_v36 = vld [vmem:[%s9645_s3 + $0xf18] sm:$0xff]  ;;  %3010 = vmatpush.msrb.mxu2 %v1146_v31 }
 0x385   :  { %v1014_v41 = vld [vmem:[%s9645_s3 + $0x8f8] sm:$0xff]  ;;  %3033 = vmatpush.msrb.mxu3 %v1210_v36 }
 0x386   :  { %v1078_v48 = vld [vmem:[%s9645_s3 + $0xaf8] sm:$0xff]  ;;  %2965 = vmatpush.msrb.mxu0 %v1014_v41  ;;  %v7919_v41 = vpop.f32.mrf.mxu1 }
 0x387   :  { %v1142_v51 = vld [vmem:[%s9645_s3 + $0xcf8] sm:$0xff]  ;;  %2988 = vmatpush.msrb.mxu1 %v1078_v48  ;;  %v7921_v48 = vpop.f32.mrf.mxu2 }
 0x388   :  { %v1206_v38 = vld [vmem:[%s9645_s3 + $0xef8] sm:$0xff]  ;;  %3011 = vmatpush.msrb.mxu2 %v1142_v51 }
 0x389   :  { %v1010_v12 = vld [vmem:[%s9645_s3 + $0x8d8] sm:$0xff]  ;;  %3034 = vmatpush.msrb.mxu3 %v1206_v38 }
 0x38a   :  { %v1074_v18 = vld [vmem:[%s9645_s3 + $0xad8] sm:$0xff]  ;;  %2966 = vmatpush.msrb.mxu0 %v1010_v12 }
 0x38b   :  { %v1138_v23 = vld [vmem:[%s9645_s3 + $0xcd8] sm:$0xff]  ;;  %2989 = vmatpush.msrb.mxu1 %v1074_v18 }
 0x38c   :  { %v1202_v31 = vld [vmem:[%s9645_s3 + $0xed8] sm:$0xff]  ;;  %3012 = vmatpush.msrb.mxu2 %v1138_v23 }
 0x38d   :  { %v1006_v36 = vld [vmem:[%s9645_s3 + $0x8b8] sm:$0xff]  ;;  %3035 = vmatpush.msrb.mxu3 %v1202_v31 }
 0x38e   :  { %v1070_v59 = vld [vmem:[%s9645_s3 + $0xab8] sm:$0xff]  ;;  %2967 = vmatpush.msrb.mxu0 %v1006_v36  ;;  %v7947_v36 = vpop.f32.mrf.mxu0 }
 0x38f   :  { %v1134_v5 = vld [vmem:[%s9645_s3 + $0xcb8] sm:$0xff]  ;;  %2990 = vmatpush.msrb.mxu1 %v1070_v59 }
 0x390   :  { %v1198_v51 = vld [vmem:[%s9645_s3 + $0xeb8] sm:$0xff]  ;;  %3013 = vmatpush.msrb.mxu2 %v1134_v5 }
 0x391   :  { %v1002_v38 = vld [vmem:[%s9645_s3 + $0x898] sm:$0xff]  ;;  %3036 = vmatpush.msrb.mxu3 %v1198_v51 }
 0x392   :  { %v1066_v50 = vld [vmem:[%s9645_s3 + $0xa98] sm:$0xff]  ;;  %2968 = vmatpush.msrb.mxu0 %v1002_v38  ;;  %v7961_v38 = vpop.f32.mrf.mxu3 }
 0x393   :  { %v1130_v12 = vld [vmem:[%s9645_s3 + $0xc98] sm:$0xff]  ;;  %2991 = vmatpush.msrb.mxu1 %v1066_v50 }
 0x394   :  { %v1194_v18 = vld [vmem:[%s9645_s3 + $0xe98] sm:$0xff]  ;;  %3014 = vmatpush.msrb.mxu2 %v1130_v12 }
 0x395   :  { %v998_v23 = vld [vmem:[%s9645_s3 + $0x878] sm:$0xff]  ;;  %3037 = vmatpush.msrb.mxu3 %v1194_v18 }
 0x396   :  { %v1062_v31 = vld [vmem:[%s9645_s3 + $0xa78] sm:$0xff]  ;;  %2969 = vmatpush.msrb.mxu0 %v998_v23 }
 0x397   :  { %v1126_v59 = vld [vmem:[%s9645_s3 + $0xc78] sm:$0xff]  ;;  %2992 = vmatpush.msrb.mxu1 %v1062_v31 }
 0x398   :  { %v1190_v5 = vld [vmem:[%s9645_s3 + $0xe78] sm:$0xff]  ;;  %3015 = vmatpush.msrb.mxu2 %v1126_v59 }
 0x399   :  { %v994_v51 = vld [vmem:[%s9645_s3 + $0x858] sm:$0xff]  ;;  %3038 = vmatpush.msrb.mxu3 %v1190_v5  ;;  %2993 = vmatpush.msrb.mxu1 %v1058_v58  ;;  %v7989_v58 = vpop.f32.mrf.mxu2 }
 0x39a   :  { %v1122_v50 = vld [vmem:[%s9645_s3 + $0xc58] sm:$0xff]  ;;  %2970 = vmatpush.msrb.mxu0 %v994_v51  ;;  %v7987_v51 = vpop.f32.mrf.mxu1 }
 0x39b   :  { %v1186_v12 = vld [vmem:[%s9645_s3 + $0xe58] sm:$0xff]  ;;  %3016 = vmatpush.msrb.mxu2 %v1122_v50 }
 0x39c   :  { %v990_v18 = vld [vmem:[%s9645_s3 + $0x838] sm:$0xff]  ;;  %3039 = vmatpush.msrb.mxu3 %v1186_v12  ;;  %v7997_v12 = vpop.f32.mrf.mxu0 }
 0x39d   :  { %v1054_v33 = vld [vmem:[%s9645_s3 + $0xa38] sm:$0xff]  ;;  %2971 = vmatpush.msrb.mxu0 %v990_v18 }
 0x39e   :  { %v1118_v23 = vld [vmem:[%s9645_s3 + $0xc38] sm:$0xff]  ;;  %2994 = vmatpush.msrb.mxu1 %v1054_v33 }
 0x39f   :  { %v1182_v31 = vld [vmem:[%s9645_s3 + $0xe38] sm:$0xff]  ;;  %3017 = vmatpush.msrb.mxu2 %v1118_v23 }
 0x3a0   :  { %v986_v59 = vld [vmem:[%s9645_s3 + $0x818] sm:$0xff]  ;;  %3040 = vmatpush.msrb.mxu3 %v1182_v31 }
 0x3a1   :  { %v1050_v5 = vld [vmem:[%s9645_s3 + $0xa18] sm:$0xff]  ;;  %2972 = vmatpush.msrb.mxu0 %v986_v59 }
 0x3a2   :  { %v1114_v3 = vld [vmem:[%s9645_s3 + $0xc18] sm:$0xff]  ;;  %2995 = vmatpush.msrb.mxu1 %v1050_v5  ;;  %2973 = vmatmul.f32.vlgmr.msrb.gmra.mxu0 %v5453_v1 }
 0x3a3   :  { %v1178_v50 = vld [vmem:[%s9645_s3 + $0xe18] sm:$0xff]  ;;  %3018 = vmatpush.msrb.mxu2 %v1114_v3  ;;  %2996 = vmatmul.f32.vlgmr.msrb.gmra.mxu1 %v5465_v6  ;;  %v8021_v6 = vpop.f32.mrf.mxu3 }
 0x3a4   :  { %3041 = vmatpush.msrb.mxu3 %v1178_v50  ;;  %v1302_v33 = vld [vmem:[%s9645_s3 + $0x11f8] sm:$0xff]  ;;  %3019 = vmatmul.f32.vlgmr.msrb.gmra.mxu2 %v5475_v11  ;;  %9669 = vst [vmem:[#allocation21_spill] sm:$0xff] %v8021_v6  ;;  %v8035_v50 = vpop.f32.mrf.mxu1 }
 0x3a5   :  { %v1366_v18 = vld [vmem:[%s9645_s3 + $0x13f8] sm:$0xff]  ;;  %3042 = vmatmul.f32.vlgmr.msrb.gmra.mxu3 %v5490_v17  ;;  %3049 = vmatpush.msra.mxu0 %v1302_v33  ;;  %9670 = vst [vmem:[#allocation22_spill] sm:$0xff] %v8035_v50  ;;  %v8037_v33 = vpop.f32.mrf.mxu2 }
 0x3a6   :  { %v1430_v23 = vld [vmem:[%s9645_s3 + $0x15f8] sm:$0xff]  ;;  %3072 = vmatpush.msra.mxu1 %v1366_v18  ;;  %9671 = vst [vmem:[#allocation23_spill] sm:$0xff] %v8037_v33 }
 0x3a7   :  { %v1494_v3 = vld [vmem:[%s9645_s3 + $0x17f8] sm:$0xff]  ;;  %3095 = vmatpush.msra.mxu2 %v1430_v23 }
 0x3a8   :  { %v1298_v31 = vld [vmem:[%s9645_s3 + $0x11d8] sm:$0xff]  ;;  %3118 = vmatpush.msra.mxu3 %v1494_v3 }
 0x3a9   :  { %v1362_v1 = vld [vmem:[%s9645_s3 + $0x13d8] sm:$0xff]  ;;  %3050 = vmatpush.msra.mxu0 %v1298_v31 }
 0x3aa   :  { %v1426_v59 = vld [vmem:[%s9645_s3 + $0x15d8] sm:$0xff]  ;;  %3073 = vmatpush.msra.mxu1 %v1362_v1  ;;  %2976 = vmatmul.f32.gmra.mxu0 %v5599_v2 }
 0x3ab   :  { %v1490_v11 = vld [vmem:[%s9645_s3 + $0x17d8] sm:$0xff]  ;;  %3096 = vmatpush.msra.mxu2 %v1426_v59  ;;  %v8057_v59 = vpop.f32.mrf.mxu0  ;;  %2999 = vmatmul.f32.gmra.mxu1 %v5610_v7 }
 0x3ac   :  { %v1294_v17 = vld [vmem:[%s9645_s3 + $0x11b8] sm:$0xff]  ;;  %3119 = vmatpush.msra.mxu3 %v1490_v11  ;;  %9672 = vst [vmem:[#allocation24_spill] sm:$0xff] %v8057_v59  ;;  %3022 = vmatmul.f32.gmra.mxu2 %v5621_v16 }
 0x3ad   :  { %v1358_v5 = vld [vmem:[%s9645_s3 + $0x13b8] sm:$0xff]  ;;  %3051 = vmatpush.msra.mxu0 %v1294_v17  ;;  %3045 = vmatmul.f32.gmra.mxu3 %v5637_v22 }
 0x3ae   :  { %v1422_v18 = vld [vmem:[%s9645_s3 + $0x15b8] sm:$0xff]  ;;  %3074 = vmatpush.msra.mxu1 %v1358_v5  ;;  %v8065_v5 = vpop.f32.mrf.mxu3 }
 0x3af   :  { %v1486_v23 = vld [vmem:[%s9645_s3 + $0x17b8] sm:$0xff]  ;;  %3097 = vmatpush.msra.mxu2 %v1422_v18  ;;  %9673 = vst [vmem:[#allocation25_spill] sm:$0xff] %v8065_v5 }
 0x3b0   :  { %v1290_v3 = vld [vmem:[%s9645_s3 + $0x1198] sm:$0xff]  ;;  %3120 = vmatpush.msra.mxu3 %v1486_v23 }
 0x3b1   :  { %v1354_v6 = vld [vmem:[%s9645_s3 + $0x1398] sm:$0xff]  ;;  %3052 = vmatpush.msra.mxu0 %v1290_v3 }
 0x3b2   :  { %v1418_v31 = vld [vmem:[%s9645_s3 + $0x1598] sm:$0xff]  ;;  %3075 = vmatpush.msra.mxu1 %v1354_v6 }
 0x3b3   :  { %v1482_v1 = vld [vmem:[%s9645_s3 + $0x1798] sm:$0xff]  ;;  %3098 = vmatpush.msra.mxu2 %v1418_v31  ;;  %v8095_v31 = vpop.f32.mrf.mxu1 }
 0x3b4   :  { %3121 = vmatpush.msra.mxu3 %v1482_v1  ;;  %v1286_v11 = vld [vmem:[%s9645_s3 + $0x1178] sm:$0xff]  ;;  %9674 = vst [vmem:[#allocation26_spill] sm:$0xff] %v8095_v31  ;;  %v8097_v1 = vpop.f32.mrf.mxu2 }
 0x3b5   :  { %v1350_v17 = vld [vmem:[%s9645_s3 + $0x1378] sm:$0xff]  ;;  %3053 = vmatpush.msra.mxu0 %v1286_v11  ;;  %9675 = vst [vmem:[#allocation27_spill] sm:$0xff] %v8097_v1 }
 0x3b6   :  { %v1414_v6 = vld [vmem:[%s9645_s3 + $0x1578] sm:$0xff]  ;;  %3076 = vmatpush.msra.mxu1 %v1350_v17 }
 0x3b7   :  { %v1478_v18 = vld [vmem:[%s9645_s3 + $0x1778] sm:$0xff]  ;;  %3099 = vmatpush.msra.mxu2 %v1414_v6 }
 0x3b8   :  { %v1282_v23 = vld [vmem:[%s9645_s3 + $0x1158] sm:$0xff]  ;;  %3122 = vmatpush.msra.mxu3 %v1478_v18 }
 0x3b9   :  { %v1346_v2 = vld [vmem:[%s9645_s3 + $0x1358] sm:$0xff]  ;;  %3054 = vmatpush.msra.mxu0 %v1282_v23  ;;  %v8111_v23 = vpop.f32.mrf.mxu0 }
 0x3ba   :  { %v1410_v7 = vld [vmem:[%s9645_s3 + $0x1558] sm:$0xff]  ;;  %3077 = vmatpush.msra.mxu1 %v1346_v2  ;;  %9676 = vst [vmem:[#allocation28_spill] sm:$0xff] %v8111_v23 }
 0x3bb   :  { %v1474_v16 = vld [vmem:[%s9645_s3 + $0x1758] sm:$0xff]  ;;  %3100 = vmatpush.msra.mxu2 %v1410_v7 }
 0x3bc   :  { %v1278_v22 = vld [vmem:[%s9645_s3 + $0x1138] sm:$0xff]  ;;  %3123 = vmatpush.msra.mxu3 %v1474_v16 }
 0x3bd   :  { %v1342_v3 = vld [vmem:[%s9645_s3 + $0x1338] sm:$0xff]  ;;  %3055 = vmatpush.msra.mxu0 %v1278_v22 }
 0x3be   :  { %v1406_v11 = vld [vmem:[%s9645_s3 + $0x1538] sm:$0xff]  ;;  %3078 = vmatpush.msra.mxu1 %v1342_v3 }
 0x3bf   :  { %v1470_v17 = vld [vmem:[%s9645_s3 + $0x1738] sm:$0xff]  ;;  %3101 = vmatpush.msra.mxu2 %v1406_v11 }
 0x3c0   :  { %v1274_v6 = vld [vmem:[%s9645_s3 + $0x1118] sm:$0xff]  ;;  %3124 = vmatpush.msra.mxu3 %v1470_v17 }
 0x3c1   :  { %v1338_v18 = vld [vmem:[%s9645_s3 + $0x1318] sm:$0xff]  ;;  %3056 = vmatpush.msra.mxu0 %v1274_v6  ;;  %v8137_v6 = vpop.f32.mrf.mxu3 }
 0x3c2   :  { %v1402_v2 = vld [vmem:[%s9645_s3 + $0x1518] sm:$0xff]  ;;  %3079 = vmatpush.msra.mxu1 %v1338_v18  ;;  %9677 = vst [vmem:[#allocation29_spill] sm:$0xff] %v8137_v6 }
 0x3c3   :  { %v1466_v7 = vld [vmem:[%s9645_s3 + $0x1718] sm:$0xff]  ;;  %3102 = vmatpush.msra.mxu2 %v1402_v2 }
 0x3c4   :  { %v1270_v16 = vld [vmem:[%s9645_s3 + $0x10f8] sm:$0xff]  ;;  %3125 = vmatpush.msra.mxu3 %v1466_v7 }
 0x3c5   :  { %v1334_v1 = vld [vmem:[%s9645_s3 + $0x12f8] sm:$0xff]  ;;  %3057 = vmatpush.msra.mxu0 %v1270_v16  ;;  %v8151_v16 = vpop.f32.mrf.mxu1 }
 0x3c6   :  { %v1398_v22 = vld [vmem:[%s9645_s3 + $0x14f8] sm:$0xff]  ;;  %3080 = vmatpush.msra.mxu1 %v1334_v1  ;;  %9678 = vst [vmem:[#allocation30_spill] sm:$0xff] %v8151_v16  ;;  %v8153_v1 = vpop.f32.mrf.mxu2 }
 0x3c7   :  { %v1462_v3 = vld [vmem:[%s9645_s3 + $0x16f8] sm:$0xff]  ;;  %3103 = vmatpush.msra.mxu2 %v1398_v22  ;;  %9679 = vst [vmem:[#allocation31_spill] sm:$0xff] %v8153_v1 }
 0x3c8   :  { %v1266_v11 = vld [vmem:[%s9645_s3 + $0x10d8] sm:$0xff]  ;;  %3126 = vmatpush.msra.mxu3 %v1462_v3 }
 0x3c9   :  { %v1330_v17 = vld [vmem:[%s9645_s3 + $0x12d8] sm:$0xff]  ;;  %3058 = vmatpush.msra.mxu0 %v1266_v11 }
 0x3ca   :  { %v1394_v18 = vld [vmem:[%s9645_s3 + $0x14d8] sm:$0xff]  ;;  %3081 = vmatpush.msra.mxu1 %v1330_v17 }
 0x3cb   :  { %v1458_v2 = vld [vmem:[%s9645_s3 + $0x16d8] sm:$0xff]  ;;  %3104 = vmatpush.msra.mxu2 %v1394_v18 }
 0x3cc   :  { %v1262_v7 = vld [vmem:[%s9645_s3 + $0x10b8] sm:$0xff]  ;;  %3127 = vmatpush.msra.mxu3 %v1458_v2 }
 0x3cd   :  { %v1326_v6 = vld [vmem:[%s9645_s3 + $0x12b8] sm:$0xff]  ;;  %3059 = vmatpush.msra.mxu0 %v1262_v7  ;;  %v8179_v7 = vpop.f32.mrf.mxu0 }
 0x3ce   :  { %v1390_v31 = vld [vmem:[%s9645_s3 + $0x14b8] sm:$0xff]  ;;  %3082 = vmatpush.msra.mxu1 %v1326_v6  ;;  %9680 = vst [vmem:[#allocation32_spill] sm:$0xff] %v8179_v7 }
 0x3cf   :  { %v1454_v22 = vld [vmem:[%s9645_s3 + $0x16b8] sm:$0xff]  ;;  %3105 = vmatpush.msra.mxu2 %v1390_v31 }
 0x3d0   :  { %v1258_v3 = vld [vmem:[%s9645_s3 + $0x1098] sm:$0xff]  ;;  %3128 = vmatpush.msra.mxu3 %v1454_v22 }
 0x3d1   :  { %v1322_v1 = vld [vmem:[%s9645_s3 + $0x1298] sm:$0xff]  ;;  %3060 = vmatpush.msra.mxu0 %v1258_v3  ;;  %v8193_v3 = vpop.f32.mrf.mxu3 }
 0x3d2   :  { %v1386_v11 = vld [vmem:[%s9645_s3 + $0x1498] sm:$0xff]  ;;  %3083 = vmatpush.msra.mxu1 %v1322_v1  ;;  %9681 = vst [vmem:[#allocation33_spill] sm:$0xff] %v8193_v3 }
 0x3d3   :  { %v1450_v17 = vld [vmem:[%s9645_s3 + $0x1698] sm:$0xff]  ;;  %3106 = vmatpush.msra.mxu2 %v1386_v11 }
 0x3d4   :  { %v1254_v18 = vld [vmem:[%s9645_s3 + $0x1078] sm:$0xff]  ;;  %3129 = vmatpush.msra.mxu3 %v1450_v17 }
 0x3d5   :  { %v1318_v2 = vld [vmem:[%s9645_s3 + $0x1278] sm:$0xff]  ;;  %3061 = vmatpush.msra.mxu0 %v1254_v18 }
 0x3d6   :  { %v1382_v6 = vld [vmem:[%s9645_s3 + $0x1478] sm:$0xff]  ;;  %3084 = vmatpush.msra.mxu1 %v1318_v2 }
 0x3d7   :  { %v1446_v31 = vld [vmem:[%s9645_s3 + $0x1678] sm:$0xff]  ;;  %3107 = vmatpush.msra.mxu2 %v1382_v6 }
 0x3d8   :  { %v1250_v22 = vld [vmem:[%s9645_s3 + $0x1058] sm:$0xff]  ;;  %3130 = vmatpush.msra.mxu3 %v1446_v31 }
 0x3d9   :  { %v1314_v7 = vld [vmem:[%s9645_s3 + $0x1258] sm:$0xff]  ;;  %3062 = vmatpush.msra.mxu0 %v1250_v22  ;;  %v8219_v22 = vpop.f32.mrf.mxu1 }
 0x3da   :  { %v1378_v1 = vld [vmem:[%s9645_s3 + $0x1458] sm:$0xff]  ;;  %3085 = vmatpush.msra.mxu1 %v1314_v7  ;;  %9682 = vst [vmem:[#allocation34_spill] sm:$0xff] %v8219_v22  ;;  %v8221_v7 = vpop.f32.mrf.mxu2 }
 0x3db   :  { %v1442_v11 = vld [vmem:[%s9645_s3 + $0x1658] sm:$0xff]  ;;  %3108 = vmatpush.msra.mxu2 %v1378_v1  ;;  %9683 = vst [vmem:[#allocation35_spill] sm:$0xff] %v8221_v7 }
 0x3dc   :  { %v1246_v17 = vld [vmem:[%s9645_s3 + $0x1038] sm:$0xff]  ;;  %3131 = vmatpush.msra.mxu3 %v1442_v11  ;;  %v8229_v11 = vpop.f32.mrf.mxu0 }
 0x3dd   :  { %v1310_v3 = vld [vmem:[%s9645_s3 + $0x1238] sm:$0xff]  ;;  %3063 = vmatpush.msra.mxu0 %v1246_v17 }
 0x3de   :  { %v1374_v18 = vld [vmem:[%s9645_s3 + $0x1438] sm:$0xff]  ;;  %3086 = vmatpush.msra.mxu1 %v1310_v3 }
 0x3df   :  { %v1438_v2 = vld [vmem:[%s9645_s3 + $0x1638] sm:$0xff]  ;;  %3109 = vmatpush.msra.mxu2 %v1374_v18 }
 0x3e0   :  { %v1242_v6 = vld [vmem:[%s9645_s3 + $0x1018] sm:$0xff]  ;;  %3132 = vmatpush.msra.mxu3 %v1438_v2 }
 0x3e1   :  { %v1306_v31 = vld [vmem:[%s9645_s3 + $0x1218] sm:$0xff]  ;;  %3064 = vmatpush.msra.mxu0 %v1242_v6 }
 0x3e2   :  { %v1370_v16 = vld [vmem:[%s9645_s3 + $0x1418] sm:$0xff]  ;;  %3087 = vmatpush.msra.mxu1 %v1306_v31  ;;  %3065 = vmatmul.f32.vlgmr.msra.gmra.mxu0 %v5667_v34 }
 0x3e3   :  { %v1434_v1 = vld [vmem:[%s9645_s3 + $0x1618] sm:$0xff]  ;;  %3110 = vmatpush.msra.mxu2 %v1370_v16  ;;  %3088 = vmatmul.f32.vlgmr.msra.gmra.mxu1 %v5679_v43  ;;  %v8253_v43 = vpop.f32.mrf.mxu3 }
 0x3e4   :  { %3133 = vmatpush.msra.mxu3 %v1434_v1  ;;  %v1558_v3 = vld [vmem:[%s9645_s3 + $0x19f8] sm:$0xff]  ;;  %3111 = vmatmul.f32.vlgmr.msra.gmra.mxu2 %v5717_v45  ;;  %9684 = vst [vmem:[#allocation36_spill] sm:$0xff] %v8253_v43  ;;  %v8267_v1 = vpop.f32.mrf.mxu1 }
 0x3e5   :  { %v1622_v17 = vld [vmem:[%s9645_s3 + $0x1bf8] sm:$0xff]  ;;  %3134 = vmatmul.f32.vlgmr.msra.gmra.mxu3 %v5738_v15  ;;  %3141 = vmatpush.msrb.mxu0 %v1558_v3  ;;  %v8269_v3 = vpop.f32.mrf.mxu2 }
 0x3e6   :  { %v1686_v18 = vld [vmem:[%s9645_s3 + $0x1df8] sm:$0xff]  ;;  %3164 = vmatpush.msrb.mxu1 %v1622_v17 }
 0x3e7   :  { %v1750_v16 = vld [vmem:[%s9645_s3 + $0x1ff8] sm:$0xff]  ;;  %3187 = vmatpush.msrb.mxu2 %v1686_v18 }
 0x3e8   :  { %v1554_v2 = vld [vmem:[%s9645_s3 + $0x19d8] sm:$0xff]  ;;  %3210 = vmatpush.msrb.mxu3 %v1750_v16 }
 0x3e9   :  { %v1618_v34 = vld [vmem:[%s9645_s3 + $0x1bd8] sm:$0xff]  ;;  %3142 = vmatpush.msrb.mxu0 %v1554_v2 }
 0x3ea   :  { %v1682_v6 = vld [vmem:[%s9645_s3 + $0x1dd8] sm:$0xff]  ;;  %3165 = vmatpush.msrb.mxu1 %v1618_v34  ;;  %3068 = vmatmul.f32.gmra.mxu0 %v5730_v10 }
 0x3eb   :  { %v1746_v45 = vld [vmem:[%s9645_s3 + $0x1fd8] sm:$0xff]  ;;  %3188 = vmatpush.msrb.mxu2 %v1682_v6  ;;  %v8292_v6 = vld [vmem:[%s9646_s4] sm:$0xf]  ;;  %3091 = vmatmul.f32.gmra.mxu1 %v5747_v19 }
 0x3ec   :  { %v1550_v15 = vld [vmem:[%s9645_s3 + $0x19b8] sm:$0xff]  ;;  %3211 = vmatpush.msrb.mxu3 %v1746_v45  ;;  %v8294_v45 = vpop.f32.mrf.mxu0  ;;  %3114 = vmatmul.f32.gmra.mxu2 %v5783_v37  ;;  %v1754_v22 = vperm.slane %v8292_v6, 1  ;;  %v9685_v59 = vperm.slane %v8292_v6, 2 }
 0x3ed   :  { %v1614_v31 = vld [vmem:[%s9645_s3 + $0x1bb8] sm:$0xff]  ;;  %3143 = vmatpush.msrb.mxu0 %v1550_v15  ;;  %3137 = vmatmul.f32.gmra.mxu3 %v5800_v47 }
 0x3ee   :  { %v1678_v17 = vld [vmem:[%s9645_s3 + $0x1db8] sm:$0xff]  ;;  %3166 = vmatpush.msrb.mxu1 %v1614_v31  ;;  %v2515_v33 = vadd.f32 %v8229_v11, %v9685_v59 }
 0x3ef   :  { %v1742_v18 = vld [vmem:[%s9645_s3 + $0x1fb8] sm:$0xff]  ;;  %3189 = vmatpush.msrb.mxu2 %v1678_v17  ;;  %v8302_v17 = vpop.f32.mrf.mxu3 }
 0x3f0   :  { %v1546_v16 = vld [vmem:[%s9645_s3 + $0x1998] sm:$0xff]  ;;  %3212 = vmatpush.msrb.mxu3 %v1742_v18 }
 0x3f1   :  { %v1610_v43 = vld [vmem:[%s9645_s3 + $0x1b98] sm:$0xff]  ;;  %3144 = vmatpush.msrb.mxu0 %v1546_v16  ;;  %v1753_v16 = vperm.slane %v8292_v6, 0 }
 0x3f2   :  { %v1674_v2 = vld [vmem:[%s9645_s3 + $0x1d98] sm:$0xff]  ;;  %3167 = vmatpush.msrb.mxu1 %v1610_v43 }
 0x3f3   :  { %v1738_v34 = vld [vmem:[%s9645_s3 + $0x1f98] sm:$0xff]  ;;  %3190 = vmatpush.msrb.mxu2 %v1674_v2  ;;  %v1782_v11 = vadd.f32 %v7355_v13, %v1753_v16 }
 0x3f4   :  { %3213 = vmatpush.msrb.mxu3 %v1738_v34  ;;  %v1542_v15 = vld [vmem:[%s9645_s3 + $0x1978] sm:$0xff]  ;;  %v8352_v5 = vpop.f32.mrf.mxu0 }
 0x3f5   :  { %v1606_v31 = vld [vmem:[%s9645_s3 + $0x1b78] sm:$0xff]  ;;  %3145 = vmatpush.msrb.mxu0 %v1542_v15  ;;  %v8333_v15 = vpop.f32.mrf.mxu1 }
 0x3f6   :  { %v1670_v43 = vld [vmem:[%s9645_s3 + $0x1d78] sm:$0xff]  ;;  %3168 = vmatpush.msrb.mxu1 %v1606_v31  ;;  %v8335_v31 = vpop.f32.mrf.mxu2 }
 0x3f7   :  { %v1734_v18 = vld [vmem:[%s9645_s3 + $0x1f78] sm:$0xff]  ;;  %3191 = vmatpush.msrb.mxu2 %v1670_v43  ;;  %v8385_v50 = vpop.f32.mrf.mxu3 }
 0x3f8   :  { %v1538_v10 = vld [vmem:[%s9645_s3 + $0x1958] sm:$0xff]  ;;  %3214 = vmatpush.msrb.mxu3 %v1734_v18  ;;  %v1779_v18 = vadd.f32 %v7297_v52, %v1753_v16 }
 0x3f9   :  { %v1602_v19 = vld [vmem:[%s9645_s3 + $0x1b58] sm:$0xff]  ;;  %3146 = vmatpush.msrb.mxu0 %v1538_v10 }
 0x3fa   :  { %v1666_v2 = vld [vmem:[%s9645_s3 + $0x1d58] sm:$0xff]  ;;  %3169 = vmatpush.msrb.mxu1 %v1602_v19 }
 0x3fb   :  { %v1730_v37 = vld [vmem:[%s9645_s3 + $0x1f58] sm:$0xff]  ;;  %3192 = vmatpush.msrb.mxu2 %v1666_v2 }
 0x3fc   :  { %v1534_v47 = vld [vmem:[%s9645_s3 + $0x1938] sm:$0xff]  ;;  %3215 = vmatpush.msrb.mxu3 %v1730_v37 }
 0x3fd   :  { %v1598_v34 = vld [vmem:[%s9645_s3 + $0x1b38] sm:$0xff]  ;;  %3147 = vmatpush.msrb.mxu0 %v1534_v47 }
 0x3fe   :  { %v1662_v7 = vld [vmem:[%s9645_s3 + $0x1d38] sm:$0xff]  ;;  %3170 = vmatpush.msrb.mxu1 %v1598_v34 }
 0x3ff   :  { %v1726_v43 = vld [vmem:[%s9645_s3 + $0x1f38] sm:$0xff]  ;;  %3193 = vmatpush.msrb.mxu2 %v1662_v7  ;;  %v1802_v7 = vadd.f32 %v7327_v0, %v1779_v18 }
 0x400   :  { %v1530_v23 = vld [vmem:[%s9645_s3 + $0x1918] sm:$0xff]  ;;  %3216 = vmatpush.msrb.mxu3 %v1726_v43  ;;  %v2147_v43 = vadd.f32 %v7765_v32, %v1754_v22 }
 0x401   :  { %v1594_v10 = vld [vmem:[%s9645_s3 + $0x1b18] sm:$0xff]  ;;  %3148 = vmatpush.msrb.mxu0 %v1530_v23 }
 0x402   :  { %v1658_v52 = vld [vmem:[%s9645_s3 + $0x1d18] sm:$0xff]  ;;  %3171 = vmatpush.msrb.mxu1 %v1594_v10 }
 0x403   :  { %v1722_v2 = vld [vmem:[%s9645_s3 + $0x1f18] sm:$0xff]  ;;  %3194 = vmatpush.msrb.mxu2 %v1658_v52  ;;  %v8402_v52 = vpop.f32.mrf.mxu2 }
 0x404   :  { %v1526_v37 = vld [vmem:[%s9645_s3 + $0x18f8] sm:$0xff]  ;;  %3217 = vmatpush.msrb.mxu3 %v1722_v2 }
 0x405   :  { %v1590_v19 = vld [vmem:[%s9645_s3 + $0x1af8] sm:$0xff]  ;;  %3149 = vmatpush.msrb.mxu0 %v1526_v37 }
 0x406   :  { %v1654_v47 = vld [vmem:[%s9645_s3 + $0x1cf8] sm:$0xff]  ;;  %3172 = vmatpush.msrb.mxu1 %v1590_v19  ;;  %v8400_v19 = vpop.f32.mrf.mxu1 }
 0x407   :  { %v1718_v34 = vld [vmem:[%s9645_s3 + $0x1ef8] sm:$0xff]  ;;  %3195 = vmatpush.msrb.mxu2 %v1654_v47  ;;  %v1825_v47 = vadd.f32 %v7341_v9, %v1802_v7 }
 0x408   :  { %v1522_v23 = vld [vmem:[%s9645_s3 + $0x18d8] sm:$0xff]  ;;  %3218 = vmatpush.msrb.mxu3 %v1718_v34  ;;  %v2170_v34 = vadd.f32 %v7803_v28, %v2147_v43 }
 0x409   :  { %v1586_v10 = vld [vmem:[%s9645_s3 + $0x1ad8] sm:$0xff]  ;;  %3150 = vmatpush.msrb.mxu0 %v1522_v23  ;;  %v2538_v23 = vadd.f32 %v8267_v1, %v2515_v33  ;;  %v1805_v1 = vadd.f32 %v7387_v39, %v1782_v11  ;;  %v8452_v11 = vpop.f32.mrf.mxu3 }
 0x40a   :  { %v1650_v0 = vld [vmem:[%s9645_s3 + $0x1cd8] sm:$0xff]  ;;  %3173 = vmatpush.msrb.mxu1 %v1586_v10  ;;  %v2193_v7 = vadd.f32 %v7805_v63, %v2170_v34 }
 0x40b   :  { %v1714_v32 = vld [vmem:[%s9645_s3 + $0x1ed8] sm:$0xff]  ;;  %3196 = vmatpush.msrb.mxu2 %v1650_v0  ;;  %v2561_v10 = vadd.f32 %v8269_v3, %v2538_v23  ;;  %v8434_v0 = vpop.f32.mrf.mxu0 }
 0x40c   :  { %v1518_v18 = vld [vmem:[%s9645_s3 + $0x18b8] sm:$0xff]  ;;  %3219 = vmatpush.msrb.mxu3 %v1714_v32 }
 0x40d   :  { %v1582_v59 = vld [vmem:[%s9645_s3 + $0x1ab8] sm:$0xff]  ;;  %3151 = vmatpush.msrb.mxu0 %v1518_v18  ;;  %v1848_v18 = vadd.f32 %v7363_v25, %v1825_v47  ;;  %v9686_v47 = vperm.slane %v8292_v6, 2 }
 0x40e   :  { %v1646_v2 = vld [vmem:[%s9645_s3 + $0x1cb8] sm:$0xff]  ;;  %3174 = vmatpush.msrb.mxu1 %v1582_v59  ;;  %v2150_v59 = vadd.f32 %v7825_v8, %v1754_v22 }
 0x40f   :  { %v1710_v37 = vld [vmem:[%s9645_s3 + $0x1eb8] sm:$0xff]  ;;  %3197 = vmatpush.msrb.mxu2 %v1646_v2  ;;  %v2518_v34 = vadd.f32 %v8294_v45, %v9686_v47  ;;  %v1871_v45 = vadd.f32 %v7415_v62, %v1848_v18 }
 0x410   :  { %v1514_v13 = vld [vmem:[%s9645_s3 + $0x1898] sm:$0xff]  ;;  %3220 = vmatpush.msrb.mxu3 %v1710_v37  ;;  %v2216_v37 = vadd.f32 %v7833_v44, %v2193_v7  ;;  %v8488_v7 = vpop.f32.mrf.mxu1 }
 0x411   :  { %v1578_v16 = vld [vmem:[%s9645_s3 + $0x1a98] sm:$0xff]  ;;  %3152 = vmatpush.msrb.mxu0 %v1514_v13  ;;  %v1828_v13 = vadd.f32 %v7401_v56, %v1805_v1 }
 0x412   :  { %v1642_v9 = vld [vmem:[%s9645_s3 + $0x1c98] sm:$0xff]  ;;  %3175 = vmatpush.msrb.mxu1 %v1578_v16  ;;  %v2584_v16 = vadd.f32 %v8302_v17, %v2561_v10  ;;  %v2239_v23 = vadd.f32 %v7879_v60, %v2216_v37  ;;  %v1894_v10 = vadd.f32 %v7455_v30, %v1871_v45  ;;  %v3429_v30 = vld [vmem:[%s9647_s5 + $0x5e0] sm:$0xff] }
 0x413   :  { %v1706_v28 = vld [vmem:[%s9645_s3 + $0x1e98] sm:$0xff]  ;;  %3198 = vmatpush.msrb.mxu2 %v1642_v9  ;;  %v2173_v9 = vadd.f32 %v7863_v24, %v2150_v59  ;;  %v1851_v24 = vadd.f32 %v7429_v14, %v1828_v13  ;;  %v2698_v1 = vpop.f32.mrf.mxu0  ;;  %v3365_v14 = vld [vmem:[%s9647_s5 + $0x3e0] sm:$0xff] }
 0x414   :  { %v1510_v43 = vld [vmem:[%s9645_s3 + $0x1878] sm:$0xff]  ;;  %3221 = vmatpush.msrb.mxu3 %v1706_v28  ;;  %v2607_v28 = vadd.f32 %v8352_v5, %v2584_v16  ;;  %v3421_v59 = vld [vmem:[%s9647_s5 + $0x5a0] sm:$0xff] }
 0x415   :  { %v1574_v33 = vld [vmem:[%s9645_s3 + $0x1a78] sm:$0xff]  ;;  %3153 = vmatpush.msrb.mxu0 %v1510_v43  ;;  %v8490_v43 = vpop.f32.mrf.mxu2  ;;  %v2196_v5 = vadd.f32 %v7865_v4, %v2173_v9  ;;  %v3289_v37 = vld [vmem:[%s9647_s5 + $0x180] sm:$0xff] }
 0x416   :  { %v1638_v63 = vld [vmem:[%s9645_s3 + $0x1c78] sm:$0xff]  ;;  %3176 = vmatpush.msrb.mxu1 %v1574_v33  ;;  %v2541_v33 = vadd.f32 %v8333_v15, %v2518_v34  ;;  %v3301_v15 = vld [vmem:[%s9647_s5 + $0x1e0] sm:$0xff]  ;;  %v2630_v4 = vadd.f32 %v8400_v19, %v2607_v28 }
 0x417   :  { %v1702_v32 = vld [vmem:[%s9645_s3 + $0x1e78] sm:$0xff]  ;;  %3199 = vmatpush.msrb.mxu2 %v1638_v63  ;;  %v2262_v63 = vadd.f32 %v7919_v41, %v2239_v23  ;;  %v1917_v41 = vadd.f32 %v7469_v53, %v1894_v10  ;;  %v3297_v19 = vld [vmem:[%s9647_s5 + $0x1c0] sm:$0xff]  ;;  %v2219_v18 = vadd.f32 %v7905_v40, %v2196_v5 }
 0x418   :  { %v1506_v39 = vld [vmem:[%s9645_s3 + $0x1858] sm:$0xff]  ;;  %3222 = vmatpush.msrb.mxu3 %v1702_v32  ;;  %v2564_v32 = vadd.f32 %v8335_v31, %v2541_v33  ;;  %v2653_v53 = vadd.f32 %v8402_v52, %v2630_v4  ;;  %v2721_v52 = vpop.f32.mrf.mxu1  ;;  %v9690_v28 = vld [vmem:[#allocation23_spill] sm:$0xff] }
 0x419   :  { %v1570_v3 = vld [vmem:[%s9645_s3 + $0x1a58] sm:$0xff]  ;;  %3154 = vmatpush.msrb.mxu0 %v1506_v39  ;;  %v2285_v31 = vadd.f32 %v7921_v48, %v2262_v63  ;;  %v8529_v39 = vpop.f32.mrf.mxu3  ;;  %v3293_v48 = vld [vmem:[%s9647_s5 + $0x1a0] sm:$0xff]  ;;  %v2242_v40 = vadd.f32 %v7947_v36, %v2219_v18  ;;  %v9695_v18 = vld [vmem:[#allocation9_spill] sm:$0xff] }
 0x41a   :  { %v1634_v25 = vld [vmem:[%s9645_s3 + $0x1c58] sm:$0xff]  ;;  %3177 = vmatpush.msrb.mxu1 %v1570_v3  ;;  %v3353_v36 = vld [vmem:[%s9647_s5 + $0x380] sm:$0xff]  ;;  %v2676_v34 = vadd.f32 %v8452_v11, %v2653_v53 }
 0x41b   :  { %v1698_v2 = vld [vmem:[%s9645_s3 + $0x1e58] sm:$0xff]  ;;  %3200 = vmatpush.msrb.mxu2 %v1634_v25  ;;  %v2308_v25 = vadd.f32 %v7961_v38, %v2285_v31  ;;  %v2701_v13 = vpop.f32.mrf.mxu0  ;;  %v3401_v4 = vld [vmem:[%s9647_s5 + $0x500] sm:$0xff]  ;;  %v9694_v31 = vld [vmem:[#allocation24_spill] sm:$0xff] }
 0x41c   :  { %v1502_v8 = vld [vmem:[%s9645_s3 + $0x1838] sm:$0xff]  ;;  %3223 = vmatpush.msrb.mxu3 %v1698_v2 }
 0x41d   :  { %v1566_v22 = vld [vmem:[%s9645_s3 + $0x1a38] sm:$0xff]  ;;  %3155 = vmatpush.msrb.mxu0 %v1502_v8  ;;  %v2744_v3 = vpop.f32.mrf.mxu2  ;;  %v2265_v8 = vadd.f32 %v7987_v51, %v2242_v40  ;;  %v3413_v51 = vld [vmem:[%s9647_s5 + $0x560] sm:$0xff] }
 0x41e   :  { %v1630_v44 = vld [vmem:[%s9645_s3 + $0x1c38] sm:$0xff]  ;;  %3178 = vmatpush.msrb.mxu1 %v1566_v22  ;;  %v2699_v22 = vadd.f32 %v2698_v1, %v2676_v34 }
 0x41f   :  { %v1694_v6 = vld [vmem:[%s9645_s3 + $0x1e38] sm:$0xff]  ;;  %3201 = vmatpush.msrb.mxu2 %v1630_v44  ;;  %v2288_v16 = vadd.f32 %v7989_v58, %v2265_v8  ;;  %v9689_v58 = vld [vmem:[#allocation7_spill] sm:$0xff] }
 0x420   :  { %v1498_v56 = vld [vmem:[%s9645_s3 + $0x1818] sm:$0xff]  ;;  %3224 = vmatpush.msrb.mxu3 %v1694_v6  ;;  %v2724_v10 = vpop.f32.mrf.mxu1  ;;  %v3261_v8 = vld [vmem:[%s9647_s5 + $0xa0] sm:$0xff] }
 0x421   :  { %v1562_v17 = vld [vmem:[%s9645_s3 + $0x1a18] sm:$0xff]  ;;  %3156 = vmatpush.msrb.mxu0 %v1498_v56  ;;  %v2767_v44 = vpop.f32.mrf.mxu3 }
 0x422   :  { %v1626_v62 = vld [vmem:[%s9645_s3 + $0x1c18] sm:$0xff]  ;;  %3179 = vmatpush.msrb.mxu1 %v1562_v17  ;;  %3157 = vmatmul.f32.vlgmr.msrb.gmra.mxu0 %v5904_v46  ;;  %v3361_v46 = vld [vmem:[%s9647_s5 + $0x3c0] sm:$0xff]  ;;  %v9688_v17 = vld [vmem:[#allocation5_spill] sm:$0xff] }
 0x423   :  { %v1690_v60 = vld [vmem:[%s9645_s3 + $0x1e18] sm:$0xff]  ;;  %3202 = vmatpush.msrb.mxu2 %v1626_v62  ;;  %3180 = vmatmul.f32.vlgmr.msrb.gmra.mxu1 %v5915_v55  ;;  %v1874_v55 = vadd.f32 %v7471_v54, %v1851_v24  ;;  %v3357_v54 = vld [vmem:[%s9647_s5 + $0x3a0] sm:$0xff]  ;;  %v9692_v24 = vld [vmem:[#allocation21_spill] sm:$0xff] }
 0x424   :  { %3225 = vmatpush.msrb.mxu3 %v1690_v60  ;;  %3203 = vmatmul.f32.vlgmr.msrb.gmra.mxu2 %v5953_v20  ;;  %v3425_v20 = vld [vmem:[%s9647_s5 + $0x5c0] sm:$0xff]  ;;  %v9687_v45 = vld [vmem:[#allocation22_spill] sm:$0xff]  ;;  %v2311_v5 = vadd.f32 %v9692_v24, %v2288_v16  ;;  %v9708_v24 = vld [vmem:[#allocation29_spill] sm:$0xff] }
 0x425   :  { %3226 = vmatmul.f32.vlgmr.msrb.gmra.mxu3 %v5974_v29  ;;  %3507 = vmatpush.msra.mxu0 %v3301_v15  ;;  %v2587_v29 = vadd.f32 %v8385_v50, %v2564_v32  ;;  %v1940_v50 = vadd.f32 %v7497_v35, %v1917_v41  ;;  %v1897_v47 = vadd.f32 %v7511_v27, %v1874_v55  ;;  %v3417_v35 = vld [vmem:[%s9647_s5 + $0x580] sm:$0xff]  ;;  %v9691_v60 = vld [vmem:[#allocation6_spill] sm:$0xff]  ;;  %v2747_v63 = vpop.f32.mrf.mxu2 }
 0x426   :  { %3530 = vmatpush.msra.mxu1 %v3365_v14  ;;  %3553 = vmatpush.msra.mxu2 %v3429_v30  ;;  %v3285_v27 = vld [vmem:[%s9647_s5 + $0x160] sm:$0xff]  ;;  %v9693_v30 = vld [vmem:[#allocation8_spill] sm:$0xff]  ;;  %v9700_v34 = vld [vmem:[#allocation26_spill] sm:$0xff] }
 0x427   :  { %3508 = vmatpush.msra.mxu0 %v3297_v19  ;;  %v2610_v2 = vadd.f32 %v8434_v0, %v2587_v29  ;;  %v1963_v38 = vadd.f32 %v7533_v57, %v1940_v50  ;;  %v2331_v0 = vadd.f32 %v7997_v12, %v2308_v25  ;;  %v3349_v57 = vld [vmem:[%s9647_s5 + $0x360] sm:$0xff]  ;;  %v1920_v12 = vadd.f32 %v7525_v42, %v1897_v47  ;;  %v9698_v50 = vld [vmem:[#allocation28_spill] sm:$0xff] }
 0x428   :  { %3531 = vmatpush.msra.mxu1 %v3361_v46  ;;  %3554 = vmatpush.msra.mxu2 %v3425_v20  ;;  %v3345_v42 = vld [vmem:[%s9647_s5 + $0x340] sm:$0xff]  ;;  %v2334_v19 = vadd.f32 %v9694_v31, %v2311_v5  ;;  %v2790_v46 = vpop.f32.mrf.mxu0  ;;  %v2813_v16 = vpop.f32.mrf.mxu1 }
 0x429   :  { %3509 = vmatpush.msra.mxu0 %v3293_v48  ;;  %v2633_v11 = vadd.f32 %v8488_v7, %v2610_v2  ;;  %v1986_v6 = vadd.f32 %v7571_v21, %v1963_v38  ;;  %v2354_v23 = vadd.f32 %v9687_v45, %v2331_v0  ;;  %v3277_v21 = vld [vmem:[%s9647_s5 + $0x120] sm:$0xff]  ;;  %v1943_v33 = vadd.f32 %v9691_v60, %v1920_v12  ;;  %v2770_v38 = vpop.f32.mrf.mxu3  ;;  %v9707_v60 = vld [vmem:[#allocation13_spill] sm:$0xff] }
 0x42a   :  { %3532 = vmatpush.msra.mxu1 %v3357_v54  ;;  %3555 = vmatpush.msra.mxu2 %v3421_v59  ;;  %v3405_v62 = vld [vmem:[%s9647_s5 + $0x520] sm:$0xff] }
 0x42b   :  { %3510 = vmatpush.msra.mxu0 %v3289_v37  ;;  %3183 = vmatmul.f32.gmra.mxu1 %v5983_v49  ;;  %v2656_v56 = vadd.f32 %v8490_v43, %v2633_v11  ;;  %v3409_v49 = vld [vmem:[%s9647_s5 + $0x540] sm:$0xff]  ;;  %v2009_v9 = vadd.f32 %v9689_v58, %v1986_v6  ;;  %v2377_v7 = vadd.f32 %v9690_v28, %v2354_v23  ;;  %v9703_v6 = vld [vmem:[#allocation14_spill] sm:$0xff] }
 0x42c   :  { %3533 = vmatpush.msra.mxu1 %v3353_v36  ;;  %3556 = vmatpush.msra.mxu2 %v3417_v35  ;;  %v3341_v43 = vld [vmem:[%s9647_s5 + $0x320] sm:$0xff]  ;;  %v1966_v41 = vadd.f32 %v9693_v30, %v1943_v33  ;;  %v9699_v36 = vld [vmem:[#allocation10_spill] sm:$0xff]  ;;  %v2357_v35 = vadd.f32 %v9700_v34, %v2334_v19 }
 0x42d   :  { %3160 = vmatmul.f32.gmra.mxu0 %v5966_v26  ;;  %3206 = vmatmul.f32.gmra.mxu2 %v6019_v61  ;;  %v3281_v26 = vld [vmem:[%s9647_s5 + $0x140] sm:$0xff]  ;;  %v2722_v61 = vadd.f32 %v2721_v52, %v2699_v22  ;;  %v2679_v15 = vadd.f32 %v8529_v39, %v2656_v56  ;;  %v2032_v53 = vadd.f32 %v9695_v18, %v2009_v9  ;;  %v9696_v39 = vld [vmem:[#allocation25_spill] sm:$0xff]  ;;  %v9704_v23 = vld [vmem:[#allocation30_spill] sm:$0xff] }
 0x42e   :  { %3229 = vmatmul.f32.gmra.mxu3 %v9688_v17  ;;  %3511 = vmatpush.msra.mxu0 %v3285_v27  ;;  %v3273_v32 = vld [vmem:[%s9647_s5 + $0x100] sm:$0xff]  ;;  %v2400_v20 = vadd.f32 %v9696_v39, %v2377_v7  ;;  %v1989_v47 = vadd.f32 %v9699_v36, %v1966_v41  ;;  %v9710_v41 = vld [vmem:[#allocation32_spill] sm:$0xff] }
 0x42f   :  { %3534 = vmatpush.msra.mxu1 %v3349_v57  ;;  %3557 = vmatpush.msra.mxu2 %v3413_v51  ;;  %v2745_v1 = vadd.f32 %v2744_v3, %v2722_v61  ;;  %v3337_v14 = vld [vmem:[%s9647_s5 + $0x300] sm:$0xff]  ;;  %v2702_v29 = vadd.f32 %v2701_v13, %v2679_v15  ;;  %v9697_v3 = vld [vmem:[#allocation12_spill] sm:$0xff] }
 0x430   :  { %3512 = vmatpush.msra.mxu0 %v3281_v26  ;;  %v3269_v55 = vld [vmem:[%s9647_s5 + $0xe0] sm:$0xff]  ;;  %v2055_v59 = vadd.f32 %v9697_v3, %v2032_v53  ;;  %v2423_v25 = vadd.f32 %v9698_v50, %v2400_v20  ;;  %v9712_v53 = vld [vmem:[#allocation33_spill] sm:$0xff] }
 0x431   :  { %3535 = vmatpush.msra.mxu1 %v3345_v42  ;;  %3558 = vmatpush.msra.mxu2 %v3409_v49  ;;  %v3333_v48 = vld [vmem:[%s9647_s5 + $0x2e0] sm:$0xff]  ;;  %v2768_v40 = vadd.f32 %v2767_v44, %v2745_v1  ;;  %v2725_v22 = vadd.f32 %v2724_v10, %v2702_v29  ;;  %v2836_v44 = vpop.f32.mrf.mxu2  ;;  %v2793_v10 = vpop.f32.mrf.mxu0 }
 0x432   :  { %3513 = vmatpush.msra.mxu0 %v3277_v21  ;;  %v3397_v54 = vld [vmem:[%s9647_s5 + $0x4e0] sm:$0xff]  ;;  %v2078_v45 = vadd.f32 %v9703_v6, %v2055_v59  ;;  %v2446_v56 = vadd.f32 %v9704_v23, %v2423_v25  ;;  %v2859_v19 = vpop.f32.mrf.mxu3  ;;  %v9713_v59 = vld [vmem:[#allocation18_spill] sm:$0xff]  ;;  %v9717_v6 = vld [vmem:[#allocation20_spill] sm:$0xff] }
 0x433   :  { %3536 = vmatpush.msra.mxu1 %v3341_v43  ;;  %3559 = vmatpush.msra.mxu2 %v3405_v62  ;;  %v3265_v52 = vld [vmem:[%s9647_s5 + $0xc0] sm:$0xff]  ;;  %v2791_v0 = vadd.f32 %v2790_v46, %v2768_v40  ;;  %v2748_v17 = vadd.f32 %v2747_v63, %v2725_v22  ;;  %v9714_v25 = vld [vmem:[#allocation34_spill] sm:$0xff]  ;;  %v9718_v23 = vld [vmem:[#allocation36_spill] sm:$0xff] }
 0x434   :  { %3514 = vmatpush.msra.mxu0 %v3273_v32  ;;  %v3329_v2 = vld [vmem:[%s9647_s5 + $0x2c0] sm:$0xff] }
 0x435   :  { %3537 = vmatpush.msra.mxu1 %v3337_v14  ;;  %3560 = vmatpush.msra.mxu2 %v3401_v4  ;;  %v3393_v37 = vld [vmem:[%s9647_s5 + $0x4c0] sm:$0xff]  ;;  %v2814_v61 = vadd.f32 %v2813_v16, %v2791_v0  ;;  %v2771_v32 = vadd.f32 %v2770_v38, %v2748_v17  ;;  %v9709_v4 = vld [vmem:[#allocation16_spill] sm:$0xff] }
 0x436   :  { %3515 = vmatpush.msra.mxu0 %v3269_v55  ;;  %v3325_v13 = vld [vmem:[%s9647_s5 + $0x2a0] sm:$0xff]  ;;  %v9711_v55 = vld [vmem:[#allocation17_spill] sm:$0xff]  ;;  %v3302_v38 = vld [vmem:[%s9647_s5 + $0x1e8] sm:$0xff] }
 0x437   :  { %3538 = vmatpush.msra.mxu1 %v3333_v48  ;;  %3561 = vmatpush.msra.mxu2 %v3397_v54  ;;  %v3389_v27 = vld [vmem:[%s9647_s5 + $0x4a0] sm:$0xff]  ;;  %v2837_v1 = vadd.f32 %v2836_v44, %v2814_v61  ;;  %v2794_v20 = vadd.f32 %v2793_v10, %v2771_v32  ;;  %v3362_v16 = vld [vmem:[%s9647_s5 + $0x3c8] sm:$0xff] }
 0x438   :  { %3516 = vmatpush.msra.mxu0 %v3265_v52  ;;  %v9701_v11 = vld [vmem:[#allocation11_spill] sm:$0xff]  ;;  %v3426_v44 = vld [vmem:[%s9647_s5 + $0x5c8] sm:$0xff] }
 0x439   :  { %v2012_v57 = vadd.f32 %v9701_v11, %v1989_v47  ;;  %v9702_v51 = vld [vmem:[#allocation27_spill] sm:$0xff]  ;;  %3539 = vmatpush.msra.mxu1 %v3329_v2  ;;  %3562 = vmatpush.msra.mxu2 %v3393_v37  ;;  %v2860_v54 = vadd.f32 %v2859_v19, %v2837_v1  ;;  %v2816_v37 = vpop.f32.mrf.mxu1  ;;  %v2839_v36 = vpop.f32.mrf.mxu2  ;;  %v3366_v11 = vld [vmem:[%s9647_s5 + $0x3e8] sm:$0xff] }
 0x43a   :  { %v2380_v12 = vadd.f32 %v9702_v51, %v2357_v35  ;;  %v3257_v26 = vld [vmem:[%s9647_s5 + $0x80] sm:$0xff]  ;;  %3517 = vmatpush.msra.mxu0 %v3261_v8  ;;  %v2817_v35 = vadd.f32 %v2816_v37, %v2794_v20  ;;  %v2862_v17 = vpop.f32.mrf.mxu3  ;;  %v3410_v1 = vld [vmem:[%s9647_s5 + $0x548] sm:$0xff] }
 0x43b   :  { %v3321_v42 = vld [vmem:[%s9647_s5 + $0x280] sm:$0xff]  ;;  %3540 = vmatpush.msra.mxu1 %v3325_v13  ;;  %3563 = vmatpush.msra.mxu2 %v3389_v27  ;;  %v2035_v33 = vadd.f32 %v9707_v60, %v2012_v57  ;;  %v8716_v27 = vmax.f32 %v2860_v54, 0.0  ;;  %v3430_v57 = vld [vmem:[%s9647_s5 + $0x5e8] sm:$0xff] }
 0x43c   :  { %v3385_v49 = vld [vmem:[%s9647_s5 + $0x480] sm:$0xff]  ;;  %3518 = vmatpush.msra.mxu0 %v3257_v26  ;;  %v2403_v5 = vadd.f32 %v9708_v24, %v2380_v12  ;;  %v2840_v51 = vadd.f32 %v2839_v36, %v2817_v35  ;;  %v3298_v12 = vld [vmem:[%s9647_s5 + $0x1c8] sm:$0xff] }
 0x43d   :  { %v3253_v21 = vld [vmem:[%s9647_s5 + $0x60] sm:$0xff]  ;;  %3541 = vmatpush.msra.mxu1 %v3321_v42  ;;  %3564 = vmatpush.msra.mxu2 %v3385_v49  ;;  %v2058_v30 = vadd.f32 %v9709_v4, %v2035_v33  ;;  %v3294_v26 = vld [vmem:[%s9647_s5 + $0x1a8] sm:$0xff] }
 0x43e   :  { %v9705_v58 = vld [vmem:[#allocation15_spill] sm:$0xff]  ;;  %3519 = vmatpush.msra.mxu0 %v3253_v21  ;;  %v2426_v31 = vadd.f32 %v9710_v41, %v2403_v5  ;;  %v3358_v42 = vld [vmem:[%s9647_s5 + $0x3a8] sm:$0xff]  ;;  %v2863_v61 = vadd.f32 %v2862_v17, %v2840_v51  ;;  %v8921_v17 = vpop.f32.mrf.mxu0 }
 0x43f   :  { %v2101_v9 = vadd.f32 %v9705_v58, %v2078_v45  ;;  %v9706_v28 = vld [vmem:[#allocation31_spill] sm:$0xff]  ;;  %v2081_v50 = vadd.f32 %v9713_v59, %v2058_v30  ;;  %v3422_v49 = vld [vmem:[%s9647_s5 + $0x5a8] sm:$0xff] }
 0x440   :  { %v2469_v7 = vadd.f32 %v9706_v28, %v2446_v56  ;;  %v3317_v43 = vld [vmem:[%s9647_s5 + $0x260] sm:$0xff]  ;;  %v2449_v2 = vadd.f32 %v9714_v25, %v2426_v31  ;;  %v3290_v21 = vld [vmem:[%s9647_s5 + $0x188] sm:$0xff] }
 0x441   :  { %v3381_v62 = vld [vmem:[%s9647_s5 + $0x460] sm:$0xff]  ;;  %3542 = vmatpush.msra.mxu1 %v3317_v43  ;;  %v2124_v18 = vadd.f32 %v9711_v55, %v2101_v9  ;;  %v3354_v58 = vld [vmem:[%s9647_s5 + $0x388] sm:$0xff] }
 0x442   :  { %v3249_v63 = vld [vmem:[%s9647_s5 + $0x40] sm:$0xff]  ;;  %3565 = vmatpush.msra.mxu2 %v3381_v62  ;;  %v2492_v39 = vadd.f32 %v9712_v53, %v2469_v7  ;;  %v3418_v9 = vld [vmem:[%s9647_s5 + $0x588] sm:$0xff]  ;;  %v8763_v62 = vmax.f32 %v2863_v61, 0.0  ;;  %v3423_v61 = vld [vmem:[%s9647_s5 + $0x5b0] sm:$0xff] }
 0x443   :  { %v3313_v15 = vld [vmem:[%s9647_s5 + $0x240] sm:$0xff]  ;;  %3520 = vmatpush.msra.mxu0 %v3249_v63  ;;  %v8707_v47 = vmax.f32 %v2124_v18, 0.0  ;;  %v3286_v43 = vld [vmem:[%s9647_s5 + $0x168] sm:$0xff] }
 0x444   :  { %v3377_v14 = vld [vmem:[%s9647_s5 + $0x440] sm:$0xff]  ;;  %3543 = vmatpush.msra.mxu1 %v3313_v15  ;;  %v8709_v34 = vmax.f32 %v2492_v39, 0.0  ;;  %v3350_v60 = vld [vmem:[%s9647_s5 + $0x368] sm:$0xff] }
 0x445   :  { %v3245_v46 = vld [vmem:[%s9647_s5 + $0x20] sm:$0xff]  ;;  %3566 = vmatpush.msra.mxu2 %v3377_v14  ;;  %v3414_v33 = vld [vmem:[%s9647_s5 + $0x568] sm:$0xff] }
 0x446   :  { %v3309_v29 = vld [vmem:[%s9647_s5 + $0x220] sm:$0xff]  ;;  %3521 = vmatpush.msra.mxu0 %v3245_v46  ;;  %v3282_v24 = vld [vmem:[%s9647_s5 + $0x148] sm:$0xff] }
 0x447   :  { %v3373_v48 = vld [vmem:[%s9647_s5 + $0x420] sm:$0xff]  ;;  %3544 = vmatpush.msra.mxu1 %v3309_v29  ;;  %v3346_v5 = vld [vmem:[%s9647_s5 + $0x348] sm:$0xff] }
 0x448   :  { %v3241_v40 = vld [vmem:[%s9647_s5] sm:$0xff]  ;;  %3567 = vmatpush.msra.mxu2 %v3373_v48  ;;  %v3278_v10 = vld [vmem:[%s9647_s5 + $0x128] sm:$0xff] }
 0x449   :  { %v3305_v52 = vld [vmem:[%s9647_s5 + $0x200] sm:$0xff]  ;;  %3522 = vmatpush.msra.mxu0 %v3241_v40  ;;  %v3342_v63 = vld [vmem:[%s9647_s5 + $0x328] sm:$0xff] }
 0x44a   :  { %v3369_v3 = vld [vmem:[%s9647_s5 + $0x400] sm:$0xff]  ;;  %3545 = vmatpush.msra.mxu1 %v3305_v52  ;;  %3523 = vmatmul.f32.vlgmr.msra.gmra.mxu0 %v8707_v47  ;;  %v3406_v32 = vld [vmem:[%s9647_s5 + $0x528] sm:$0xff] }
 0x44b   :  { %v9715_v0 = vld [vmem:[#allocation19_spill] sm:$0xff]  ;;  %3568 = vmatpush.msra.mxu2 %v3369_v3  ;;  %3546 = vmatmul.f32.vlgmr.msra.gmra.mxu1 %v8709_v34  ;;  %v3274_v15 = vld [vmem:[%s9647_s5 + $0x108] sm:$0xff] }
 0x44c   :  { %v2104_v8 = vadd.f32 %v9715_v0, %v2081_v50  ;;  %v9716_v22 = vld [vmem:[#allocation35_spill] sm:$0xff]  ;;  %3569 = vmatmul.f32.vlgmr.msra.gmra.mxu2 %v8716_v27  ;;  %3599 = vmatpush.msrb.mxu0 %v3302_v38  ;;  %v3338_v14 = vld [vmem:[%s9647_s5 + $0x308] sm:$0xff] }
 0x44d   :  { %v2472_v13 = vadd.f32 %v9716_v22, %v2449_v2  ;;  %3622 = vmatpush.msrb.mxu1 %v3366_v11  ;;  %3645 = vmatpush.msrb.mxu2 %v3430_v57  ;;  %v3402_v4 = vld [vmem:[%s9647_s5 + $0x508] sm:$0xff]  ;;  %v3493_v46 = vld [vmem:[%s9647_s5 + $0x7e0] sm:$0xff] }
 0x44e   :  { %v2127_v45 = vadd.f32 %v9717_v6, %v2104_v8  ;;  %3600 = vmatpush.msrb.mxu0 %v3298_v12  ;;  %v3270_v30 = vld [vmem:[%s9647_s5 + $0xe8] sm:$0xff]  ;;  %3576 = vmatpush.msra.mxu3 %v3493_v46  ;;  %v3489_v39 = vld [vmem:[%s9647_s5 + $0x7c0] sm:$0xff]  ;;  %v3299_v6 = vld [vmem:[%s9647_s5 + $0x1d0] sm:$0xff] }
 0x44f   :  { %v2495_v56 = vadd.f32 %v9718_v23, %v2472_v13  ;;  %3623 = vmatpush.msrb.mxu1 %v3362_v16  ;;  %3646 = vmatpush.msrb.mxu2 %v3426_v44  ;;  %v3334_v41 = vld [vmem:[%s9647_s5 + $0x2e8] sm:$0xff]  ;;  %v3485_v54 = vld [vmem:[%s9647_s5 + $0x7a0] sm:$0xff]  ;;  %v3303_v16 = vld [vmem:[%s9647_s5 + $0x1f0] sm:$0xff] }
 0x450   :  { %3601 = vmatpush.msrb.mxu0 %v3294_v26  ;;  %v8756_v28 = vmax.f32 %v2127_v45, 0.0  ;;  %v3398_v31 = vld [vmem:[%s9647_s5 + $0x4e8] sm:$0xff]  ;;  %3577 = vmatpush.msra.mxu3 %v3489_v39  ;;  %v3481_v59 = vld [vmem:[%s9647_s5 + $0x780] sm:$0xff]  ;;  %v3367_v44 = vld [vmem:[%s9647_s5 + $0x3f0] sm:$0xff] }
 0x451   :  { %3624 = vmatpush.msrb.mxu1 %v3358_v42  ;;  %3647 = vmatpush.msrb.mxu2 %v3422_v49  ;;  %v8758_v7 = vmax.f32 %v2495_v56, 0.0  ;;  %v3266_v19 = vld [vmem:[%s9647_s5 + $0xc8] sm:$0xff]  ;;  %v3477_v37 = vld [vmem:[%s9647_s5 + $0x760] sm:$0xff]  ;;  %v3431_v26 = vld [vmem:[%s9647_s5 + $0x5f0] sm:$0xff] }
 0x452   :  { %3602 = vmatpush.msrb.mxu0 %v3290_v21  ;;  %v3330_v55 = vld [vmem:[%s9647_s5 + $0x2c8] sm:$0xff]  ;;  %3578 = vmatpush.msra.mxu3 %v3485_v54  ;;  %v3473_v0 = vld [vmem:[%s9647_s5 + $0x740] sm:$0xff]  ;;  %v3363_v23 = vld [vmem:[%s9647_s5 + $0x3d0] sm:$0xff] }
 0x453   :  { %3625 = vmatpush.msrb.mxu1 %v3354_v58  ;;  %3648 = vmatpush.msrb.mxu2 %v3418_v9  ;;  %v3394_v18 = vld [vmem:[%s9647_s5 + $0x4c8] sm:$0xff]  ;;  %v3469_v11 = vld [vmem:[%s9647_s5 + $0x720] sm:$0xff]  ;;  %v3427_v56 = vld [vmem:[%s9647_s5 + $0x5d0] sm:$0xff] }
 0x454   :  { %3526 = vmatmul.f32.gmra.mxu0 %v8756_v28  ;;  %3549 = vmatmul.f32.gmra.mxu1 %v8758_v7  ;;  %v3262_v53 = vld [vmem:[%s9647_s5 + $0xa8] sm:$0xff]  ;;  %v3465_v12 = vld [vmem:[%s9647_s5 + $0x700] sm:$0xff]  ;;  %v3295_v42 = vld [vmem:[%s9647_s5 + $0x1b0] sm:$0xff] }
 0x455   :  { %3572 = vmatmul.f32.gmra.mxu2 %v8763_v62  ;;  %3603 = vmatpush.msrb.mxu0 %v3286_v43  ;;  %v3326_v20 = vld [vmem:[%s9647_s5 + $0x2a8] sm:$0xff]  ;;  %v3461_v45 = vld [vmem:[%s9647_s5 + $0x6e0] sm:$0xff]  ;;  %v3359_v49 = vld [vmem:[%s9647_s5 + $0x3b0] sm:$0xff] }
 0x456   :  { %3626 = vmatpush.msrb.mxu1 %v3350_v60  ;;  %3649 = vmatpush.msrb.mxu2 %v3414_v33  ;;  %v3390_v29 = vld [vmem:[%s9647_s5 + $0x4a8] sm:$0xff]  ;;  %v3291_v21 = vld [vmem:[%s9647_s5 + $0x190] sm:$0xff]  ;;  %v3457_v58 = vld [vmem:[%s9647_s5 + $0x6c0] sm:$0xff]  ;;  %v8944_v60 = vpop.f32.mrf.mxu1 }
 0x457   :  { %3604 = vmatpush.msrb.mxu0 %v3282_v24  ;;  %v3258_v48 = vld [vmem:[%s9647_s5 + $0x88] sm:$0xff]  ;;  %3579 = vmatpush.msra.mxu3 %v3481_v59  ;;  %v3355_v9 = vld [vmem:[%s9647_s5 + $0x390] sm:$0xff]  ;;  %v3453_v33 = vld [vmem:[%s9647_s5 + $0x6a0] sm:$0xff] }
 0x458   :  { %3627 = vmatpush.msrb.mxu1 %v3346_v5  ;;  %3650 = vmatpush.msrb.mxu2 %v3410_v1  ;;  %v3322_v40 = vld [vmem:[%s9647_s5 + $0x288] sm:$0xff]  ;;  %v3419_v43 = vld [vmem:[%s9647_s5 + $0x590] sm:$0xff]  ;;  %v9026_v59 = vld [vmem:[%s9646_s4] sm:$0xf] }
 0x459   :  { %3605 = vmatpush.msrb.mxu0 %v3278_v10  ;;  %v3386_v52 = vld [vmem:[%s9647_s5 + $0x488] sm:$0xff]  ;;  %3580 = vmatpush.msra.mxu3 %v3477_v37  ;;  %v3287_v24 = vld [vmem:[%s9647_s5 + $0x170] sm:$0xff]  ;;  %v8958_v10 = vpop.f32.mrf.mxu2 }
 0x45a   :  { %3628 = vmatpush.msrb.mxu1 %v3342_v63  ;;  %3651 = vmatpush.msrb.mxu2 %v3406_v32  ;;  %v3254_v3 = vld [vmem:[%s9647_s5 + $0x68] sm:$0xff]  ;;  %v3351_v5 = vld [vmem:[%s9647_s5 + $0x370] sm:$0xff]  ;;  %v3449_v32 = vld [vmem:[%s9647_s5 + $0x680] sm:$0xff] }
 0x45b   :  { %3606 = vmatpush.msrb.mxu0 %v3274_v15  ;;  %v3318_v50 = vld [vmem:[%s9647_s5 + $0x268] sm:$0xff]  ;;  %3581 = vmatpush.msra.mxu3 %v3473_v0  ;;  %v3415_v1 = vld [vmem:[%s9647_s5 + $0x570] sm:$0xff]  ;;  %v8968_v15 = vpop.f32.mrf.mxu3 }
 0x45c   :  { %3629 = vmatpush.msrb.mxu1 %v3338_v14  ;;  %3652 = vmatpush.msrb.mxu2 %v3402_v4  ;;  %v3382_v25 = vld [vmem:[%s9647_s5 + $0x468] sm:$0xff]  ;;  %v3283_v63 = vld [vmem:[%s9647_s5 + $0x150] sm:$0xff] }
 0x45d   :  { %3607 = vmatpush.msrb.mxu0 %v3270_v30  ;;  %v3250_v2 = vld [vmem:[%s9647_s5 + $0x48] sm:$0xff]  ;;  %3582 = vmatpush.msra.mxu3 %v3469_v11  ;;  %v3347_v14 = vld [vmem:[%s9647_s5 + $0x350] sm:$0xff] }
 0x45e   :  { %3630 = vmatpush.msrb.mxu1 %v3334_v41  ;;  %3653 = vmatpush.msrb.mxu2 %v3398_v31  ;;  %v3314_v36 = vld [vmem:[%s9647_s5 + $0x248] sm:$0xff]  ;;  %v3411_v4 = vld [vmem:[%s9647_s5 + $0x550] sm:$0xff]  ;;  %v3445_v41 = vld [vmem:[%s9647_s5 + $0x660] sm:$0xff]  ;;  %v8983_v31 = vpop.f32.mrf.mxu0 }
 0x45f   :  { %3608 = vmatpush.msrb.mxu0 %v3266_v19  ;;  %v3378_v35 = vld [vmem:[%s9647_s5 + $0x448] sm:$0xff]  ;;  %3583 = vmatpush.msra.mxu3 %v3465_v12  ;;  %v3279_v30 = vld [vmem:[%s9647_s5 + $0x130] sm:$0xff] }
 0x460   :  { %3631 = vmatpush.msrb.mxu1 %v3330_v55  ;;  %3654 = vmatpush.msrb.mxu2 %v3394_v18  ;;  %v3246_v38 = vld [vmem:[%s9647_s5 + $0x28] sm:$0xff]  ;;  %v3343_v19 = vld [vmem:[%s9647_s5 + $0x330] sm:$0xff]  ;;  %v3441_v18 = vld [vmem:[%s9647_s5 + $0x640] sm:$0xff] }
 0x461   :  { %3609 = vmatpush.msrb.mxu0 %v3262_v53  ;;  %v3310_v8 = vld [vmem:[%s9647_s5 + $0x228] sm:$0xff]  ;;  %3584 = vmatpush.msra.mxu3 %v3461_v45  ;;  %v3407_v46 = vld [vmem:[%s9647_s5 + $0x530] sm:$0xff]  ;;  %v9035_v37 = vpop.f32.mrf.mxu2 }
 0x462   :  { %3632 = vmatpush.msrb.mxu1 %v3326_v20  ;;  %3655 = vmatpush.msrb.mxu2 %v3390_v29  ;;  %v3374_v22 = vld [vmem:[%s9647_s5 + $0x428] sm:$0xff]  ;;  %v3275_v55 = vld [vmem:[%s9647_s5 + $0x110] sm:$0xff]  ;;  %v3437_v29 = vld [vmem:[%s9647_s5 + $0x620] sm:$0xff] }
 0x463   :  { %3610 = vmatpush.msrb.mxu0 %v3258_v48  ;;  %v3242_v13 = vld [vmem:[%s9647_s5 + $0x8] sm:$0xff]  ;;  %3585 = vmatpush.msra.mxu3 %v3457_v58  ;;  %v3339_v53 = vld [vmem:[%s9647_s5 + $0x310] sm:$0xff]  ;;  %v9009_v48 = vpop.f32.mrf.mxu1 }
 0x464   :  { %3633 = vmatpush.msrb.mxu1 %v3322_v40  ;;  %3656 = vmatpush.msrb.mxu2 %v3386_v52  ;;  %v3306_v57 = vld [vmem:[%s9647_s5 + $0x208] sm:$0xff]  ;;  %v3403_v39 = vld [vmem:[%s9647_s5 + $0x510] sm:$0xff] }
 0x465   :  { %3611 = vmatpush.msrb.mxu0 %v3254_v3  ;;  %v3370_v51 = vld [vmem:[%s9647_s5 + $0x408] sm:$0xff]  ;;  %3586 = vmatpush.msra.mxu3 %v3453_v33  ;;  %v3271_v20 = vld [vmem:[%s9647_s5 + $0xf0] sm:$0xff]  ;;  %v3433_v3 = vld [vmem:[%s9647_s5 + $0x600] sm:$0xff] }
 0x466   :  { %3634 = vmatpush.msrb.mxu1 %v3318_v50  ;;  %3657 = vmatpush.msrb.mxu2 %v3382_v25  ;;  %v3335_v54 = vld [vmem:[%s9647_s5 + $0x2f0] sm:$0xff]  ;;  %v1756_v50 = vperm.slane %v9026_v59, 3  ;;  %v9045_v0 = vpop.f32.mrf.mxu0  ;;  %v3490_v11 = vld [vmem:[%s9647_s5 + $0x7c8] sm:$0xff] }
 0x467   :  { %3612 = vmatpush.msrb.mxu0 %v3250_v2  ;;  %3587 = vmatpush.msra.mxu3 %v3449_v32  ;;  %v3399_v40 = vld [vmem:[%s9647_s5 + $0x4f0] sm:$0xff]  ;;  %v3478_v58 = vld [vmem:[%s9647_s5 + $0x768] sm:$0xff] }
 0x468   :  { %3635 = vmatpush.msrb.mxu1 %v3314_v36  ;;  %3658 = vmatpush.msrb.mxu2 %v3378_v35  ;;  %v3267_v52 = vld [vmem:[%s9647_s5 + $0xd0] sm:$0xff]  ;;  %v3494_v35 = vld [vmem:[%s9647_s5 + $0x7e8] sm:$0xff]  ;;  %v2886_v32 = vadd.f32 %v8983_v31, %v1756_v50 }
 0x469   :  { %3613 = vmatpush.msrb.mxu0 %v3246_v38  ;;  %3588 = vmatpush.msra.mxu3 %v3445_v41  ;;  %v3331_v25 = vld [vmem:[%s9647_s5 + $0x2d0] sm:$0xff]  ;;  %v9043_v38 = vpop.f32.mrf.mxu3  ;;  %v3432_v41 = vld [vmem:[%s9647_s5 + $0x5f8] sm:$0xff] }
 0x46a   :  { %3636 = vmatpush.msrb.mxu1 %v3310_v8  ;;  %3659 = vmatpush.msrb.mxu2 %v3374_v22  ;;  %v3395_v2 = vld [vmem:[%s9647_s5 + $0x4d0] sm:$0xff] }
 0x46b   :  { %3614 = vmatpush.msrb.mxu0 %v3242_v13  ;;  %3589 = vmatpush.msra.mxu3 %v3441_v18  ;;  %v3263_v36 = vld [vmem:[%s9647_s5 + $0xb0] sm:$0xff]  ;;  %v3364_v18 = vld [vmem:[%s9647_s5 + $0x3d8] sm:$0xff] }
 0x46c   :  { %3637 = vmatpush.msrb.mxu1 %v3306_v57  ;;  %3660 = vmatpush.msrb.mxu2 %v3370_v51  ;;  %v3327_v8 = vld [vmem:[%s9647_s5 + $0x2b0] sm:$0xff]  ;;  %v2883_v57 = vadd.f32 %v8921_v17, %v1756_v50  ;;  %v3292_v50 = vld [vmem:[%s9647_s5 + $0x198] sm:$0xff] }
 0x46d   :  { %3615 = vmatmul.f32.vlgmr.msrb.gmra.mxu0 %v8707_v47  ;;  %3638 = vmatmul.f32.vlgmr.msrb.gmra.mxu1 %v8709_v34  ;;  %v3391_v22 = vld [vmem:[%s9647_s5 + $0x4b0] sm:$0xff] }
 0x46e   :  { %3661 = vmatmul.f32.vlgmr.msrb.gmra.mxu2 %v8716_v27  ;;  %3691 = vmatpush.msra.mxu0 %v3303_v16  ;;  %v3259_v13 = vld [vmem:[%s9647_s5 + $0x90] sm:$0xff]  ;;  %v2906_v17 = vadd.f32 %v8944_v60, %v2883_v57  ;;  %v3458_v57 = vld [vmem:[%s9647_s5 + $0x6c8] sm:$0xff] }
 0x46f   :  { %3714 = vmatpush.msra.mxu1 %v3367_v44  ;;  %3737 = vmatpush.msra.mxu2 %v3431_v26  ;;  %v3323_v51 = vld [vmem:[%s9647_s5 + $0x290] sm:$0xff]  ;;  %v3486_v44 = vld [vmem:[%s9647_s5 + $0x7a8] sm:$0xff]  ;;  %v9074_v26 = vpop.f32.mrf.mxu1 }
 0x470   :  { %3692 = vmatpush.msra.mxu0 %v3299_v6  ;;  %3590 = vmatpush.msra.mxu3 %v3437_v29  ;;  %v3387_v12 = vld [vmem:[%s9647_s5 + $0x490] sm:$0xff] }
 0x471   :  { %3715 = vmatpush.msra.mxu1 %v3363_v23  ;;  %3738 = vmatpush.msra.mxu2 %v3427_v56  ;;  %v3255_v16 = vld [vmem:[%s9647_s5 + $0x70] sm:$0xff]  ;;  %v3482_v56 = vld [vmem:[%s9647_s5 + $0x788] sm:$0xff] }
 0x472   :  { %3693 = vmatpush.msra.mxu0 %v3295_v42  ;;  %3591 = vmatpush.msra.mxu3 %v3433_v3  ;;  %v3319_v6 = vld [vmem:[%s9647_s5 + $0x270] sm:$0xff] }
 0x473   :  { %3716 = vmatpush.msra.mxu1 %v3359_v49  ;;  %3739 = vmatpush.msra.mxu2 %v3423_v61  ;;  %v3383_v45 = vld [vmem:[%s9647_s5 + $0x470] sm:$0xff]  ;;  %v9095_v61 = vpop.f32.mrf.mxu2 }
 0x474   :  { %3694 = vmatpush.msra.mxu0 %v3291_v21  ;;  %3668 = vmatpush.msrb.mxu3 %v3494_v35  ;;  %v3251_v23 = vld [vmem:[%s9647_s5 + $0x50] sm:$0xff] }
 0x475   :  { %3717 = vmatpush.msra.mxu1 %v3355_v9  ;;  %3740 = vmatpush.msra.mxu2 %v3419_v43  ;;  %v3315_v42 = vld [vmem:[%s9647_s5 + $0x250] sm:$0xff]  ;;  %v2929_v9 = vadd.f32 %v8958_v10, %v2906_v17  ;;  %v9104_v43 = vpop.f32.mrf.mxu3  ;;  %v3408_v17 = vld [vmem:[%s9647_s5 + $0x538] sm:$0xff] }
 0x476   :  { %3618 = vmatmul.f32.gmra.mxu0 %v8756_v28  ;;  %3641 = vmatmul.f32.gmra.mxu1 %v8758_v7  ;;  %v3379_v49 = vld [vmem:[%s9647_s5 + $0x450] sm:$0xff] }
 0x477   :  { %3664 = vmatmul.f32.gmra.mxu2 %v8763_v62  ;;  %3695 = vmatpush.msra.mxu0 %v3287_v24  ;;  %v3247_v21 = vld [vmem:[%s9647_s5 + $0x30] sm:$0xff] }
 0x478   :  { %3718 = vmatpush.msra.mxu1 %v3351_v5  ;;  %3741 = vmatpush.msra.mxu2 %v3415_v1  ;;  %v3311_v60 = vld [vmem:[%s9647_s5 + $0x230] sm:$0xff]  ;;  %v3474_v5 = vld [vmem:[%s9647_s5 + $0x748] sm:$0xff]  ;;  %v2977_v1 = vpop.f32.mrf.mxu0 }
 0x479   :  { %3696 = vmatpush.msra.mxu0 %v3283_v63  ;;  %3669 = vmatpush.msrb.mxu3 %v3490_v11  ;;  %v3375_v33 = vld [vmem:[%s9647_s5 + $0x430] sm:$0xff] }
 0x47a   :  { %3719 = vmatpush.msra.mxu1 %v3347_v14  ;;  %3742 = vmatpush.msra.mxu2 %v3411_v4  ;;  %v3243_v24 = vld [vmem:[%s9647_s5 + $0x10] sm:$0xff]  ;;  %v2952_v14 = vadd.f32 %v8968_v15, %v2929_v9  ;;  %v3304_v4 = vld [vmem:[%s9647_s5 + $0x1f8] sm:$0xff] }
 0x47b   :  { %3697 = vmatpush.msra.mxu0 %v3279_v30  ;;  %3670 = vmatpush.msrb.mxu3 %v3486_v44  ;;  %v3307_v10 = vld [vmem:[%s9647_s5 + $0x210] sm:$0xff]  ;;  %v3368_v30 = vld [vmem:[%s9647_s5 + $0x3f8] sm:$0xff] }
 0x47c   :  { %3720 = vmatpush.msra.mxu1 %v3343_v19  ;;  %3743 = vmatpush.msra.mxu2 %v3407_v46  ;;  %v3371_v63 = vld [vmem:[%s9647_s5 + $0x410] sm:$0xff]  ;;  %v2975_v31 = vadd.f32 %v9045_v0, %v2952_v14  ;;  %v9138_v19 = vpop.f32.mrf.mxu1  ;;  %v3300_v15 = vld [vmem:[%s9647_s5 + $0x1d8] sm:$0xff]  ;;  %v3470_v46 = vld [vmem:[%s9647_s5 + $0x728] sm:$0xff] }
 0x47d   :  { %3698 = vmatpush.msra.mxu0 %v3275_v55  ;;  %3671 = vmatpush.msrb.mxu3 %v3482_v56  ;;  %v2909_v55 = vadd.f32 %v9009_v48, %v2886_v32  ;;  %v3023_v48 = vpop.f32.mrf.mxu2  ;;  %v9170_v3 = vpop.f32.mrf.mxu3  ;;  %v3288_v0 = vld [vmem:[%s9647_s5 + $0x178] sm:$0xff] }
 0x47e   :  { %3721 = vmatpush.msra.mxu1 %v3339_v53  ;;  %3744 = vmatpush.msra.mxu2 %v3403_v39  ;;  %v3428_v53 = vld [vmem:[%s9647_s5 + $0x5d8] sm:$0xff] }
 0x47f   :  { %3699 = vmatpush.msra.mxu0 %v3271_v20  ;;  %3672 = vmatpush.msrb.mxu3 %v3478_v58  ;;  %v3296_v39 = vld [vmem:[%s9647_s5 + $0x1b8] sm:$0xff]  ;;  %v3466_v20 = vld [vmem:[%s9647_s5 + $0x708] sm:$0xff]  ;;  %v2932_v29 = vadd.f32 %v9035_v37, %v2909_v55 }
 0x480   :  { %3722 = vmatpush.msra.mxu1 %v3335_v54  ;;  %3745 = vmatpush.msra.mxu2 %v3399_v40  ;;  %v3360_v54 = vld [vmem:[%s9647_s5 + $0x3b8] sm:$0xff]  ;;  %v3066_v59 = vpop.f32.mrf.mxu0 }
 0x481   :  { %3700 = vmatpush.msra.mxu0 %v3267_v52  ;;  %3673 = vmatpush.msrb.mxu3 %v3474_v5  ;;  %v3424_v40 = vld [vmem:[%s9647_s5 + $0x5b8] sm:$0xff]  ;;  %v2998_v52 = vadd.f32 %v9074_v26, %v2975_v31  ;;  %v2955_v35 = vadd.f32 %v9043_v38, %v2932_v29 }
 0x482   :  { %3723 = vmatpush.msra.mxu1 %v3331_v25  ;;  %3746 = vmatpush.msra.mxu2 %v3395_v2  ;;  %v3462_v25 = vld [vmem:[%s9647_s5 + $0x6e8] sm:$0xff]  ;;  %v3356_v2 = vld [vmem:[%s9647_s5 + $0x398] sm:$0xff] }
 0x483   :  { %3701 = vmatpush.msra.mxu0 %v3263_v36  ;;  %3674 = vmatpush.msrb.mxu3 %v3470_v46  ;;  %v3420_v37 = vld [vmem:[%s9647_s5 + $0x598] sm:$0xff]  ;;  %v3021_v36 = vadd.f32 %v9095_v61, %v2998_v52  ;;  %v2978_v11 = vadd.f32 %v2977_v1, %v2955_v35  ;;  %v3450_v61 = vld [vmem:[%s9647_s5 + $0x688] sm:$0xff] }
 0x484   :  { %3724 = vmatpush.msra.mxu1 %v3327_v8  ;;  %3747 = vmatpush.msra.mxu2 %v3391_v22  ;;  %v3089_v8 = vpop.f32.mrf.mxu1  ;;  %v3352_v22 = vld [vmem:[%s9647_s5 + $0x378] sm:$0xff] }
 0x485   :  { %3702 = vmatpush.msra.mxu0 %v3259_v13  ;;  %3675 = vmatpush.msrb.mxu3 %v3466_v20  ;;  %v3416_v13 = vld [vmem:[%s9647_s5 + $0x578] sm:$0xff]  ;;  %v3112_v44 = vpop.f32.mrf.mxu2 }
 0x486   :  { %3725 = vmatpush.msra.mxu1 %v3323_v51  ;;  %3748 = vmatpush.msra.mxu2 %v3387_v12  ;;  %v3284_v38 = vld [vmem:[%s9647_s5 + $0x158] sm:$0xff]  ;;  %v3044_v51 = vadd.f32 %v9104_v43, %v3021_v36 }
 0x487   :  { %3703 = vmatpush.msra.mxu0 %v3255_v16  ;;  %3676 = vmatpush.msrb.mxu3 %v3462_v25  ;;  %v3348_v12 = vld [vmem:[%s9647_s5 + $0x358] sm:$0xff] }
 0x488   :  { %3726 = vmatpush.msra.mxu1 %v3319_v6  ;;  %3749 = vmatpush.msra.mxu2 %v3383_v45  ;;  %v3412_v16 = vld [vmem:[%s9647_s5 + $0x558] sm:$0xff]  ;;  %v3454_v6 = vld [vmem:[%s9647_s5 + $0x6a8] sm:$0xff]  ;;  %v3067_v45 = vadd.f32 %v3066_v59, %v3044_v51 }
 0x489   :  { %3704 = vmatpush.msra.mxu0 %v3251_v23  ;;  %v3280_v26 = vld [vmem:[%s9647_s5 + $0x138] sm:$0xff]  ;;  %v3135_v23 = vpop.f32.mrf.mxu3  ;;  %3677 = vmatpush.msrb.mxu3 %v3458_v57 }
 0x48a   :  { %3727 = vmatpush.msra.mxu1 %v3315_v42  ;;  %3750 = vmatpush.msra.mxu2 %v3379_v49  ;;  %v3344_v56 = vld [vmem:[%s9647_s5 + $0x338] sm:$0xff]  ;;  %v3001_v42 = vadd.f32 %v9138_v19, %v2978_v11  ;;  %v3438_v19 = vld [vmem:[%s9647_s5 + $0x628] sm:$0xff] }
 0x48b   :  { %3705 = vmatpush.msra.mxu0 %v3247_v21  ;;  %v3276_v49 = vld [vmem:[%s9647_s5 + $0x118] sm:$0xff]  ;;  %v3069_v21 = vpop.f32.mrf.mxu0  ;;  %3678 = vmatpush.msrb.mxu3 %v3454_v6 }
 0x48c   :  { %3728 = vmatpush.msra.mxu1 %v3311_v60  ;;  %3751 = vmatpush.msra.mxu2 %v3375_v33  ;;  %v3340_v58 = vld [vmem:[%s9647_s5 + $0x318] sm:$0xff]  ;;  %v3024_v43 = vadd.f32 %v3023_v48, %v3001_v42  ;;  %v3446_v33 = vld [vmem:[%s9647_s5 + $0x668] sm:$0xff]  ;;  %v3092_v14 = vpop.f32.mrf.mxu1 }
 0x48d   :  { %3706 = vmatpush.msra.mxu0 %v3243_v24  ;;  %v3404_v9 = vld [vmem:[%s9647_s5 + $0x518] sm:$0xff]  ;;  %v3090_v24 = vadd.f32 %v3089_v8, %v3067_v45  ;;  %3679 = vmatpush.msrb.mxu3 %v3450_v61 }
 0x48e   :  { %3729 = vmatpush.msra.mxu1 %v3307_v10  ;;  %3752 = vmatpush.msra.mxu2 %v3371_v63  ;;  %v3272_v60 = vld [vmem:[%s9647_s5 + $0xf8] sm:$0xff]  ;;  %v3442_v63 = vld [vmem:[%s9647_s5 + $0x648] sm:$0xff] }
 0x48f   :  { %3707 = vmatmul.f32.vlgmr.msra.gmra.mxu0 %v8707_v47  ;;  %3730 = vmatmul.f32.vlgmr.msra.gmra.mxu1 %v8709_v34  ;;  %v3336_v5 = vld [vmem:[%s9647_s5 + $0x2f8] sm:$0xff]  ;;  %v3113_v32 = vadd.f32 %v3112_v44, %v3090_v24  ;;  %v3459_v24 = vld [vmem:[%s9647_s5 + $0x6d0] sm:$0xff] }
 0x490   :  { %3753 = vmatmul.f32.vlgmr.msra.gmra.mxu2 %v8716_v27  ;;  %3783 = vmatpush.msrb.mxu0 %v3304_v4  ;;  %v3400_v1 = vld [vmem:[%s9647_s5 + $0x4f8] sm:$0xff] }
 0x491   :  { %3806 = vmatpush.msrb.mxu1 %v3368_v30  ;;  %3829 = vmatpush.msrb.mxu2 %v3432_v41  ;;  %v3268_v10 = vld [vmem:[%s9647_s5 + $0xd8] sm:$0xff]  ;;  %v3047_v41 = vadd.f32 %v9170_v3, %v3024_v43  ;;  %v3136_v20 = vadd.f32 %v3135_v23, %v3113_v32  ;;  %v3138_v29 = vpop.f32.mrf.mxu3  ;;  %v3439_v32 = vld [vmem:[%s9647_s5 + $0x630] sm:$0xff] }
 0x492   :  { %3784 = vmatpush.msrb.mxu0 %v3300_v15  ;;  %v3332_v4 = vld [vmem:[%s9647_s5 + $0x2d8] sm:$0xff]  ;;  %3680 = vmatpush.msrb.mxu3 %v3446_v33  ;;  %v3475_v33 = vld [vmem:[%s9647_s5 + $0x750] sm:$0xff] }
 0x493   :  { %3807 = vmatpush.msrb.mxu1 %v3364_v18  ;;  %3830 = vmatpush.msrb.mxu2 %v3428_v53  ;;  %v3396_v30 = vld [vmem:[%s9647_s5 + $0x4d8] sm:$0xff]  ;;  %v3070_v55 = vadd.f32 %v3069_v21, %v3047_v41  ;;  %v3115_v18 = vpop.f32.mrf.mxu2 }
 0x494   :  { %3785 = vmatpush.msrb.mxu0 %v3296_v39  ;;  %v3264_v31 = vld [vmem:[%s9647_s5 + $0xb8] sm:$0xff]  ;;  %3681 = vmatpush.msrb.mxu3 %v3442_v63  ;;  %v3434_v39 = vld [vmem:[%s9647_s5 + $0x608] sm:$0xff]  ;;  %v3443_v63 = vld [vmem:[%s9647_s5 + $0x650] sm:$0xff] }
 0x495   :  { %3808 = vmatpush.msrb.mxu1 %v3360_v54  ;;  %3831 = vmatpush.msrb.mxu2 %v3424_v40  ;;  %v3328_v15 = vld [vmem:[%s9647_s5 + $0x2b8] sm:$0xff]  ;;  %v3093_v25 = vadd.f32 %v3092_v14, %v3070_v55  ;;  %v3435_v14 = vld [vmem:[%s9647_s5 + $0x610] sm:$0xff] }
 0x496   :  { %3786 = vmatpush.msrb.mxu0 %v3292_v50  ;;  %v3392_v46 = vld [vmem:[%s9647_s5 + $0x4b8] sm:$0xff]  ;;  %3682 = vmatpush.msrb.mxu3 %v3438_v19 }
 0x497   :  { %3809 = vmatpush.msrb.mxu1 %v3356_v2  ;;  %3832 = vmatpush.msrb.mxu2 %v3420_v37  ;;  %v3260_v53 = vld [vmem:[%s9647_s5 + $0x98] sm:$0xff] }
 0x498   :  { %3710 = vmatmul.f32.gmra.mxu0 %v8756_v28  ;;  %3733 = vmatmul.f32.gmra.mxu1 %v8758_v7  ;;  %v3324_v48 = vld [vmem:[%s9647_s5 + $0x298] sm:$0xff] }
 0x499   :  { %3756 = vmatmul.f32.gmra.mxu2 %v8763_v62  ;;  %3787 = vmatpush.msrb.mxu0 %v3288_v0  ;;  %v3388_v54 = vld [vmem:[%s9647_s5 + $0x498] sm:$0xff]  ;;  %v3116_v0 = vadd.f32 %v3115_v18, %v3093_v25 }
 0x49a   :  { %3810 = vmatpush.msrb.mxu1 %v3352_v22  ;;  %3833 = vmatpush.msrb.mxu2 %v3416_v13  ;;  %v3256_v52 = vld [vmem:[%s9647_s5 + $0x78] sm:$0xff] }
 0x49b   :  { %3788 = vmatpush.msrb.mxu0 %v3284_v38  ;;  %v3320_v3 = vld [vmem:[%s9647_s5 + $0x278] sm:$0xff]  ;;  %3683 = vmatpush.msrb.mxu3 %v3434_v39 }
 0x49c   :  { %3811 = vmatpush.msrb.mxu1 %v3348_v12  ;;  %3834 = vmatpush.msrb.mxu2 %v3412_v16  ;;  %v3384_v59 = vld [vmem:[%s9647_s5 + $0x478] sm:$0xff] }
 0x49d   :  { %3789 = vmatpush.msrb.mxu0 %v3280_v26  ;;  %v3252_v2 = vld [vmem:[%s9647_s5 + $0x58] sm:$0xff]  ;;  %v3139_v26 = vadd.f32 %v3138_v29, %v3116_v0 }
 0x49e   :  { %3812 = vmatpush.msrb.mxu1 %v3344_v56  ;;  %3835 = vmatpush.msrb.mxu2 %v3408_v17  ;;  %v3316_v37 = vld [vmem:[%s9647_s5 + $0x258] sm:$0xff]  ;;  %v3495_v17 = vld [vmem:[%s9647_s5 + $0x7f0] sm:$0xff] }
 0x49f   :  { %3790 = vmatpush.msrb.mxu0 %v3276_v49  ;;  %v3158_v40 = vpop.f32.mrf.mxu0  ;;  %v3380_v36 = vld [vmem:[%s9647_s5 + $0x458] sm:$0xff]  ;;  %v3491_v49 = vld [vmem:[%s9647_s5 + $0x7d0] sm:$0xff] }
 0x4a0   :  { %3813 = vmatpush.msrb.mxu1 %v3340_v58  ;;  %3836 = vmatpush.msrb.mxu2 %v3404_v9  ;;  %v3159_v50 = vadd.f32 %v3158_v40, %v3136_v20  ;;  %v3181_v35 = vpop.f32.mrf.mxu1  ;;  %v3248_v8 = vld [vmem:[%s9647_s5 + $0x38] sm:$0xff] }
 0x4a1   :  { %3791 = vmatpush.msrb.mxu0 %v3272_v60  ;;  %v3312_v22 = vld [vmem:[%s9647_s5 + $0x238] sm:$0xff]  ;;  %v3479_v60 = vld [vmem:[%s9647_s5 + $0x770] sm:$0xff] }
 0x4a2   :  { %3814 = vmatpush.msrb.mxu1 %v3336_v5  ;;  %3837 = vmatpush.msrb.mxu2 %v3400_v1  ;;  %v3376_v13 = vld [vmem:[%s9647_s5 + $0x438] sm:$0xff]  ;;  %v3182_v11 = vadd.f32 %v3181_v35, %v3159_v50  ;;  %v3455_v5 = vld [vmem:[%s9647_s5 + $0x6b0] sm:$0xff]  ;;  %v3895_v50 = vld [vmem:[%s9649_s7 + $0x60] sm:$0xff] }
 0x4a3   :  { %3792 = vmatpush.msrb.mxu0 %v3268_v10  ;;  %v3244_v38 = vld [vmem:[%s9647_s5 + $0x18] sm:$0xff]  ;;  %v3451_v1 = vld [vmem:[%s9647_s5 + $0x690] sm:$0xff] }
 0x4a4   :  { %3815 = vmatpush.msrb.mxu1 %v3332_v4  ;;  %3838 = vmatpush.msrb.mxu2 %v3396_v30  ;;  %v3308_v51 = vld [vmem:[%s9647_s5 + $0x218] sm:$0xff]  ;;  %v3447_v10 = vld [vmem:[%s9647_s5 + $0x670] sm:$0xff] }
 0x4a5   :  { %3793 = vmatpush.msrb.mxu0 %v3264_v31  ;;  %v3372_v12 = vld [vmem:[%s9647_s5 + $0x418] sm:$0xff] }
 0x4a6   :  { %3816 = vmatpush.msrb.mxu1 %v3328_v15  ;;  %3839 = vmatpush.msrb.mxu2 %v3392_v46  ;;  %v3496_v4 = vld [vmem:[%s9647_s5 + $0x7f8] sm:$0xff] }
 0x4a7   :  { %3794 = vmatpush.msrb.mxu0 %v3260_v53  ;;  %v3204_v57 = vpop.f32.mrf.mxu2  ;;  %v3492_v30 = vld [vmem:[%s9647_s5 + $0x7d8] sm:$0xff] }
 0x4a8   :  { %3817 = vmatpush.msrb.mxu1 %v3324_v48  ;;  %3840 = vmatpush.msrb.mxu2 %v3388_v54  ;;  %v3205_v16 = vadd.f32 %v3204_v57, %v3182_v11  ;;  %v3227_v44 = vpop.f32.mrf.mxu3  ;;  %v3184_v42 = vpop.f32.mrf.mxu1  ;;  %v3488_v41 = vld [vmem:[%s9647_s5 + $0x7b8] sm:$0xff]  ;;  %v3912_v11 = vld [vmem:[%s9649_s7 + $0xe8] sm:$0xff]  ;;  %v3911_v57 = vld [vmem:[%s9649_s7 + $0xe0] sm:$0xff] }
 0x4a9   :  { %3795 = vmatpush.msrb.mxu0 %v3256_v52  ;;  %v3484_v31 = vld [vmem:[%s9647_s5 + $0x798] sm:$0xff] }
 0x4aa   :  { %3818 = vmatpush.msrb.mxu1 %v3320_v3  ;;  %3841 = vmatpush.msrb.mxu2 %v3384_v59  ;;  %v3161_v6 = vpop.f32.mrf.mxu0  ;;  %v3228_v45 = vadd.f32 %v3227_v44, %v3205_v16  ;;  %v3480_v19 = vld [vmem:[%s9647_s5 + $0x778] sm:$0xff]  ;;  %v3897_v3 = vld [vmem:[%s9649_s7 + $0x70] sm:$0xff]  ;;  %v3896_v59 = vld [vmem:[%s9649_s7 + $0x68] sm:$0xff] }
 0x4ab   :  { %3796 = vmatpush.msrb.mxu0 %v3252_v2  ;;  %v3162_v23 = vadd.f32 %v3161_v6, %v3139_v26  ;;  %v3476_v15 = vld [vmem:[%s9647_s5 + $0x758] sm:$0xff]  ;;  %v3893_v2 = vld [vmem:[%s9649_s7 + $0x50] sm:$0xff]  ;;  %v3884_v6 = vld [vmem:[%s9649_s7 + $0x8] sm:$0xff] }
 0x4ac   :  { %3819 = vmatpush.msrb.mxu1 %v3316_v37  ;;  %3842 = vmatpush.msrb.mxu2 %v3380_v36  ;;  %v9323_v56 = vmax.f32 %v3228_v45, 0.0  ;;  %v3472_v46 = vld [vmem:[%s9647_s5 + $0x738] sm:$0xff]  ;;  %v3892_v37 = vld [vmem:[%s9649_s7 + $0x48] sm:$0xff]  ;;  %v3891_v36 = vld [vmem:[%s9649_s7 + $0x40] sm:$0xff] }
 0x4ad   :  { %3797 = vmatpush.msrb.mxu0 %v3248_v8  ;;  %v3185_v61 = vadd.f32 %v3184_v42, %v3162_v23  ;;  %v3468_v55 = vld [vmem:[%s9647_s5 + $0x718] sm:$0xff]  ;;  %v3889_v8 = vld [vmem:[%s9649_s7 + $0x30] sm:$0xff]  ;;  %v3908_v45 = vld [vmem:[%s9649_s7 + $0xc8] sm:$0xff] }
 0x4ae   :  { %3820 = vmatpush.msrb.mxu1 %v3312_v22  ;;  %3843 = vmatpush.msrb.mxu2 %v3376_v13  ;;  %v3464_v18 = vld [vmem:[%s9647_s5 + $0x6f8] sm:$0xff]  ;;  %v3913_v22 = vld [vmem:[%s9649_s7 + $0xf0] sm:$0xff]  ;;  %v3888_v13 = vld [vmem:[%s9649_s7 + $0x28] sm:$0xff] }
 0x4af   :  { %3798 = vmatpush.msrb.mxu0 %v3244_v38  ;;  %3592 = vmatmul.f32.vlgmr.msra.gmra.mxu3 %v9323_v56  ;;  %v3460_v53 = vld [vmem:[%s9647_s5 + $0x6d8] sm:$0xff]  ;;  %v3887_v38 = vld [vmem:[%s9649_s7 + $0x20] sm:$0xff]  ;;  %v3885_v16 = vld [vmem:[%s9649_s7 + $0x10] sm:$0xff] }
 0x4b0   :  { %3821 = vmatpush.msrb.mxu1 %v3308_v51  ;;  %3844 = vmatpush.msrb.mxu2 %v3372_v12  ;;  %v3456_v39 = vld [vmem:[%s9647_s5 + $0x6b8] sm:$0xff]  ;;  %v3909_v44 = vld [vmem:[%s9649_s7 + $0xd0] sm:$0xff]  ;;  %v3907_v42 = vld [vmem:[%s9649_s7 + $0xc0] sm:$0xff] }
 0x4b1   :  { %3799 = vmatmul.f32.vlgmr.msrb.gmra.mxu0 %v8707_v47  ;;  %3822 = vmatmul.f32.vlgmr.msrb.gmra.mxu1 %v8709_v34  ;;  %v3207_v47 = vpop.f32.mrf.mxu2  ;;  %v3487_v34 = vld [vmem:[%s9647_s5 + $0x7b0] sm:$0xff]  ;;  %v3230_v58 = vpop.f32.mrf.mxu3  ;;  %v3452_v20 = vld [vmem:[%s9647_s5 + $0x698] sm:$0xff] }
 0x4b2   :  { %3845 = vmatmul.f32.vlgmr.msrb.gmra.mxu2 %v8716_v27  ;;  %3760 = vmatpush.msra.mxu3 %v3495_v17  ;;  %v3208_v21 = vadd.f32 %v3207_v47, %v3185_v61  ;;  %v3483_v27 = vld [vmem:[%s9647_s5 + $0x790] sm:$0xff]  ;;  %v3448_v29 = vld [vmem:[%s9647_s5 + $0x678] sm:$0xff]  ;;  %v3883_v17 = vld [vmem:[%s9649_s7] sm:$0xff] }
 0x4b3   :  { %v3444_v48 = vld [vmem:[%s9647_s5 + $0x658] sm:$0xff]  ;;  %v3929_v23 = vld [vmem:[%s9649_s7 + $0x170] sm:$0xff] }
 0x4b4   :  { %3761 = vmatpush.msra.mxu3 %v3491_v49  ;;  %v3231_v9 = vadd.f32 %v3230_v58, %v3208_v21  ;;  %v3440_v54 = vld [vmem:[%s9647_s5 + $0x638] sm:$0xff]  ;;  %v3927_v49 = vld [vmem:[%s9649_s7 + $0x160] sm:$0xff]  ;;  %v3905_v21 = vld [vmem:[%s9649_s7 + $0xb0] sm:$0xff] }
 0x4b5   :  { %v3436_v40 = vld [vmem:[%s9647_s5 + $0x618] sm:$0xff]  ;;  %v9531_v58 = vld [vmem:[%s9648_s6] sm:$0xf] }
 0x4b6   :  { %3762 = vmatpush.msra.mxu3 %v3487_v34  ;;  %v9342_v43 = vmax.f32 %v3231_v9, 0.0  ;;  %v3898_v52 = vld [vmem:[%s9649_s7 + $0x78] sm:$0xff]  ;;  %v3925_v9 = vld [vmem:[%s9649_s7 + $0x150] sm:$0xff] }
 0x4b7   :  { %3951 = vmatpush.msra.mxu0 %v3898_v52  ;;  %v3894_v25 = vld [vmem:[%s9649_s7 + $0x58] sm:$0xff]  ;;  %v3500_v52 = vperm.slane %v9531_v58, 1 }
 0x4b8   :  { %3763 = vmatpush.msra.mxu3 %v3483_v27  ;;  %v3890_v35 = vld [vmem:[%s9649_s7 + $0x38] sm:$0xff]  ;;  %v3904_v27 = vld [vmem:[%s9649_s7 + $0xa8] sm:$0xff] }
 0x4b9   :  { %3802 = vmatmul.f32.gmra.mxu0 %v8756_v28  ;;  %3825 = vmatmul.f32.gmra.mxu1 %v8758_v7  ;;  %v3471_v28 = vld [vmem:[%s9647_s5 + $0x730] sm:$0xff]  ;;  %v3914_v0 = vld [vmem:[%s9649_s7 + $0xf8] sm:$0xff] }
 0x4ba   :  { %3848 = vmatmul.f32.gmra.mxu2 %v8763_v62  ;;  %3595 = vmatmul.f32.gmra.mxu3 %v9342_v43  ;;  %v3467_v7 = vld [vmem:[%s9647_s5 + $0x710] sm:$0xff]  ;;  %v3886_v51 = vld [vmem:[%s9649_s7 + $0x18] sm:$0xff] }
 0x4bb   :  { %3764 = vmatpush.msra.mxu3 %v3479_v60  ;;  %v3463_v62 = vld [vmem:[%s9647_s5 + $0x6f0] sm:$0xff]  ;;  %3952 = vmatpush.msra.mxu0 %v3897_v3  ;;  %v3910_v12 = vld [vmem:[%s9649_s7 + $0xd8] sm:$0xff]  ;;  %v3499_v60 = vperm.slane %v9531_v58, 0 }
 0x4bc   :  { %3974 = vmatpush.msra.mxu1 %v3914_v0  ;;  %v3930_v26 = vld [vmem:[%s9649_s7 + $0x178] sm:$0xff] }
 0x4bd   :  { %3765 = vmatpush.msra.mxu3 %v3475_v33  ;;  %3953 = vmatpush.msra.mxu0 %v3896_v59  ;;  %v3906_v61 = vld [vmem:[%s9649_s7 + $0xb8] sm:$0xff]  ;;  %v3903_v33 = vld [vmem:[%s9649_s7 + $0xa0] sm:$0xff] }
 0x4be   :  { %3975 = vmatpush.msra.mxu1 %v3913_v22  ;;  %3997 = vmatpush.msra.mxu2 %v3930_v26  ;;  %v3926_v47 = vld [vmem:[%s9649_s7 + $0x158] sm:$0xff]  ;;  %v3915_v59 = vld [vmem:[%s9649_s7 + $0x100] sm:$0xff]  ;;  %v3944_v22 = vld [vmem:[%s9649_s7 + $0x1e8] sm:$0xff] }
 0x4bf   :  { %3766 = vmatpush.msra.mxu3 %v3471_v28  ;;  %3954 = vmatpush.msra.mxu0 %v3895_v50  ;;  %v3923_v28 = vld [vmem:[%s9649_s7 + $0x140] sm:$0xff]  ;;  %v3946_v3 = vld [vmem:[%s9649_s7 + $0x1f8] sm:$0xff]  ;;  %v3945_v50 = vld [vmem:[%s9649_s7 + $0x1f0] sm:$0xff] }
 0x4c0   :  { %3976 = vmatpush.msra.mxu1 %v3912_v11  ;;  %3998 = vmatpush.msra.mxu2 %v3929_v23 }
 0x4c1   :  { %3767 = vmatpush.msra.mxu3 %v3467_v7  ;;  %3955 = vmatpush.msra.mxu0 %v3894_v25 }
 0x4c2   :  { %3684 = vmatmul.f32.vlgmr.msrb.gmra.mxu3 %v9323_v56  ;;  %3977 = vmatpush.msra.mxu1 %v3911_v57  ;;  %v3942_v57 = vld [vmem:[%s9649_s7 + $0x1d8] sm:$0xff] }
 0x4c3   :  { %3768 = vmatpush.msra.mxu3 %v3463_v62  ;;  %3956 = vmatpush.msra.mxu0 %v3893_v2 }
 0x4c4   :  { %3978 = vmatpush.msra.mxu1 %v3910_v12 }
 0x4c5   :  { %3769 = vmatpush.msra.mxu3 %v3459_v24  ;;  %3957 = vmatpush.msra.mxu0 %v3892_v37  ;;  %v3902_v24 = vld [vmem:[%s9649_s7 + $0x98] sm:$0xff] }
 0x4c6   :  { %3979 = vmatpush.msra.mxu1 %v3909_v44 }
 0x4c7   :  { %3770 = vmatpush.msra.mxu3 %v3455_v5  ;;  %3958 = vmatpush.msra.mxu0 %v3891_v36  ;;  %v3524_v34 = vpop.f32.mrf.mxu0  ;;  %v3922_v5 = vld [vmem:[%s9649_s7 + $0x138] sm:$0xff] }
 0x4c8   :  { %3980 = vmatpush.msra.mxu1 %v3908_v45  ;;  %v3547_v7 = vpop.f32.mrf.mxu1 }
 0x4c9   :  { %3771 = vmatpush.msra.mxu3 %v3451_v1  ;;  %3959 = vmatpush.msra.mxu0 %v3890_v35  ;;  %v3525_v1 = vadd.f32 %v3524_v34, %v3499_v60 }
 0x4ca   :  { %3687 = vmatmul.f32.gmra.mxu3 %v9342_v43  ;;  %3981 = vmatpush.msra.mxu1 %v3907_v42 }
 0x4cb   :  { %3772 = vmatpush.msra.mxu3 %v3447_v10  ;;  %3960 = vmatpush.msra.mxu0 %v3889_v8  ;;  %v3901_v10 = vld [vmem:[%s9649_s7 + $0x90] sm:$0xff] }
 0x4cc   :  { %3982 = vmatpush.msra.mxu1 %v3906_v61  ;;  %v3501_v61 = vperm.slane %v9531_v58, 2 }
 0x4cd   :  { %3773 = vmatpush.msra.mxu3 %v3443_v63  ;;  %3961 = vmatpush.msra.mxu0 %v3888_v13  ;;  %v3943_v13 = vld [vmem:[%s9649_s7 + $0x1e0] sm:$0xff] }
 0x4ce   :  { %3983 = vmatpush.msra.mxu1 %v3905_v21 }
 0x4cf   :  { %3774 = vmatpush.msra.mxu3 %v3439_v32  ;;  %3962 = vmatpush.msra.mxu0 %v3887_v38  ;;  %v3570_v62 = vpop.f32.mrf.mxu2  ;;  %v3900_v32 = vld [vmem:[%s9649_s7 + $0x88] sm:$0xff] }
 0x4d0   :  { %3984 = vmatpush.msra.mxu1 %v3904_v27  ;;  %v3937_v27 = vld [vmem:[%s9649_s7 + $0x1b0] sm:$0xff] }
 0x4d1   :  { %3775 = vmatpush.msra.mxu3 %v3435_v14  ;;  %3963 = vmatpush.msra.mxu0 %v3886_v51  ;;  %v3527_v63 = vpop.f32.mrf.mxu0  ;;  %v3921_v14 = vld [vmem:[%s9649_s7 + $0x130] sm:$0xff] }
 0x4d2   :  { %3776 = vmatmul.f32.vlgmr.msra.gmra.mxu3 %v9323_v56  ;;  %3985 = vmatpush.msra.mxu1 %v3903_v33 }
 0x4d3   :  { %3852 = vmatpush.msrb.mxu3 %v3496_v4  ;;  %3964 = vmatpush.msra.mxu0 %v3885_v16  ;;  %v3920_v4 = vld [vmem:[%s9649_s7 + $0x128] sm:$0xff]  ;;  %v3941_v16 = vld [vmem:[%s9649_s7 + $0x1d0] sm:$0xff] }
 0x4d4   :  { %3986 = vmatpush.msra.mxu1 %v3902_v24 }
 0x4d5   :  { %3853 = vmatpush.msrb.mxu3 %v3492_v30  ;;  %3965 = vmatpush.msra.mxu0 %v3884_v6  ;;  %v3548_v30 = vadd.f32 %v3547_v7, %v3525_v1  ;;  %v3940_v6 = vld [vmem:[%s9649_s7 + $0x1c8] sm:$0xff] }
 0x4d6   :  { %3987 = vmatpush.msra.mxu1 %v3901_v10 }
 0x4d7   :  { %3854 = vmatpush.msrb.mxu3 %v3488_v41  ;;  %3966 = vmatpush.msra.mxu0 %v3883_v17  ;;  %v3899_v41 = vld [vmem:[%s9649_s7 + $0x80] sm:$0xff] }
 0x4d8   :  { %3988 = vmatpush.msra.mxu1 %v3900_v32  ;;  %v3939_v17 = vld [vmem:[%s9649_s7 + $0x1c0] sm:$0xff] }
 0x4d9   :  { %3855 = vmatpush.msrb.mxu3 %v3484_v31  ;;  %v3919_v31 = vld [vmem:[%s9649_s7 + $0x120] sm:$0xff] }
 0x4da   :  { %3779 = vmatmul.f32.gmra.mxu3 %v9342_v43  ;;  %3989 = vmatpush.msra.mxu1 %v3899_v41 }
 0x4db   :  { %3856 = vmatpush.msrb.mxu3 %v3480_v19  ;;  %v3571_v19 = vadd.f32 %v3570_v62, %v3548_v30  ;;  %v3935_v62 = vld [vmem:[%s9649_s7 + $0x1a0] sm:$0xff]  ;;  %v3932_v30 = vld [vmem:[%s9649_s7 + $0x188] sm:$0xff] }
 0x4dd   :  { %3857 = vmatpush.msrb.mxu3 %v3476_v15 }
 0x4df   :  { %3858 = vmatpush.msrb.mxu3 %v3472_v46  ;;  %v3918_v46 = vld [vmem:[%s9649_s7 + $0x118] sm:$0xff] }
 0x4e1   :  { %3859 = vmatpush.msrb.mxu3 %v3468_v55  ;;  %v3528_v55 = vadd.f32 %v3527_v63, %v3499_v60  ;;  %v3936_v60 = vld [vmem:[%s9649_s7 + $0x1a8] sm:$0xff] }
 0x4e3   :  { %3860 = vmatpush.msrb.mxu3 %v3464_v18  ;;  %v3550_v18 = vpop.f32.mrf.mxu1 }
 0x4e5   :  { %3861 = vmatpush.msrb.mxu3 %v3460_v53  ;;  %v3573_v53 = vpop.f32.mrf.mxu2 }
 0x4e7   :  { %3862 = vmatpush.msrb.mxu3 %v3456_v39 }
 0x4e9   :  { %3863 = vmatpush.msrb.mxu3 %v3452_v20 }
 0x4ea   :  { %v3616_v20 = vpop.f32.mrf.mxu0 }
 0x4eb   :  { %3864 = vmatpush.msrb.mxu3 %v3448_v29  ;;  %v3617_v37 = vadd.f32 %v3616_v20, %v3500_v52  ;;  %v3639_v36 = vpop.f32.mrf.mxu1 }
 0x4ed   :  { %3865 = vmatpush.msrb.mxu3 %v3444_v48  ;;  %v3917_v48 = vld [vmem:[%s9649_s7 + $0x110] sm:$0xff]  ;;  %v3640_v11 = vadd.f32 %v3639_v36, %v3617_v37 }
 0x4ef   :  { %3866 = vmatpush.msrb.mxu3 %v3440_v54  ;;  %v3916_v54 = vld [vmem:[%s9649_s7 + $0x108] sm:$0xff] }
 0x4f1   :  { %3867 = vmatpush.msrb.mxu3 %v3436_v40  ;;  %v3551_v40 = vadd.f32 %v3550_v18, %v3528_v55  ;;  %v3662_v35 = vpop.f32.mrf.mxu2 }
 0x4f2   :  { %3868 = vmatmul.f32.vlgmr.msrb.gmra.mxu3 %v9323_v56  ;;  %v3928_v56 = vld [vmem:[%s9649_s7 + $0x168] sm:$0xff]  ;;  %v3663_v51 = vadd.f32 %v3662_v35, %v3640_v11 }
 0x4f3   :  { %3999 = vmatpush.msra.mxu2 %v3928_v56  ;;  %4020 = vmatpush.msra.mxu3 %v3946_v3  ;;  %v3574_v25 = vadd.f32 %v3573_v53, %v3551_v40  ;;  %v3619_v38 = vpop.f32.mrf.mxu0  ;;  %v3642_v45 = vpop.f32.mrf.mxu1 }
 0x4f4   :  { %v3620_v44 = vadd.f32 %v3619_v38, %v3500_v52  ;;  %v4066_v38 = vld [vmem:[%s9650_s8] ss:$0 sm:$0xff]  ;;  %s4095_s8 = smov 128  }
 0x4f5   :  { %4000 = vmatpush.msra.mxu2 %v3927_v49  ;;  %4021 = vmatpush.msra.mxu3 %v3945_v50 }
 0x4f6   :  { %v3643_v42 = vadd.f32 %v3642_v45, %v3620_v44 }
 0x4f7   :  { %4001 = vmatpush.msra.mxu2 %v3926_v47  ;;  %4022 = vmatpush.msra.mxu3 %v3944_v22  ;;  %v3938_v47 = vld [vmem:[%s9649_s7 + $0x1b8] sm:$0xff] }
 0x4f9   :  { %4002 = vmatpush.msra.mxu2 %v3925_v9  ;;  %4023 = vmatpush.msra.mxu3 %v3943_v13 }
 0x4fa   :  { %3871 = vmatmul.f32.gmra.mxu3 %v9342_v43  ;;  %v3924_v43 = vld [vmem:[%s9649_s7 + $0x148] sm:$0xff]  ;;  %v3665_v23 = vpop.f32.mrf.mxu2 }
 0x4fb   :  { %4003 = vmatpush.msra.mxu2 %v3924_v43  ;;  %4024 = vmatpush.msra.mxu3 %v3942_v57  ;;  %v3666_v34 = vadd.f32 %v3665_v23, %v3643_v42 }
 0x4fd   :  { %4004 = vmatpush.msra.mxu2 %v3923_v28  ;;  %4025 = vmatpush.msra.mxu3 %v3941_v16 }
 0x4ff   :  { %4005 = vmatpush.msra.mxu2 %v3922_v5  ;;  %4026 = vmatpush.msra.mxu3 %v3940_v6  ;;  %v3934_v5 = vld [vmem:[%s9649_s7 + $0x198] sm:$0xff] }
 0x501   :  { %4006 = vmatpush.msra.mxu2 %v3921_v14  ;;  %4027 = vmatpush.msra.mxu3 %v3939_v17 }
 0x503   :  { %4007 = vmatpush.msra.mxu2 %v3920_v4  ;;  %4028 = vmatpush.msra.mxu3 %v3938_v47  ;;  %v3933_v4 = vld [vmem:[%s9649_s7 + $0x190] sm:$0xff] }
 0x505   :  { %4008 = vmatpush.msra.mxu2 %v3919_v31  ;;  %4029 = vmatpush.msra.mxu3 %v3937_v27  ;;  %v3931_v31 = vld [vmem:[%s9649_s7 + $0x180] sm:$0xff] }
 0x507   :  { %4009 = vmatpush.msra.mxu2 %v3918_v46  ;;  %4030 = vmatpush.msra.mxu3 %v3936_v60 }
 0x509   :  { %4010 = vmatpush.msra.mxu2 %v3917_v48  ;;  %4031 = vmatpush.msra.mxu3 %v3935_v62 }
 0x50b   :  { %4011 = vmatpush.msra.mxu2 %v3916_v54  ;;  %4032 = vmatpush.msra.mxu3 %v3934_v5 }
 0x50c   :  { %v3708_v49 = vpop.f32.mrf.mxu0  ;;  %v3731_v33 = vpop.f32.mrf.mxu1 }
 0x50d   :  { %4012 = vmatpush.msra.mxu2 %v3915_v59  ;;  %v3709_v43 = vadd.f32 %v3708_v49, %v3501_v61  ;;  %4033 = vmatpush.msra.mxu3 %v3933_v4 }
 0x50f   :  { %v3732_v24 = vadd.f32 %v3731_v33, %v3709_v43  ;;  %4034 = vmatpush.msra.mxu3 %v3932_v30 }
 0x511   :  { %4035 = vmatpush.msra.mxu3 %v3931_v31 }
 0x513   :  { %v3754_v28 = vpop.f32.mrf.mxu2 }
 0x514   :  { %v3755_v10 = vadd.f32 %v3754_v28, %v3732_v24 }
 0x515   :  { %v3711_v1 = vpop.f32.mrf.mxu0 }
 0x516   :  { %v3712_v32 = vadd.f32 %v3711_v1, %v3501_v61 }
 0x52e   :  { %v3800_v20 = vpop.f32.mrf.mxu0 }
 0x532   :  { %v3593_v15 = vpop.f32.mrf.mxu3 }
 0x533   :  { %v3594_v39 = vadd.f32 %v3593_v15, %v3571_v19  ;;  %v3734_v19 = vpop.f32.mrf.mxu1  ;;  %v3757_v15 = vpop.f32.mrf.mxu2 }
 0x534   :  { %v3735_v46 = vadd.f32 %v3734_v19, %v3712_v32 }
 0x535   :  { %v3875_v29 = vmax.f32 %v3594_v39, 0.0 }
 0x536   :  { %v3758_v55 = vadd.f32 %v3757_v15, %v3735_v46  ;;  %v3803_v3 = vpop.f32.mrf.mxu0 }
 0x537   :  { %3967 = vmatmul.f32.vlgmr.msra.gmra.mxu0 %v3875_v29  ;;  %v3502_v29 = vperm.slane %v9531_v58, 3 }
 0x539   :  { %v3801_v48 = vadd.f32 %v3800_v20, %v3502_v29 }
 0x53b   :  { %v3823_v54 = vpop.f32.mrf.mxu1  ;;  %v3846_v40 = vpop.f32.mrf.mxu2 }
 0x53c   :  { %v3824_v52 = vadd.f32 %v3823_v54, %v3801_v48 }
 0x53d   :  { %v3596_v2 = vpop.f32.mrf.mxu3 }
 0x53e   :  { %v3597_v0 = vadd.f32 %v3596_v2, %v3574_v25  ;;  %v3847_v59 = vadd.f32 %v3846_v40, %v3824_v52  ;;  %v3804_v25 = vadd.f32 %v3803_v3, %v3502_v29 }
 0x540   :  { %v3879_v8 = vmax.f32 %v3597_v0, 0.0 }
 0x542   :  { %3970 = vmatmul.f32.gmra.mxu0 %v3879_v8 }
 0x543   :  { %v3826_v36 = vpop.f32.mrf.mxu1  ;;  %v3849_v35 = vpop.f32.mrf.mxu2 }
 0x544   :  { %v3827_v0 = vadd.f32 %v3826_v36, %v3804_v25 }
 0x545   :  { %v3685_v12 = vpop.f32.mrf.mxu3 }
 0x546   :  { %v3686_v26 = vadd.f32 %v3685_v12, %v3663_v51  ;;  %v3850_v8 = vadd.f32 %v3849_v35, %v3827_v0 }
 0x548   :  { %v3876_v56 = vmax.f32 %v3686_v26, 0.0 }
 0x54a   :  { %3990 = vmatmul.f32.vlgmr.msra.gmra.mxu1 %v3876_v56 }
 0x54d   :  { %v3688_v21 = vpop.f32.mrf.mxu3 }
 0x54e   :  { %v3689_v9 = vadd.f32 %v3688_v21, %v3666_v34 }
 0x550   :  { %v3880_v7 = vmax.f32 %v3689_v9, 0.0 }
 0x552   :  { %3993 = vmatmul.f32.gmra.mxu1 %v3880_v7 }
 0x555   :  { %v3777_v63 = vpop.f32.mrf.mxu3 }
 0x556   :  { %v3778_v14 = vadd.f32 %v3777_v63, %v3755_v10 }
 0x558   :  { %v3877_v41 = vmax.f32 %v3778_v14, 0.0 }
 0x55a   :  { %4013 = vmatmul.f32.vlgmr.msra.gmra.mxu2 %v3877_v41 }
 0x55d   :  { %v3780_v18 = vpop.f32.mrf.mxu3 }
 0x55e   :  { %v3781_v53 = vadd.f32 %v3780_v18, %v3758_v55 }
 0x560   :  { %v3881_v39 = vmax.f32 %v3781_v53, 0.0 }
 0x562   :  { %4016 = vmatmul.f32.gmra.mxu2 %v3881_v39 }
 0x575   :  { %v3869_v50 = vpop.f32.mrf.mxu3 }
 0x576   :  { %v3870_v2 = vadd.f32 %v3869_v50, %v3847_v59 }
 0x578   :  { %v3878_v37 = vmax.f32 %v3870_v2, 0.0 }
 0x57a   :  { %4036 = vmatmul.f32.vlgmr.msra.gmra.mxu3 %v3878_v37 }
 0x57d   :  { %v3872_v22 = vpop.f32.mrf.mxu3 }
 0x57e   :  { %v3873_v13 = vadd.f32 %v3872_v22, %v3850_v8 }
 0x580   :  { %v3882_v11 = vmax.f32 %v3873_v13, 0.0 }
 0x582   :  { %4039 = vmatmul.f32.gmra.mxu3 %v3882_v11 }
 0x5b4   :  { %v3968_v58 = vpop.f32.mrf.mxu0 }
 0x5b5   :  { %v3969_v12 = vadd.f32 %v4066_v38, %v3968_v58 }
 0x5bf   :  { %v3971_v26 = vpop.f32.mrf.mxu0 }
 0x5c0   :  { %v3972_v56 = vadd.f32 %v4066_v38, %v3971_v26 }
 0x5c7   :  { %v3991_v57 = vpop.f32.mrf.mxu1 }
 0x5c8   :  { %v3992_v16 = vadd.f32 %v3991_v57, %v3969_v12 }
 0x5cf   :  { %v3994_v23 = vpop.f32.mrf.mxu1 }
 0x5d0   :  { %v3995_v42 = vadd.f32 %v3994_v23, %v3972_v56 }
 0x5dd   :  { %v4014_v51 = vpop.f32.mrf.mxu2 }
 0x5de   :  { %v4015_v44 = vadd.f32 %v4014_v51, %v3992_v16 }
 0x5e5   :  { %v4017_v17 = vpop.f32.mrf.mxu2 }
 0x5e6   :  { %v4018_v49 = vadd.f32 %v4017_v17, %v3995_v42 }
 0x5fd   :  { %v4037_v6 = vpop.f32.mrf.mxu3 }
 0x5fe   :  { %v4038_v45 = vadd.f32 %v4037_v6, %v4015_v44 }
 0x600   :  { %4043 = vst [vmem:[#allocation2] sm:$0xff] %v4038_v45 }
 0x605   :  { %v4040_v61 = vpop.f32.mrf.mxu3 }
 0x606   :  { %v4041_v47 = vadd.f32 %v4040_v61, %v4018_v49 }
 0x608   :  { %4044 = vst [vmem:[#allocation2 + $0x8] sm:$0xff] %v4041_v47 }
 0x609   :  { %4057 = dma.vmem_to_hbm [thread:$0]  %s4050_s13, 256, %s4052_s1, [#allocation3], %s4095_s8, %s4095_s8, %s4096_s14  }
 0x60a   :  { %4092 = dma.done.wait [#allocation3], 256  }
 0x60b   :  { %4093 = vsyncadd [#allocation3], 4294967040 }
 0x60c   :  { %4062 = vsyncpa [#allocation3], 1 }

</bundles_post_ra>
